<compile_context>
chip_gen: v6e
topology: v6e:2x2x1
jax: 0.10.0
libtpu: 0.0.40
codegen_flags: <defaults>
</compile_context>

<pallas_src>
import functools
import math

import jax
import jax.numpy as jnp
from jax.experimental import pallas as pl
from jax.experimental.pallas import tpu as pltpu

# ----------------------------- toy model config -----------------------------
VOCAB = 64
TYPE_VOCAB = 2
MAX_POS = 32
HIDDEN = 128                 # multiple of 128 -> lane-dense loads/stores everywhere
N_HEADS = 4
D_HEAD = HIDDEN // N_HEADS
INTERMEDIATE = 256
N_LAYERS = 2
LN_EPS = 1e-12

B, S = 2, 8                  # batch, sequence length


# ------------------------------ kernel helpers -------------------------------
def _layernorm(x, g, b, eps):
    mu = jnp.mean(x, axis=-1, keepdims=True)
    var = jnp.mean((x - mu) ** 2, axis=-1, keepdims=True)
    return (x - mu) * jax.lax.rsqrt(var + eps) * g + b


def _gelu(x):
    # TODO(synk): HF/PyTorch BERT uses erf-based gelu; tanh approximation used here.
    return 0.5 * x * (1.0 + jnp.tanh(0.7978845608028654 * (x + 0.044715 * x * x * x)))


# ------------------------------- fused kernel --------------------------------
def encoder_kernel(emb_ref, mask_ref, eg_ref, eb_ref,
                   wqkv_ref, bqkv_ref, wo_ref, bo_ref, ln1g_ref, ln1b_ref,
                   wi_ref, bi_ref, wo2_ref, bo2_ref, ln2g_ref, ln2b_ref,
                   o_ref, *, batch, seq, n_layers, n_heads, d_head, eps):
    """Whole encoder (all layers, whole batch) in one grid step; everything on-chip."""
    h_dim = n_heads * d_head

    # flattened token slab (B*S, H) -> embedding LayerNorm
    x = emb_ref[...].astype(jnp.float32)
    x = _layernorm(x, eg_ref[...], eb_ref[...], eps)

    # additive attention mask, hoisted ONCE: (B, 1, S) -> (B, S, S); reused by every head/layer
    m3 = jnp.broadcast_to(mask_ref[...].astype(jnp.float32), (batch, seq, seq))

    for l in range(n_layers):                       # static unroll; fine at L=2
        xb = x.astype(jnp.bfloat16)

        # fused QKV projection: one lane-dense (B*S, 3H) MXU pass (scale already in Wq)
        qkv = jnp.dot(xb, wqkv_ref[l], preferred_element_type=jnp.float32) + bqkv_ref[l]

        # per-head attention, batched over the batch dim via 3-D einsums
        ctx_heads = []
        for h in range(n_heads):
            lo = h * d_head
            q = qkv[:, lo:lo + d_head].reshape(batch, seq, d_head).astype(jnp.bfloat16)
            k = qkv[:, h_dim + lo:h_dim + lo + d_head].reshape(batch, seq, d_head).astype(jnp.bfloat16)
            v = qkv[:, 2 * h_dim + lo:2 * h_dim + lo + d_head].reshape(batch, seq, d_head).astype(jnp.bfloat16)

            s = jnp.einsum('bqd,bkd->bqk', q, k,
                           preferred_element_type=jnp.float32) + m3          # (B, S, S)
            s = s - jnp.max(s, axis=-1, keepdims=True)
            p = jnp.exp(s)
            p = p / jnp.sum(p, axis=-1, keepdims=True)                        # exact div (parity)
            c = jnp.einsum('bqk,bkd->bqd', p.astype(jnp.bfloat16), v,
                           preferred_element_type=jnp.float32)                # (B, S, d)
            ctx_heads.append(c.reshape(batch * seq, d_head))
        ctx = jnp.concatenate(ctx_heads, axis=-1)                             # (B*S, H) lane-dense

        attn = jnp.dot(ctx.astype(jnp.bfloat16), wo_ref[l],
                       preferred_element_type=jnp.float32) + bo_ref[l]
        x = _layernorm(attn + x, ln1g_ref[l], ln1b_ref[l], eps)               # residual + LN

        inter = _gelu(jnp.dot(x.astype(jnp.bfloat16), wi_ref[l],
                              preferred_element_type=jnp.float32) + bi_ref[l])
        ffn = jnp.dot(inter.astype(jnp.bfloat16), wo2_ref[l],
                      preferred_element_type=jnp.float32) + bo2_ref[l]
        x = _layernorm(ffn + x, ln2g_ref[l], ln2b_ref[l], eps)                # residual + LN

    o_ref[...] = x.astype(o_ref.dtype)                                        # (B*S, 128) lane-dense


# --------------------------- parameter init ----------------------------------
def init_params(key):
    def nrm(k, shape):
        return (0.02 * jax.random.normal(k, shape)).astype(jnp.float32)

    keys = iter(jax.random.split(key, 3 + N_LAYERS * 6))
    p = {
        "word_emb": nrm(next(keys), (VOCAB, HIDDEN)),
        "pos_emb": nrm(next(keys), (MAX_POS, HIDDEN)),
        "type_emb": nrm(next(keys), (TYPE_VOCAB, HIDDEN)),
        "emb_ln_g": jnp.ones((1, HIDDEN), jnp.float32),
        "emb_ln_b": jnp.zeros((1, HIDDEN), jnp.float32),
    }
    scale = 1.0 / math.sqrt(D_HEAD)
    wqkv, wo, wi, wo2 = [], [], [], []
    for _ in range(N_LAYERS):
        wq = nrm(next(keys), (HIDDEN, HIDDEN)) * scale     # 1/sqrt(d_head) folded into Wq
        wk = nrm(next(keys), (HIDDEN, HIDDEN))
        wv = nrm(next(keys), (HIDDEN, HIDDEN))
        wqkv.append(jnp.concatenate([wq, wk, wv], axis=1))  # fused (H, 3H)
        wo.append(nrm(next(keys), (HIDDEN, HIDDEN)))
        wi.append(nrm(next(keys), (HIDDEN, INTERMEDIATE)))
        wo2.append(nrm(next(keys), (INTERMEDIATE, HIDDEN)))
    bf = jnp.bfloat16
    p.update({
        "wqkv": jnp.stack(wqkv).astype(bf),                  # (L, H, 3H) bf16 (MXU-native)
        # NOTE: the Q part of bqkv would carry the same 1/sqrt(d) fold; zero at init.
        "bqkv": jnp.zeros((N_LAYERS, 1, 3 * HIDDEN), jnp.float32),
        "wo": jnp.stack(wo).astype(bf),
        "bo": jnp.zeros((N_LAYERS, 1, HIDDEN), jnp.float32),
        "ln1_g": jnp.ones((N_LAYERS, 1, HIDDEN), jnp.float32),
        "ln1_b": jnp.zeros((N_LAYERS, 1, HIDDEN), jnp.float32),
        "wi": jnp.stack(wi).astype(bf),
        "bi": jnp.zeros((N_LAYERS, 1, INTERMEDIATE), jnp.float32),
        "wo2": jnp.stack(wo2).astype(bf),
        "bo2": jnp.zeros((N_LAYERS, 1, HIDDEN), jnp.float32),
        "ln2_g": jnp.ones((N_LAYERS, 1, HIDDEN), jnp.float32),
        "ln2_b": jnp.zeros((N_LAYERS, 1, HIDDEN), jnp.float32),
    })
    return p


# ------------------------------ forward ---------------------------------------
def bert_forward(params, ids, segs, mask):
    """Returns top_vec = last-layer hidden states, shape (B, S, HIDDEN)."""
    Bb, Ss = ids.shape

    # embedding gathers are glue (outside the kernel); summed once, flattened token slab
    we = params["word_emb"][ids]                                 # (B, S, H)
    pe = params["pos_emb"][:Ss][None]                            # (1, S, H)
    te = params["type_emb"][segs]                                # (B, S, H)
    emb = (we + pe + te).reshape(Bb * Ss, HIDDEN)                # (B*S, H)

    # HF-style extended attention mask: (1 - mask) * -10000, one row per batch element
    mask_add = ((1.0 - mask.astype(jnp.float32)) * -10000.0).reshape(Bb, 1, Ss)

    L = N_LAYERS

    def full(shape):                                             # whole-array block
        return pl.BlockSpec(shape, lambda i, _n=len(shape): (0,) * _n)

    kern = functools.partial(encoder_kernel, batch=Bb, seq=Ss, n_layers=N_LAYERS,
                             n_heads=N_HEADS, d_head=D_HEAD, eps=LN_EPS)

    out = pl.pallas_call(
        kern,
        out_shape=jax.ShapeDtypeStruct((Bb * Ss, HIDDEN), jnp.float32),
        grid=(1,),                                               # single fused step (batch folded)
        in_specs=[
            full((Bb * Ss, HIDDEN)),                             # embeddings, flattened
            full((Bb, 1, Ss)),                                   # additive mask rows
            full((1, HIDDEN)), full((1, HIDDEN)),                # embedding LN gamma/beta
            full((L, HIDDEN, 3 * HIDDEN)), full((L, 1, 3 * HIDDEN)),     # fused QKV
            full((L, HIDDEN, HIDDEN)), full((L, 1, HIDDEN)),             # attn out proj
            full((L, 1, HIDDEN)), full((L, 1, HIDDEN)),                  # LN1
            full((L, HIDDEN, INTERMEDIATE)), full((L, 1, INTERMEDIATE)), # FFN in
            full((L, INTERMEDIATE, HIDDEN)), full((L, 1, HIDDEN)),       # FFN out
            full((L, 1, HIDDEN)), full((L, 1, HIDDEN)),                  # LN2
        ],
        out_specs=full((Bb * Ss, HIDDEN)),
        compiler_params=pltpu.CompilerParams(dimension_semantics=("arbitrary",)),
    )(emb, mask_add,
      params["emb_ln_g"], params["emb_ln_b"],
      params["wqkv"], params["bqkv"], params["wo"], params["bo"],
      params["ln1_g"], params["ln1_b"],
      params["wi"], params["bi"], params["wo2"], params["bo2"],
      params["ln2_g"], params["ln2_b"])

    return out.reshape(Bb, Ss, HIDDEN)


# -------------------------------- main ----------------------------------------
if __name__ == "__main__":
    key = jax.random.PRNGKey(0)
    kp, kx = jax.random.split(key, 2)

    params = init_params(kp)

    ids = jax.random.randint(kx, (B, S), 0, VOCAB, dtype=jnp.int32)
    segs = jnp.concatenate(
        [jnp.zeros((B, S // 2), jnp.int32), jnp.ones((B, S - S // 2), jnp.int32)],
        axis=1)
    mask = jnp.ones((B, S), jnp.float32).at[1, -2:].set(0.0)   # pad last 2 tokens of batch 1

    top_vec = jax.jit(bert_forward)(params, ids, segs, mask)
    top_vec = jax.block_until_ready(top_vec)

    assert top_vec.shape == (B, S, HIDDEN)
    assert bool(jnp.all(jnp.isfinite(top_vec)))
    print("KERNEL_OK")
</pallas_src>

<mosaic_0001>
module attributes {stable_mosaic.version = 11 : i64} {
  func.func @encoder_kernel(%arg0: i32, %arg1: memref<16x128xf32, #tpu.memory_space<vmem>>, %arg2: memref<2x1x8xf32, #tpu.memory_space<vmem>>, %arg3: memref<1x128xf32, #tpu.memory_space<vmem>>, %arg4: memref<1x128xf32, #tpu.memory_space<vmem>>, %arg5: memref<2x128x384xbf16, #tpu.memory_space<vmem>>, %arg6: memref<2x1x384xf32, #tpu.memory_space<vmem>>, %arg7: memref<2x128x128xbf16, #tpu.memory_space<vmem>>, %arg8: memref<2x1x128xf32, #tpu.memory_space<vmem>>, %arg9: memref<2x1x128xf32, #tpu.memory_space<vmem>>, %arg10: memref<2x1x128xf32, #tpu.memory_space<vmem>>, %arg11: memref<2x128x256xbf16, #tpu.memory_space<vmem>>, %arg12: memref<2x1x256xf32, #tpu.memory_space<vmem>>, %arg13: memref<2x256x128xbf16, #tpu.memory_space<vmem>>, %arg14: memref<2x1x128xf32, #tpu.memory_space<vmem>>, %arg15: memref<2x1x128xf32, #tpu.memory_space<vmem>>, %arg16: memref<2x1x128xf32, #tpu.memory_space<vmem>>, %arg17: memref<16x128xf32, #tpu.memory_space<vmem>>) attributes {dimension_semantics = [#tpu.dimension_semantics<arbitrary>], iteration_bounds = array<i64: 1>, scalar_prefetch = 0 : i64, scratch_operands = 0 : i64, tpu.core_type = #tpu.core_type<tc>, window_params = [{pipeline_mode = #tpu.pipeline_mode<synchronous>, transform_indices = @transform_0, window_bounds = array<i64: 16, 128>}, {pipeline_mode = #tpu.pipeline_mode<synchronous>, transform_indices = @transform_1, window_bounds = array<i64: 2, 1, 8>}, {pipeline_mode = #tpu.pipeline_mode<synchronous>, transform_indices = @transform_2, window_bounds = array<i64: 1, 128>}, {pipeline_mode = #tpu.pipeline_mode<synchronous>, transform_indices = @transform_3, window_bounds = array<i64: 1, 128>}, {pipeline_mode = #tpu.pipeline_mode<synchronous>, transform_indices = @transform_4, window_bounds = array<i64: 2, 128, 384>}, {pipeline_mode = #tpu.pipeline_mode<synchronous>, transform_indices = @transform_5, window_bounds = array<i64: 2, 1, 384>}, {pipeline_mode = #tpu.pipeline_mode<synchronous>, transform_indices = @transform_6, window_bounds = array<i64: 2, 128, 128>}, {pipeline_mode = #tpu.pipeline_mode<synchronous>, transform_indices = @transform_7, window_bounds = array<i64: 2, 1, 128>}, {pipeline_mode = #tpu.pipeline_mode<synchronous>, transform_indices = @transform_8, window_bounds = array<i64: 2, 1, 128>}, {pipeline_mode = #tpu.pipeline_mode<synchronous>, transform_indices = @transform_9, window_bounds = array<i64: 2, 1, 128>}, {pipeline_mode = #tpu.pipeline_mode<synchronous>, transform_indices = @transform_10, window_bounds = array<i64: 2, 128, 256>}, {pipeline_mode = #tpu.pipeline_mode<synchronous>, transform_indices = @transform_11, window_bounds = array<i64: 2, 1, 256>}, {pipeline_mode = #tpu.pipeline_mode<synchronous>, transform_indices = @transform_12, window_bounds = array<i64: 2, 256, 128>}, {pipeline_mode = #tpu.pipeline_mode<synchronous>, transform_indices = @transform_13, window_bounds = array<i64: 2, 1, 128>}, {pipeline_mode = #tpu.pipeline_mode<synchronous>, transform_indices = @transform_14, window_bounds = array<i64: 2, 1, 128>}, {pipeline_mode = #tpu.pipeline_mode<synchronous>, transform_indices = @transform_15, window_bounds = array<i64: 2, 1, 128>}, {pipeline_mode = #tpu.pipeline_mode<synchronous>, transform_indices = @transform_16, window_bounds = array<i64: 16, 128>}]} {
    %c0 = arith.constant 0 : index
    %c0_0 = arith.constant 0 : index
    %0 = vector.load %arg1[%c0, %c0_0] : memref<16x128xf32, #tpu.memory_space<vmem>>, vector<16x128xf32>
    %c0_1 = arith.constant 0 : index
    %c0_2 = arith.constant 0 : index
    %1 = vector.load %arg3[%c0_1, %c0_2] : memref<1x128xf32, #tpu.memory_space<vmem>>, vector<1x128xf32>
    %c0_3 = arith.constant 0 : index
    %c0_4 = arith.constant 0 : index
    %2 = vector.load %arg4[%c0_3, %c0_4] : memref<1x128xf32, #tpu.memory_space<vmem>>, vector<1x128xf32>
    %cst = arith.constant dense<0.000000e+00> : vector<16xf32>
    %3 = vector.multi_reduction <add>, %0, %cst [1] : vector<16x128xf32> to vector<16xf32>
    %4 = vector.shape_cast %3 : vector<16xf32> to vector<16x1xf32>
    %cst_5 = arith.constant 1.280000e+02 : f32
    %5 = vector.broadcast %cst_5 : f32 to vector<16x1xf32>
    %6 = arith.divf %4, %5 : vector<16x1xf32>
    %7 = vector.broadcast %6 : vector<16x1xf32> to vector<16x128xf32>
    %8 = arith.subf %0, %7 : vector<16x128xf32>
    %9 = arith.mulf %8, %8 : vector<16x128xf32>
    %cst_6 = arith.constant dense<0.000000e+00> : vector<16xf32>
    %10 = vector.multi_reduction <add>, %9, %cst_6 [1] : vector<16x128xf32> to vector<16xf32>
    %11 = vector.shape_cast %10 : vector<16xf32> to vector<16x1xf32>
    %cst_7 = arith.constant 1.280000e+02 : f32
    %12 = vector.broadcast %cst_7 : f32 to vector<16x1xf32>
    %13 = arith.divf %11, %12 : vector<16x1xf32>
    %14 = vector.broadcast %6 : vector<16x1xf32> to vector<16x128xf32>
    %15 = arith.subf %0, %14 : vector<16x128xf32>
    %cst_8 = arith.constant 9.99999996E-13 : f32
    %16 = vector.broadcast %cst_8 : f32 to vector<16x1xf32>
    %17 = arith.addf %13, %16 : vector<16x1xf32>
    %18 = math.rsqrt %17 : vector<16x1xf32>
    %19 = vector.broadcast %18 : vector<16x1xf32> to vector<16x128xf32>
    %20 = arith.mulf %15, %19 : vector<16x128xf32>
    %21 = vector.broadcast %1 : vector<1x128xf32> to vector<16x128xf32>
    %22 = arith.mulf %20, %21 : vector<16x128xf32>
    %23 = vector.broadcast %2 : vector<1x128xf32> to vector<16x128xf32>
    %24 = arith.addf %22, %23 : vector<16x128xf32>
    %c0_9 = arith.constant 0 : index
    %c0_10 = arith.constant 0 : index
    %c0_11 = arith.constant 0 : index
    %25 = vector.load %arg2[%c0_9, %c0_10, %c0_11] : memref<2x1x8xf32, #tpu.memory_space<vmem>>, vector<2x1x8xf32>
    %26 = vector.shape_cast %25 : vector<2x1x8xf32> to vector<2x1x8xf32>
    %27 = vector.broadcast %26 : vector<2x1x8xf32> to vector<2x8x8xf32>
    %28 = arith.truncf %24 : vector<16x128xf32> to vector<16x128xbf16>
    %c0_12 = arith.constant 0 : index
    %c0_13 = arith.constant 0 : index
    %c0_14 = arith.constant 0 : index
    %29 = vector.load %arg5[%c0_12, %c0_13, %c0_14] : memref<2x128x384xbf16, #tpu.memory_space<vmem>>, vector<1x128x384xbf16>
    %30 = vector.shape_cast %29 : vector<1x128x384xbf16> to vector<128x384xbf16>
    %cst_15 = arith.constant dense<0.000000e+00> : vector<16x384xf32>
    %31 = tpu.matmul %28, %30, %cst_15 {dimension_numbers = #tpu.dot_dimension_numbers<[1], [0], [0], [1], [0, 0, 1, 1], [], []>} : vector<16x128xbf16>, vector<128x384xbf16>, vector<16x384xf32> -> vector<16x384xf32>
    %c0_16 = arith.constant 0 : index
    %c0_17 = arith.constant 0 : index
    %c0_18 = arith.constant 0 : index
    %32 = vector.load %arg6[%c0_16, %c0_17, %c0_18] : memref<2x1x384xf32, #tpu.memory_space<vmem>>, vector<1x1x384xf32>
    %33 = vector.shape_cast %32 : vector<1x1x384xf32> to vector<1x384xf32>
    %34 = vector.broadcast %33 : vector<1x384xf32> to vector<16x384xf32>
    %35 = arith.addf %31, %34 : vector<16x384xf32>
    %36 = vector.extract_strided_slice %35 {offsets = [0, 0], sizes = [16, 32], strides = [1, 1]} : vector<16x384xf32> to vector<16x32xf32>
    %37 = vector.shape_cast %36 : vector<16x32xf32> to vector<2x8x32xf32>
    %38 = arith.truncf %37 : vector<2x8x32xf32> to vector<2x8x32xbf16>
    %39 = vector.extract_strided_slice %35 {offsets = [0, 128], sizes = [16, 32], strides = [1, 1]} : vector<16x384xf32> to vector<16x32xf32>
    %40 = vector.shape_cast %39 : vector<16x32xf32> to vector<2x8x32xf32>
    %41 = arith.truncf %40 : vector<2x8x32xf32> to vector<2x8x32xbf16>
    %42 = vector.extract_strided_slice %35 {offsets = [0, 256], sizes = [16, 32], strides = [1, 1]} : vector<16x384xf32> to vector<16x32xf32>
    %43 = vector.shape_cast %42 : vector<16x32xf32> to vector<2x8x32xf32>
    %44 = arith.truncf %43 : vector<2x8x32xf32> to vector<2x8x32xbf16>
    "tpu.trace_start"() <{level = 10 : i32, message = "bqd,bkd->bqk"}> : () -> ()
    %cst_19 = arith.constant dense<0.000000e+00> : vector<2x8x8xf32>
    %45 = tpu.matmul %38, %41, %cst_19 {dimension_numbers = #tpu.dot_dimension_numbers<[2], [2], [1], [1], [0, 0, 0, 1, 1, 1], [0], [0]>} : vector<2x8x32xbf16>, vector<2x8x32xbf16>, vector<2x8x8xf32> -> vector<2x8x8xf32>
    "tpu.trace_stop"() : () -> ()
    %46 = arith.addf %45, %27 : vector<2x8x8xf32>
    %cst_20 = arith.constant dense<0xFF800000> : vector<2x8xf32>
    %47 = vector.multi_reduction <maximumf>, %46, %cst_20 [2] : vector<2x8x8xf32> to vector<2x8xf32>
    %48 = vector.shape_cast %47 : vector<2x8xf32> to vector<2x8x1xf32>
    %49 = vector.broadcast %48 : vector<2x8x1xf32> to vector<2x8x8xf32>
    %50 = arith.subf %46, %49 : vector<2x8x8xf32>
    %51 = math.exp %50 : vector<2x8x8xf32>
    %cst_21 = arith.constant dense<0.000000e+00> : vector<2x8xf32>
    %52 = vector.multi_reduction <add>, %51, %cst_21 [2] : vector<2x8x8xf32> to vector<2x8xf32>
    %53 = vector.shape_cast %52 : vector<2x8xf32> to vector<2x8x1xf32>
    %54 = vector.broadcast %53 : vector<2x8x1xf32> to vector<2x8x8xf32>
    %55 = arith.divf %51, %54 : vector<2x8x8xf32>
    %56 = arith.truncf %55 : vector<2x8x8xf32> to vector<2x8x8xbf16>
    "tpu.trace_start"() <{level = 10 : i32, message = "bqk,bkd->bqd"}> : () -> ()
    %cst_22 = arith.constant dense<0.000000e+00> : vector<2x8x32xf32>
    %57 = tpu.matmul %56, %44, %cst_22 {dimension_numbers = #tpu.dot_dimension_numbers<[2], [1], [1], [2], [0, 0, 0, 1, 1, 2], [0], [0]>} : vector<2x8x8xbf16>, vector<2x8x32xbf16>, vector<2x8x32xf32> -> vector<2x8x32xf32>
    "tpu.trace_stop"() : () -> ()
    %58 = vector.shape_cast %57 : vector<2x8x32xf32> to vector<16x32xf32>
    %59 = vector.extract_strided_slice %35 {offsets = [0, 32], sizes = [16, 32], strides = [1, 1]} : vector<16x384xf32> to vector<16x32xf32>
    %60 = vector.shape_cast %59 : vector<16x32xf32> to vector<2x8x32xf32>
    %61 = arith.truncf %60 : vector<2x8x32xf32> to vector<2x8x32xbf16>
    %62 = vector.extract_strided_slice %35 {offsets = [0, 160], sizes = [16, 32], strides = [1, 1]} : vector<16x384xf32> to vector<16x32xf32>
    %63 = vector.shape_cast %62 : vector<16x32xf32> to vector<2x8x32xf32>
    %64 = arith.truncf %63 : vector<2x8x32xf32> to vector<2x8x32xbf16>
    %65 = vector.extract_strided_slice %35 {offsets = [0, 288], sizes = [16, 32], strides = [1, 1]} : vector<16x384xf32> to vector<16x32xf32>
    %66 = vector.shape_cast %65 : vector<16x32xf32> to vector<2x8x32xf32>
    %67 = arith.truncf %66 : vector<2x8x32xf32> to vector<2x8x32xbf16>
    "tpu.trace_start"() <{level = 10 : i32, message = "bqd,bkd->bqk"}> : () -> ()
    %cst_23 = arith.constant dense<0.000000e+00> : vector<2x8x8xf32>
    %68 = tpu.matmul %61, %64, %cst_23 {dimension_numbers = #tpu.dot_dimension_numbers<[2], [2], [1], [1], [0, 0, 0, 1, 1, 1], [0], [0]>} : vector<2x8x32xbf16>, vector<2x8x32xbf16>, vector<2x8x8xf32> -> vector<2x8x8xf32>
    "tpu.trace_stop"() : () -> ()
    %69 = arith.addf %68, %27 : vector<2x8x8xf32>
    %cst_24 = arith.constant dense<0xFF800000> : vector<2x8xf32>
    %70 = vector.multi_reduction <maximumf>, %69, %cst_24 [2] : vector<2x8x8xf32> to vector<2x8xf32>
    %71 = vector.shape_cast %70 : vector<2x8xf32> to vector<2x8x1xf32>
    %72 = vector.broadcast %71 : vector<2x8x1xf32> to vector<2x8x8xf32>
    %73 = arith.subf %69, %72 : vector<2x8x8xf32>
    %74 = math.exp %73 : vector<2x8x8xf32>
    %cst_25 = arith.constant dense<0.000000e+00> : vector<2x8xf32>
    %75 = vector.multi_reduction <add>, %74, %cst_25 [2] : vector<2x8x8xf32> to vector<2x8xf32>
    %76 = vector.shape_cast %75 : vector<2x8xf32> to vector<2x8x1xf32>
    %77 = vector.broadcast %76 : vector<2x8x1xf32> to vector<2x8x8xf32>
    %78 = arith.divf %74, %77 : vector<2x8x8xf32>
    %79 = arith.truncf %78 : vector<2x8x8xf32> to vector<2x8x8xbf16>
    "tpu.trace_start"() <{level = 10 : i32, message = "bqk,bkd->bqd"}> : () -> ()
    %cst_26 = arith.constant dense<0.000000e+00> : vector<2x8x32xf32>
    %80 = tpu.matmul %79, %67, %cst_26 {dimension_numbers = #tpu.dot_dimension_numbers<[2], [1], [1], [2], [0, 0, 0, 1, 1, 2], [0], [0]>} : vector<2x8x8xbf16>, vector<2x8x32xbf16>, vector<2x8x32xf32> -> vector<2x8x32xf32>
    "tpu.trace_stop"() : () -> ()
    %81 = vector.shape_cast %80 : vector<2x8x32xf32> to vector<16x32xf32>
    %82 = vector.extract_strided_slice %35 {offsets = [0, 64], sizes = [16, 32], strides = [1, 1]} : vector<16x384xf32> to vector<16x32xf32>
    %83 = vector.shape_cast %82 : vector<16x32xf32> to vector<2x8x32xf32>
    %84 = arith.truncf %83 : vector<2x8x32xf32> to vector<2x8x32xbf16>
    %85 = vector.extract_strided_slice %35 {offsets = [0, 192], sizes = [16, 32], strides = [1, 1]} : vector<16x384xf32> to vector<16x32xf32>
    %86 = vector.shape_cast %85 : vector<16x32xf32> to vector<2x8x32xf32>
    %87 = arith.truncf %86 : vector<2x8x32xf32> to vector<2x8x32xbf16>
    %88 = vector.extract_strided_slice %35 {offsets = [0, 320], sizes = [16, 32], strides = [1, 1]} : vector<16x384xf32> to vector<16x32xf32>
    %89 = vector.shape_cast %88 : vector<16x32xf32> to vector<2x8x32xf32>
    %90 = arith.truncf %89 : vector<2x8x32xf32> to vector<2x8x32xbf16>
    "tpu.trace_start"() <{level = 10 : i32, message = "bqd,bkd->bqk"}> : () -> ()
    %cst_27 = arith.constant dense<0.000000e+00> : vector<2x8x8xf32>
    %91 = tpu.matmul %84, %87, %cst_27 {dimension_numbers = #tpu.dot_dimension_numbers<[2], [2], [1], [1], [0, 0, 0, 1, 1, 1], [0], [0]>} : vector<2x8x32xbf16>, vector<2x8x32xbf16>, vector<2x8x8xf32> -> vector<2x8x8xf32>
    "tpu.trace_stop"() : () -> ()
    %92 = arith.addf %91, %27 : vector<2x8x8xf32>
    %cst_28 = arith.constant dense<0xFF800000> : vector<2x8xf32>
    %93 = vector.multi_reduction <maximumf>, %92, %cst_28 [2] : vector<2x8x8xf32> to vector<2x8xf32>
    %94 = vector.shape_cast %93 : vector<2x8xf32> to vector<2x8x1xf32>
    %95 = vector.broadcast %94 : vector<2x8x1xf32> to vector<2x8x8xf32>
    %96 = arith.subf %92, %95 : vector<2x8x8xf32>
    %97 = math.exp %96 : vector<2x8x8xf32>
    %cst_29 = arith.constant dense<0.000000e+00> : vector<2x8xf32>
    %98 = vector.multi_reduction <add>, %97, %cst_29 [2] : vector<2x8x8xf32> to vector<2x8xf32>
    %99 = vector.shape_cast %98 : vector<2x8xf32> to vector<2x8x1xf32>
    %100 = vector.broadcast %99 : vector<2x8x1xf32> to vector<2x8x8xf32>
    %101 = arith.divf %97, %100 : vector<2x8x8xf32>
    %102 = arith.truncf %101 : vector<2x8x8xf32> to vector<2x8x8xbf16>
    "tpu.trace_start"() <{level = 10 : i32, message = "bqk,bkd->bqd"}> : () -> ()
    %cst_30 = arith.constant dense<0.000000e+00> : vector<2x8x32xf32>
    %103 = tpu.matmul %102, %90, %cst_30 {dimension_numbers = #tpu.dot_dimension_numbers<[2], [1], [1], [2], [0, 0, 0, 1, 1, 2], [0], [0]>} : vector<2x8x8xbf16>, vector<2x8x32xbf16>, vector<2x8x32xf32> -> vector<2x8x32xf32>
    "tpu.trace_stop"() : () -> ()
    %104 = vector.shape_cast %103 : vector<2x8x32xf32> to vector<16x32xf32>
    %105 = vector.extract_strided_slice %35 {offsets = [0, 96], sizes = [16, 32], strides = [1, 1]} : vector<16x384xf32> to vector<16x32xf32>
    %106 = vector.shape_cast %105 : vector<16x32xf32> to vector<2x8x32xf32>
    %107 = arith.truncf %106 : vector<2x8x32xf32> to vector<2x8x32xbf16>
    %108 = vector.extract_strided_slice %35 {offsets = [0, 224], sizes = [16, 32], strides = [1, 1]} : vector<16x384xf32> to vector<16x32xf32>
    %109 = vector.shape_cast %108 : vector<16x32xf32> to vector<2x8x32xf32>
    %110 = arith.truncf %109 : vector<2x8x32xf32> to vector<2x8x32xbf16>
    %111 = vector.extract_strided_slice %35 {offsets = [0, 352], sizes = [16, 32], strides = [1, 1]} : vector<16x384xf32> to vector<16x32xf32>
    %112 = vector.shape_cast %111 : vector<16x32xf32> to vector<2x8x32xf32>
    %113 = arith.truncf %112 : vector<2x8x32xf32> to vector<2x8x32xbf16>
    "tpu.trace_start"() <{level = 10 : i32, message = "bqd,bkd->bqk"}> : () -> ()
    %cst_31 = arith.constant dense<0.000000e+00> : vector<2x8x8xf32>
    %114 = tpu.matmul %107, %110, %cst_31 {dimension_numbers = #tpu.dot_dimension_numbers<[2], [2], [1], [1], [0, 0, 0, 1, 1, 1], [0], [0]>} : vector<2x8x32xbf16>, vector<2x8x32xbf16>, vector<2x8x8xf32> -> vector<2x8x8xf32>
    "tpu.trace_stop"() : () -> ()
    %115 = arith.addf %114, %27 : vector<2x8x8xf32>
    %cst_32 = arith.constant dense<0xFF800000> : vector<2x8xf32>
    %116 = vector.multi_reduction <maximumf>, %115, %cst_32 [2] : vector<2x8x8xf32> to vector<2x8xf32>
    %117 = vector.shape_cast %116 : vector<2x8xf32> to vector<2x8x1xf32>
    %118 = vector.broadcast %117 : vector<2x8x1xf32> to vector<2x8x8xf32>
    %119 = arith.subf %115, %118 : vector<2x8x8xf32>
    %120 = math.exp %119 : vector<2x8x8xf32>
    %cst_33 = arith.constant dense<0.000000e+00> : vector<2x8xf32>
    %121 = vector.multi_reduction <add>, %120, %cst_33 [2] : vector<2x8x8xf32> to vector<2x8xf32>
    %122 = vector.shape_cast %121 : vector<2x8xf32> to vector<2x8x1xf32>
    %123 = vector.broadcast %122 : vector<2x8x1xf32> to vector<2x8x8xf32>
    %124 = arith.divf %120, %123 : vector<2x8x8xf32>
    %125 = arith.truncf %124 : vector<2x8x8xf32> to vector<2x8x8xbf16>
    "tpu.trace_start"() <{level = 10 : i32, message = "bqk,bkd->bqd"}> : () -> ()
    %cst_34 = arith.constant dense<0.000000e+00> : vector<2x8x32xf32>
    %126 = tpu.matmul %125, %113, %cst_34 {dimension_numbers = #tpu.dot_dimension_numbers<[2], [1], [1], [2], [0, 0, 0, 1, 1, 2], [0], [0]>} : vector<2x8x8xbf16>, vector<2x8x32xbf16>, vector<2x8x32xf32> -> vector<2x8x32xf32>
    "tpu.trace_stop"() : () -> ()
    %127 = vector.shape_cast %126 : vector<2x8x32xf32> to vector<16x32xf32>
    %128 = tpu.concatenate %58, %81, %104, %127 in 1 : vector<16x32xf32>, vector<16x32xf32>, vector<16x32xf32>, vector<16x32xf32> -> vector<16x128xf32>
    %129 = arith.truncf %128 : vector<16x128xf32> to vector<16x128xbf16>
    %c0_35 = arith.constant 0 : index
    %c0_36 = arith.constant 0 : index
    %c0_37 = arith.constant 0 : index
    %130 = vector.load %arg7[%c0_35, %c0_36, %c0_37] : memref<2x128x128xbf16, #tpu.memory_space<vmem>>, vector<1x128x128xbf16>
    %131 = vector.shape_cast %130 : vector<1x128x128xbf16> to vector<128x128xbf16>
    %cst_38 = arith.constant dense<0.000000e+00> : vector<16x128xf32>
    %132 = tpu.matmul %129, %131, %cst_38 {dimension_numbers = #tpu.dot_dimension_numbers<[1], [0], [0], [1], [0, 0, 1, 1], [], []>} : vector<16x128xbf16>, vector<128x128xbf16>, vector<16x128xf32> -> vector<16x128xf32>
    %c0_39 = arith.constant 0 : index
    %c0_40 = arith.constant 0 : index
    %c0_41 = arith.constant 0 : index
    %133 = vector.load %arg8[%c0_39, %c0_40, %c0_41] : memref<2x1x128xf32, #tpu.memory_space<vmem>>, vector<1x1x128xf32>
    %134 = vector.shape_cast %133 : vector<1x1x128xf32> to vector<1x128xf32>
    %135 = vector.broadcast %134 : vector<1x128xf32> to vector<16x128xf32>
    %136 = arith.addf %132, %135 : vector<16x128xf32>
    %137 = arith.addf %136, %24 : vector<16x128xf32>
    %c0_42 = arith.constant 0 : index
    %c0_43 = arith.constant 0 : index
    %c0_44 = arith.constant 0 : index
    %138 = vector.load %arg9[%c0_42, %c0_43, %c0_44] : memref<2x1x128xf32, #tpu.memory_space<vmem>>, vector<1x1x128xf32>
    %139 = vector.shape_cast %138 : vector<1x1x128xf32> to vector<1x128xf32>
    %c0_45 = arith.constant 0 : index
    %c0_46 = arith.constant 0 : index
    %c0_47 = arith.constant 0 : index
    %140 = vector.load %arg10[%c0_45, %c0_46, %c0_47] : memref<2x1x128xf32, #tpu.memory_space<vmem>>, vector<1x1x128xf32>
    %141 = vector.shape_cast %140 : vector<1x1x128xf32> to vector<1x128xf32>
    %cst_48 = arith.constant dense<0.000000e+00> : vector<16xf32>
    %142 = vector.multi_reduction <add>, %137, %cst_48 [1] : vector<16x128xf32> to vector<16xf32>
    %143 = vector.shape_cast %142 : vector<16xf32> to vector<16x1xf32>
    %cst_49 = arith.constant 1.280000e+02 : f32
    %144 = vector.broadcast %cst_49 : f32 to vector<16x1xf32>
    %145 = arith.divf %143, %144 : vector<16x1xf32>
    %146 = vector.broadcast %145 : vector<16x1xf32> to vector<16x128xf32>
    %147 = arith.subf %137, %146 : vector<16x128xf32>
    %148 = arith.mulf %147, %147 : vector<16x128xf32>
    %cst_50 = arith.constant dense<0.000000e+00> : vector<16xf32>
    %149 = vector.multi_reduction <add>, %148, %cst_50 [1] : vector<16x128xf32> to vector<16xf32>
    %150 = vector.shape_cast %149 : vector<16xf32> to vector<16x1xf32>
    %cst_51 = arith.constant 1.280000e+02 : f32
    %151 = vector.broadcast %cst_51 : f32 to vector<16x1xf32>
    %152 = arith.divf %150, %151 : vector<16x1xf32>
    %153 = vector.broadcast %145 : vector<16x1xf32> to vector<16x128xf32>
    %154 = arith.subf %137, %153 : vector<16x128xf32>
    %cst_52 = arith.constant 9.99999996E-13 : f32
    %155 = vector.broadcast %cst_52 : f32 to vector<16x1xf32>
    %156 = arith.addf %152, %155 : vector<16x1xf32>
    %157 = math.rsqrt %156 : vector<16x1xf32>
    %158 = vector.broadcast %157 : vector<16x1xf32> to vector<16x128xf32>
    %159 = arith.mulf %154, %158 : vector<16x128xf32>
    %160 = vector.broadcast %139 : vector<1x128xf32> to vector<16x128xf32>
    %161 = arith.mulf %159, %160 : vector<16x128xf32>
    %162 = vector.broadcast %141 : vector<1x128xf32> to vector<16x128xf32>
    %163 = arith.addf %161, %162 : vector<16x128xf32>
    %164 = arith.truncf %163 : vector<16x128xf32> to vector<16x128xbf16>
    %c0_53 = arith.constant 0 : index
    %c0_54 = arith.constant 0 : index
    %c0_55 = arith.constant 0 : index
    %165 = vector.load %arg11[%c0_53, %c0_54, %c0_55] : memref<2x128x256xbf16, #tpu.memory_space<vmem>>, vector<1x128x256xbf16>
    %166 = vector.shape_cast %165 : vector<1x128x256xbf16> to vector<128x256xbf16>
    %cst_56 = arith.constant dense<0.000000e+00> : vector<16x256xf32>
    %167 = tpu.matmul %164, %166, %cst_56 {dimension_numbers = #tpu.dot_dimension_numbers<[1], [0], [0], [1], [0, 0, 1, 1], [], []>} : vector<16x128xbf16>, vector<128x256xbf16>, vector<16x256xf32> -> vector<16x256xf32>
    %c0_57 = arith.constant 0 : index
    %c0_58 = arith.constant 0 : index
    %c0_59 = arith.constant 0 : index
    %168 = vector.load %arg12[%c0_57, %c0_58, %c0_59] : memref<2x1x256xf32, #tpu.memory_space<vmem>>, vector<1x1x256xf32>
    %169 = vector.shape_cast %168 : vector<1x1x256xf32> to vector<1x256xf32>
    %170 = vector.broadcast %169 : vector<1x256xf32> to vector<16x256xf32>
    %171 = arith.addf %167, %170 : vector<16x256xf32>
    %cst_60 = arith.constant 5.000000e-01 : f32
    %172 = vector.broadcast %cst_60 : f32 to vector<16x256xf32>
    %173 = arith.mulf %172, %171 : vector<16x256xf32>
    %cst_61 = arith.constant 4.471500e-02 : f32
    %174 = vector.broadcast %cst_61 : f32 to vector<16x256xf32>
    %175 = arith.mulf %174, %171 : vector<16x256xf32>
    %176 = arith.mulf %175, %171 : vector<16x256xf32>
    %177 = arith.mulf %176, %171 : vector<16x256xf32>
    %178 = arith.addf %171, %177 : vector<16x256xf32>
    %cst_62 = arith.constant 0.797884583 : f32
    %179 = vector.broadcast %cst_62 : f32 to vector<16x256xf32>
    %180 = arith.mulf %179, %178 : vector<16x256xf32>
    %181 = math.tanh %180 : vector<16x256xf32>
    %cst_63 = arith.constant 1.000000e+00 : f32
    %182 = vector.broadcast %cst_63 : f32 to vector<16x256xf32>
    %183 = arith.addf %182, %181 : vector<16x256xf32>
    %184 = arith.mulf %173, %183 : vector<16x256xf32>
    %185 = arith.truncf %184 : vector<16x256xf32> to vector<16x256xbf16>
    %c0_64 = arith.constant 0 : index
    %c0_65 = arith.constant 0 : index
    %c0_66 = arith.constant 0 : index
    %186 = vector.load %arg13[%c0_64, %c0_65, %c0_66] : memref<2x256x128xbf16, #tpu.memory_space<vmem>>, vector<1x256x128xbf16>
    %187 = vector.shape_cast %186 : vector<1x256x128xbf16> to vector<256x128xbf16>
    %cst_67 = arith.constant dense<0.000000e+00> : vector<16x128xf32>
    %188 = tpu.matmul %185, %187, %cst_67 {dimension_numbers = #tpu.dot_dimension_numbers<[1], [0], [0], [1], [0, 0, 1, 1], [], []>} : vector<16x256xbf16>, vector<256x128xbf16>, vector<16x128xf32> -> vector<16x128xf32>
    %c0_68 = arith.constant 0 : index
    %c0_69 = arith.constant 0 : index
    %c0_70 = arith.constant 0 : index
    %189 = vector.load %arg14[%c0_68, %c0_69, %c0_70] : memref<2x1x128xf32, #tpu.memory_space<vmem>>, vector<1x1x128xf32>
    %190 = vector.shape_cast %189 : vector<1x1x128xf32> to vector<1x128xf32>
    %191 = vector.broadcast %190 : vector<1x128xf32> to vector<16x128xf32>
    %192 = arith.addf %188, %191 : vector<16x128xf32>
    %193 = arith.addf %192, %163 : vector<16x128xf32>
    %c0_71 = arith.constant 0 : index
    %c0_72 = arith.constant 0 : index
    %c0_73 = arith.constant 0 : index
    %194 = vector.load %arg15[%c0_71, %c0_72, %c0_73] : memref<2x1x128xf32, #tpu.memory_space<vmem>>, vector<1x1x128xf32>
    %195 = vector.shape_cast %194 : vector<1x1x128xf32> to vector<1x128xf32>
    %c0_74 = arith.constant 0 : index
    %c0_75 = arith.constant 0 : index
    %c0_76 = arith.constant 0 : index
    %196 = vector.load %arg16[%c0_74, %c0_75, %c0_76] : memref<2x1x128xf32, #tpu.memory_space<vmem>>, vector<1x1x128xf32>
    %197 = vector.shape_cast %196 : vector<1x1x128xf32> to vector<1x128xf32>
    %cst_77 = arith.constant dense<0.000000e+00> : vector<16xf32>
    %198 = vector.multi_reduction <add>, %193, %cst_77 [1] : vector<16x128xf32> to vector<16xf32>
    %199 = vector.shape_cast %198 : vector<16xf32> to vector<16x1xf32>
    %cst_78 = arith.constant 1.280000e+02 : f32
    %200 = vector.broadcast %cst_78 : f32 to vector<16x1xf32>
    %201 = arith.divf %199, %200 : vector<16x1xf32>
    %202 = vector.broadcast %201 : vector<16x1xf32> to vector<16x128xf32>
    %203 = arith.subf %193, %202 : vector<16x128xf32>
    %204 = arith.mulf %203, %203 : vector<16x128xf32>
    %cst_79 = arith.constant dense<0.000000e+00> : vector<16xf32>
    %205 = vector.multi_reduction <add>, %204, %cst_79 [1] : vector<16x128xf32> to vector<16xf32>
    %206 = vector.shape_cast %205 : vector<16xf32> to vector<16x1xf32>
    %cst_80 = arith.constant 1.280000e+02 : f32
    %207 = vector.broadcast %cst_80 : f32 to vector<16x1xf32>
    %208 = arith.divf %206, %207 : vector<16x1xf32>
    %209 = vector.broadcast %201 : vector<16x1xf32> to vector<16x128xf32>
    %210 = arith.subf %193, %209 : vector<16x128xf32>
    %cst_81 = arith.constant 9.99999996E-13 : f32
    %211 = vector.broadcast %cst_81 : f32 to vector<16x1xf32>
    %212 = arith.addf %208, %211 : vector<16x1xf32>
    %213 = math.rsqrt %212 : vector<16x1xf32>
    %214 = vector.broadcast %213 : vector<16x1xf32> to vector<16x128xf32>
    %215 = arith.mulf %210, %214 : vector<16x128xf32>
    %216 = vector.broadcast %195 : vector<1x128xf32> to vector<16x128xf32>
    %217 = arith.mulf %215, %216 : vector<16x128xf32>
    %218 = vector.broadcast %197 : vector<1x128xf32> to vector<16x128xf32>
    %219 = arith.addf %217, %218 : vector<16x128xf32>
    %220 = arith.truncf %219 : vector<16x128xf32> to vector<16x128xbf16>
    %c1 = arith.constant 1 : index
    %c0_82 = arith.constant 0 : index
    %c0_83 = arith.constant 0 : index
    %221 = vector.load %arg5[%c1, %c0_82, %c0_83] : memref<2x128x384xbf16, #tpu.memory_space<vmem>>, vector<1x128x384xbf16>
    %222 = vector.shape_cast %221 : vector<1x128x384xbf16> to vector<128x384xbf16>
    %cst_84 = arith.constant dense<0.000000e+00> : vector<16x384xf32>
    %223 = tpu.matmul %220, %222, %cst_84 {dimension_numbers = #tpu.dot_dimension_numbers<[1], [0], [0], [1], [0, 0, 1, 1], [], []>} : vector<16x128xbf16>, vector<128x384xbf16>, vector<16x384xf32> -> vector<16x384xf32>
    %c1_85 = arith.constant 1 : index
    %c0_86 = arith.constant 0 : index
    %c0_87 = arith.constant 0 : index
    %224 = vector.load %arg6[%c1_85, %c0_86, %c0_87] : memref<2x1x384xf32, #tpu.memory_space<vmem>>, vector<1x1x384xf32>
    %225 = vector.shape_cast %224 : vector<1x1x384xf32> to vector<1x384xf32>
    %226 = vector.broadcast %225 : vector<1x384xf32> to vector<16x384xf32>
    %227 = arith.addf %223, %226 : vector<16x384xf32>
    %228 = vector.extract_strided_slice %227 {offsets = [0, 0], sizes = [16, 32], strides = [1, 1]} : vector<16x384xf32> to vector<16x32xf32>
    %229 = vector.shape_cast %228 : vector<16x32xf32> to vector<2x8x32xf32>
    %230 = arith.truncf %229 : vector<2x8x32xf32> to vector<2x8x32xbf16>
    %231 = vector.extract_strided_slice %227 {offsets = [0, 128], sizes = [16, 32], strides = [1, 1]} : vector<16x384xf32> to vector<16x32xf32>
    %232 = vector.shape_cast %231 : vector<16x32xf32> to vector<2x8x32xf32>
    %233 = arith.truncf %232 : vector<2x8x32xf32> to vector<2x8x32xbf16>
    %234 = vector.extract_strided_slice %227 {offsets = [0, 256], sizes = [16, 32], strides = [1, 1]} : vector<16x384xf32> to vector<16x32xf32>
    %235 = vector.shape_cast %234 : vector<16x32xf32> to vector<2x8x32xf32>
    %236 = arith.truncf %235 : vector<2x8x32xf32> to vector<2x8x32xbf16>
    "tpu.trace_start"() <{level = 10 : i32, message = "bqd,bkd->bqk"}> : () -> ()
    %cst_88 = arith.constant dense<0.000000e+00> : vector<2x8x8xf32>
    %237 = tpu.matmul %230, %233, %cst_88 {dimension_numbers = #tpu.dot_dimension_numbers<[2], [2], [1], [1], [0, 0, 0, 1, 1, 1], [0], [0]>} : vector<2x8x32xbf16>, vector<2x8x32xbf16>, vector<2x8x8xf32> -> vector<2x8x8xf32>
    "tpu.trace_stop"() : () -> ()
    %238 = arith.addf %237, %27 : vector<2x8x8xf32>
    %cst_89 = arith.constant dense<0xFF800000> : vector<2x8xf32>
    %239 = vector.multi_reduction <maximumf>, %238, %cst_89 [2] : vector<2x8x8xf32> to vector<2x8xf32>
    %240 = vector.shape_cast %239 : vector<2x8xf32> to vector<2x8x1xf32>
    %241 = vector.broadcast %240 : vector<2x8x1xf32> to vector<2x8x8xf32>
    %242 = arith.subf %238, %241 : vector<2x8x8xf32>
    %243 = math.exp %242 : vector<2x8x8xf32>
    %cst_90 = arith.constant dense<0.000000e+00> : vector<2x8xf32>
    %244 = vector.multi_reduction <add>, %243, %cst_90 [2] : vector<2x8x8xf32> to vector<2x8xf32>
    %245 = vector.shape_cast %244 : vector<2x8xf32> to vector<2x8x1xf32>
    %246 = vector.broadcast %245 : vector<2x8x1xf32> to vector<2x8x8xf32>
    %247 = arith.divf %243, %246 : vector<2x8x8xf32>
    %248 = arith.truncf %247 : vector<2x8x8xf32> to vector<2x8x8xbf16>
    "tpu.trace_start"() <{level = 10 : i32, message = "bqk,bkd->bqd"}> : () -> ()
    %cst_91 = arith.constant dense<0.000000e+00> : vector<2x8x32xf32>
    %249 = tpu.matmul %248, %236, %cst_91 {dimension_numbers = #tpu.dot_dimension_numbers<[2], [1], [1], [2], [0, 0, 0, 1, 1, 2], [0], [0]>} : vector<2x8x8xbf16>, vector<2x8x32xbf16>, vector<2x8x32xf32> -> vector<2x8x32xf32>
    "tpu.trace_stop"() : () -> ()
    %250 = vector.shape_cast %249 : vector<2x8x32xf32> to vector<16x32xf32>
    %251 = vector.extract_strided_slice %227 {offsets = [0, 32], sizes = [16, 32], strides = [1, 1]} : vector<16x384xf32> to vector<16x32xf32>
    %252 = vector.shape_cast %251 : vector<16x32xf32> to vector<2x8x32xf32>
    %253 = arith.truncf %252 : vector<2x8x32xf32> to vector<2x8x32xbf16>
    %254 = vector.extract_strided_slice %227 {offsets = [0, 160], sizes = [16, 32], strides = [1, 1]} : vector<16x384xf32> to vector<16x32xf32>
    %255 = vector.shape_cast %254 : vector<16x32xf32> to vector<2x8x32xf32>
    %256 = arith.truncf %255 : vector<2x8x32xf32> to vector<2x8x32xbf16>
    %257 = vector.extract_strided_slice %227 {offsets = [0, 288], sizes = [16, 32], strides = [1, 1]} : vector<16x384xf32> to vector<16x32xf32>
    %258 = vector.shape_cast %257 : vector<16x32xf32> to vector<2x8x32xf32>
    %259 = arith.truncf %258 : vector<2x8x32xf32> to vector<2x8x32xbf16>
    "tpu.trace_start"() <{level = 10 : i32, message = "bqd,bkd->bqk"}> : () -> ()
    %cst_92 = arith.constant dense<0.000000e+00> : vector<2x8x8xf32>
    %260 = tpu.matmul %253, %256, %cst_92 {dimension_numbers = #tpu.dot_dimension_numbers<[2], [2], [1], [1], [0, 0, 0, 1, 1, 1], [0], [0]>} : vector<2x8x32xbf16>, vector<2x8x32xbf16>, vector<2x8x8xf32> -> vector<2x8x8xf32>
    "tpu.trace_stop"() : () -> ()
    %261 = arith.addf %260, %27 : vector<2x8x8xf32>
    %cst_93 = arith.constant dense<0xFF800000> : vector<2x8xf32>
    %262 = vector.multi_reduction <maximumf>, %261, %cst_93 [2] : vector<2x8x8xf32> to vector<2x8xf32>
    %263 = vector.shape_cast %262 : vector<2x8xf32> to vector<2x8x1xf32>
    %264 = vector.broadcast %263 : vector<2x8x1xf32> to vector<2x8x8xf32>
    %265 = arith.subf %261, %264 : vector<2x8x8xf32>
    %266 = math.exp %265 : vector<2x8x8xf32>
    %cst_94 = arith.constant dense<0.000000e+00> : vector<2x8xf32>
    %267 = vector.multi_reduction <add>, %266, %cst_94 [2] : vector<2x8x8xf32> to vector<2x8xf32>
    %268 = vector.shape_cast %267 : vector<2x8xf32> to vector<2x8x1xf32>
    %269 = vector.broadcast %268 : vector<2x8x1xf32> to vector<2x8x8xf32>
    %270 = arith.divf %266, %269 : vector<2x8x8xf32>
    %271 = arith.truncf %270 : vector<2x8x8xf32> to vector<2x8x8xbf16>
    "tpu.trace_start"() <{level = 10 : i32, message = "bqk,bkd->bqd"}> : () -> ()
    %cst_95 = arith.constant dense<0.000000e+00> : vector<2x8x32xf32>
    %272 = tpu.matmul %271, %259, %cst_95 {dimension_numbers = #tpu.dot_dimension_numbers<[2], [1], [1], [2], [0, 0, 0, 1, 1, 2], [0], [0]>} : vector<2x8x8xbf16>, vector<2x8x32xbf16>, vector<2x8x32xf32> -> vector<2x8x32xf32>
    "tpu.trace_stop"() : () -> ()
    %273 = vector.shape_cast %272 : vector<2x8x32xf32> to vector<16x32xf32>
    %274 = vector.extract_strided_slice %227 {offsets = [0, 64], sizes = [16, 32], strides = [1, 1]} : vector<16x384xf32> to vector<16x32xf32>
    %275 = vector.shape_cast %274 : vector<16x32xf32> to vector<2x8x32xf32>
    %276 = arith.truncf %275 : vector<2x8x32xf32> to vector<2x8x32xbf16>
    %277 = vector.extract_strided_slice %227 {offsets = [0, 192], sizes = [16, 32], strides = [1, 1]} : vector<16x384xf32> to vector<16x32xf32>
    %278 = vector.shape_cast %277 : vector<16x32xf32> to vector<2x8x32xf32>
    %279 = arith.truncf %278 : vector<2x8x32xf32> to vector<2x8x32xbf16>
    %280 = vector.extract_strided_slice %227 {offsets = [0, 320], sizes = [16, 32], strides = [1, 1]} : vector<16x384xf32> to vector<16x32xf32>
    %281 = vector.shape_cast %280 : vector<16x32xf32> to vector<2x8x32xf32>
    %282 = arith.truncf %281 : vector<2x8x32xf32> to vector<2x8x32xbf16>
    "tpu.trace_start"() <{level = 10 : i32, message = "bqd,bkd->bqk"}> : () -> ()
    %cst_96 = arith.constant dense<0.000000e+00> : vector<2x8x8xf32>
    %283 = tpu.matmul %276, %279, %cst_96 {dimension_numbers = #tpu.dot_dimension_numbers<[2], [2], [1], [1], [0, 0, 0, 1, 1, 1], [0], [0]>} : vector<2x8x32xbf16>, vector<2x8x32xbf16>, vector<2x8x8xf32> -> vector<2x8x8xf32>
    "tpu.trace_stop"() : () -> ()
    %284 = arith.addf %283, %27 : vector<2x8x8xf32>
    %cst_97 = arith.constant dense<0xFF800000> : vector<2x8xf32>
    %285 = vector.multi_reduction <maximumf>, %284, %cst_97 [2] : vector<2x8x8xf32> to vector<2x8xf32>
    %286 = vector.shape_cast %285 : vector<2x8xf32> to vector<2x8x1xf32>
    %287 = vector.broadcast %286 : vector<2x8x1xf32> to vector<2x8x8xf32>
    %288 = arith.subf %284, %287 : vector<2x8x8xf32>
    %289 = math.exp %288 : vector<2x8x8xf32>
    %cst_98 = arith.constant dense<0.000000e+00> : vector<2x8xf32>
    %290 = vector.multi_reduction <add>, %289, %cst_98 [2] : vector<2x8x8xf32> to vector<2x8xf32>
    %291 = vector.shape_cast %290 : vector<2x8xf32> to vector<2x8x1xf32>
    %292 = vector.broadcast %291 : vector<2x8x1xf32> to vector<2x8x8xf32>
    %293 = arith.divf %289, %292 : vector<2x8x8xf32>
    %294 = arith.truncf %293 : vector<2x8x8xf32> to vector<2x8x8xbf16>
    "tpu.trace_start"() <{level = 10 : i32, message = "bqk,bkd->bqd"}> : () -> ()
    %cst_99 = arith.constant dense<0.000000e+00> : vector<2x8x32xf32>
    %295 = tpu.matmul %294, %282, %cst_99 {dimension_numbers = #tpu.dot_dimension_numbers<[2], [1], [1], [2], [0, 0, 0, 1, 1, 2], [0], [0]>} : vector<2x8x8xbf16>, vector<2x8x32xbf16>, vector<2x8x32xf32> -> vector<2x8x32xf32>
    "tpu.trace_stop"() : () -> ()
    %296 = vector.shape_cast %295 : vector<2x8x32xf32> to vector<16x32xf32>
    %297 = vector.extract_strided_slice %227 {offsets = [0, 96], sizes = [16, 32], strides = [1, 1]} : vector<16x384xf32> to vector<16x32xf32>
    %298 = vector.shape_cast %297 : vector<16x32xf32> to vector<2x8x32xf32>
    %299 = arith.truncf %298 : vector<2x8x32xf32> to vector<2x8x32xbf16>
    %300 = vector.extract_strided_slice %227 {offsets = [0, 224], sizes = [16, 32], strides = [1, 1]} : vector<16x384xf32> to vector<16x32xf32>
    %301 = vector.shape_cast %300 : vector<16x32xf32> to vector<2x8x32xf32>
    %302 = arith.truncf %301 : vector<2x8x32xf32> to vector<2x8x32xbf16>
    %303 = vector.extract_strided_slice %227 {offsets = [0, 352], sizes = [16, 32], strides = [1, 1]} : vector<16x384xf32> to vector<16x32xf32>
    %304 = vector.shape_cast %303 : vector<16x32xf32> to vector<2x8x32xf32>
    %305 = arith.truncf %304 : vector<2x8x32xf32> to vector<2x8x32xbf16>
    "tpu.trace_start"() <{level = 10 : i32, message = "bqd,bkd->bqk"}> : () -> ()
    %cst_100 = arith.constant dense<0.000000e+00> : vector<2x8x8xf32>
    %306 = tpu.matmul %299, %302, %cst_100 {dimension_numbers = #tpu.dot_dimension_numbers<[2], [2], [1], [1], [0, 0, 0, 1, 1, 1], [0], [0]>} : vector<2x8x32xbf16>, vector<2x8x32xbf16>, vector<2x8x8xf32> -> vector<2x8x8xf32>
    "tpu.trace_stop"() : () -> ()
    %307 = arith.addf %306, %27 : vector<2x8x8xf32>
    %cst_101 = arith.constant dense<0xFF800000> : vector<2x8xf32>
    %308 = vector.multi_reduction <maximumf>, %307, %cst_101 [2] : vector<2x8x8xf32> to vector<2x8xf32>
    %309 = vector.shape_cast %308 : vector<2x8xf32> to vector<2x8x1xf32>
    %310 = vector.broadcast %309 : vector<2x8x1xf32> to vector<2x8x8xf32>
    %311 = arith.subf %307, %310 : vector<2x8x8xf32>
    %312 = math.exp %311 : vector<2x8x8xf32>
    %cst_102 = arith.constant dense<0.000000e+00> : vector<2x8xf32>
    %313 = vector.multi_reduction <add>, %312, %cst_102 [2] : vector<2x8x8xf32> to vector<2x8xf32>
    %314 = vector.shape_cast %313 : vector<2x8xf32> to vector<2x8x1xf32>
    %315 = vector.broadcast %314 : vector<2x8x1xf32> to vector<2x8x8xf32>
    %316 = arith.divf %312, %315 : vector<2x8x8xf32>
    %317 = arith.truncf %316 : vector<2x8x8xf32> to vector<2x8x8xbf16>
    "tpu.trace_start"() <{level = 10 : i32, message = "bqk,bkd->bqd"}> : () -> ()
    %cst_103 = arith.constant dense<0.000000e+00> : vector<2x8x32xf32>
    %318 = tpu.matmul %317, %305, %cst_103 {dimension_numbers = #tpu.dot_dimension_numbers<[2], [1], [1], [2], [0, 0, 0, 1, 1, 2], [0], [0]>} : vector<2x8x8xbf16>, vector<2x8x32xbf16>, vector<2x8x32xf32> -> vector<2x8x32xf32>
    "tpu.trace_stop"() : () -> ()
    %319 = vector.shape_cast %318 : vector<2x8x32xf32> to vector<16x32xf32>
    %320 = tpu.concatenate %250, %273, %296, %319 in 1 : vector<16x32xf32>, vector<16x32xf32>, vector<16x32xf32>, vector<16x32xf32> -> vector<16x128xf32>
    %321 = arith.truncf %320 : vector<16x128xf32> to vector<16x128xbf16>
    %c1_104 = arith.constant 1 : index
    %c0_105 = arith.constant 0 : index
    %c0_106 = arith.constant 0 : index
    %322 = vector.load %arg7[%c1_104, %c0_105, %c0_106] : memref<2x128x128xbf16, #tpu.memory_space<vmem>>, vector<1x128x128xbf16>
    %323 = vector.shape_cast %322 : vector<1x128x128xbf16> to vector<128x128xbf16>
    %cst_107 = arith.constant dense<0.000000e+00> : vector<16x128xf32>
    %324 = tpu.matmul %321, %323, %cst_107 {dimension_numbers = #tpu.dot_dimension_numbers<[1], [0], [0], [1], [0, 0, 1, 1], [], []>} : vector<16x128xbf16>, vector<128x128xbf16>, vector<16x128xf32> -> vector<16x128xf32>
    %c1_108 = arith.constant 1 : index
    %c0_109 = arith.constant 0 : index
    %c0_110 = arith.constant 0 : index
    %325 = vector.load %arg8[%c1_108, %c0_109, %c0_110] : memref<2x1x128xf32, #tpu.memory_space<vmem>>, vector<1x1x128xf32>
    %326 = vector.shape_cast %325 : vector<1x1x128xf32> to vector<1x128xf32>
    %327 = vector.broadcast %326 : vector<1x128xf32> to vector<16x128xf32>
    %328 = arith.addf %324, %327 : vector<16x128xf32>
    %329 = arith.addf %328, %219 : vector<16x128xf32>
    %c1_111 = arith.constant 1 : index
    %c0_112 = arith.constant 0 : index
    %c0_113 = arith.constant 0 : index
    %330 = vector.load %arg9[%c1_111, %c0_112, %c0_113] : memref<2x1x128xf32, #tpu.memory_space<vmem>>, vector<1x1x128xf32>
    %331 = vector.shape_cast %330 : vector<1x1x128xf32> to vector<1x128xf32>
    %c1_114 = arith.constant 1 : index
    %c0_115 = arith.constant 0 : index
    %c0_116 = arith.constant 0 : index
    %332 = vector.load %arg10[%c1_114, %c0_115, %c0_116] : memref<2x1x128xf32, #tpu.memory_space<vmem>>, vector<1x1x128xf32>
    %333 = vector.shape_cast %332 : vector<1x1x128xf32> to vector<1x128xf32>
    %cst_117 = arith.constant dense<0.000000e+00> : vector<16xf32>
    %334 = vector.multi_reduction <add>, %329, %cst_117 [1] : vector<16x128xf32> to vector<16xf32>
    %335 = vector.shape_cast %334 : vector<16xf32> to vector<16x1xf32>
    %cst_118 = arith.constant 1.280000e+02 : f32
    %336 = vector.broadcast %cst_118 : f32 to vector<16x1xf32>
    %337 = arith.divf %335, %336 : vector<16x1xf32>
    %338 = vector.broadcast %337 : vector<16x1xf32> to vector<16x128xf32>
    %339 = arith.subf %329, %338 : vector<16x128xf32>
    %340 = arith.mulf %339, %339 : vector<16x128xf32>
    %cst_119 = arith.constant dense<0.000000e+00> : vector<16xf32>
    %341 = vector.multi_reduction <add>, %340, %cst_119 [1] : vector<16x128xf32> to vector<16xf32>
    %342 = vector.shape_cast %341 : vector<16xf32> to vector<16x1xf32>
    %cst_120 = arith.constant 1.280000e+02 : f32
    %343 = vector.broadcast %cst_120 : f32 to vector<16x1xf32>
    %344 = arith.divf %342, %343 : vector<16x1xf32>
    %345 = vector.broadcast %337 : vector<16x1xf32> to vector<16x128xf32>
    %346 = arith.subf %329, %345 : vector<16x128xf32>
    %cst_121 = arith.constant 9.99999996E-13 : f32
    %347 = vector.broadcast %cst_121 : f32 to vector<16x1xf32>
    %348 = arith.addf %344, %347 : vector<16x1xf32>
    %349 = math.rsqrt %348 : vector<16x1xf32>
    %350 = vector.broadcast %349 : vector<16x1xf32> to vector<16x128xf32>
    %351 = arith.mulf %346, %350 : vector<16x128xf32>
    %352 = vector.broadcast %331 : vector<1x128xf32> to vector<16x128xf32>
    %353 = arith.mulf %351, %352 : vector<16x128xf32>
    %354 = vector.broadcast %333 : vector<1x128xf32> to vector<16x128xf32>
    %355 = arith.addf %353, %354 : vector<16x128xf32>
    %356 = arith.truncf %355 : vector<16x128xf32> to vector<16x128xbf16>
    %c1_122 = arith.constant 1 : index
    %c0_123 = arith.constant 0 : index
    %c0_124 = arith.constant 0 : index
    %357 = vector.load %arg11[%c1_122, %c0_123, %c0_124] : memref<2x128x256xbf16, #tpu.memory_space<vmem>>, vector<1x128x256xbf16>
    %358 = vector.shape_cast %357 : vector<1x128x256xbf16> to vector<128x256xbf16>
    %cst_125 = arith.constant dense<0.000000e+00> : vector<16x256xf32>
    %359 = tpu.matmul %356, %358, %cst_125 {dimension_numbers = #tpu.dot_dimension_numbers<[1], [0], [0], [1], [0, 0, 1, 1], [], []>} : vector<16x128xbf16>, vector<128x256xbf16>, vector<16x256xf32> -> vector<16x256xf32>
    %c1_126 = arith.constant 1 : index
    %c0_127 = arith.constant 0 : index
    %c0_128 = arith.constant 0 : index
    %360 = vector.load %arg12[%c1_126, %c0_127, %c0_128] : memref<2x1x256xf32, #tpu.memory_space<vmem>>, vector<1x1x256xf32>
    %361 = vector.shape_cast %360 : vector<1x1x256xf32> to vector<1x256xf32>
    %362 = vector.broadcast %361 : vector<1x256xf32> to vector<16x256xf32>
    %363 = arith.addf %359, %362 : vector<16x256xf32>
    %cst_129 = arith.constant 5.000000e-01 : f32
    %364 = vector.broadcast %cst_129 : f32 to vector<16x256xf32>
    %365 = arith.mulf %364, %363 : vector<16x256xf32>
    %cst_130 = arith.constant 4.471500e-02 : f32
    %366 = vector.broadcast %cst_130 : f32 to vector<16x256xf32>
    %367 = arith.mulf %366, %363 : vector<16x256xf32>
    %368 = arith.mulf %367, %363 : vector<16x256xf32>
    %369 = arith.mulf %368, %363 : vector<16x256xf32>
    %370 = arith.addf %363, %369 : vector<16x256xf32>
    %cst_131 = arith.constant 0.797884583 : f32
    %371 = vector.broadcast %cst_131 : f32 to vector<16x256xf32>
    %372 = arith.mulf %371, %370 : vector<16x256xf32>
    %373 = math.tanh %372 : vector<16x256xf32>
    %cst_132 = arith.constant 1.000000e+00 : f32
    %374 = vector.broadcast %cst_132 : f32 to vector<16x256xf32>
    %375 = arith.addf %374, %373 : vector<16x256xf32>
    %376 = arith.mulf %365, %375 : vector<16x256xf32>
    %377 = arith.truncf %376 : vector<16x256xf32> to vector<16x256xbf16>
    %c1_133 = arith.constant 1 : index
    %c0_134 = arith.constant 0 : index
    %c0_135 = arith.constant 0 : index
    %378 = vector.load %arg13[%c1_133, %c0_134, %c0_135] : memref<2x256x128xbf16, #tpu.memory_space<vmem>>, vector<1x256x128xbf16>
    %379 = vector.shape_cast %378 : vector<1x256x128xbf16> to vector<256x128xbf16>
    %cst_136 = arith.constant dense<0.000000e+00> : vector<16x128xf32>
    %380 = tpu.matmul %377, %379, %cst_136 {dimension_numbers = #tpu.dot_dimension_numbers<[1], [0], [0], [1], [0, 0, 1, 1], [], []>} : vector<16x256xbf16>, vector<256x128xbf16>, vector<16x128xf32> -> vector<16x128xf32>
    %c1_137 = arith.constant 1 : index
    %c0_138 = arith.constant 0 : index
    %c0_139 = arith.constant 0 : index
    %381 = vector.load %arg14[%c1_137, %c0_138, %c0_139] : memref<2x1x128xf32, #tpu.memory_space<vmem>>, vector<1x1x128xf32>
    %382 = vector.shape_cast %381 : vector<1x1x128xf32> to vector<1x128xf32>
    %383 = vector.broadcast %382 : vector<1x128xf32> to vector<16x128xf32>
    %384 = arith.addf %380, %383 : vector<16x128xf32>
    %385 = arith.addf %384, %355 : vector<16x128xf32>
    %c1_140 = arith.constant 1 : index
    %c0_141 = arith.constant 0 : index
    %c0_142 = arith.constant 0 : index
    %386 = vector.load %arg15[%c1_140, %c0_141, %c0_142] : memref<2x1x128xf32, #tpu.memory_space<vmem>>, vector<1x1x128xf32>
    %387 = vector.shape_cast %386 : vector<1x1x128xf32> to vector<1x128xf32>
    %c1_143 = arith.constant 1 : index
    %c0_144 = arith.constant 0 : index
    %c0_145 = arith.constant 0 : index
    %388 = vector.load %arg16[%c1_143, %c0_144, %c0_145] : memref<2x1x128xf32, #tpu.memory_space<vmem>>, vector<1x1x128xf32>
    %389 = vector.shape_cast %388 : vector<1x1x128xf32> to vector<1x128xf32>
    %cst_146 = arith.constant dense<0.000000e+00> : vector<16xf32>
    %390 = vector.multi_reduction <add>, %385, %cst_146 [1] : vector<16x128xf32> to vector<16xf32>
    %391 = vector.shape_cast %390 : vector<16xf32> to vector<16x1xf32>
    %cst_147 = arith.constant 1.280000e+02 : f32
    %392 = vector.broadcast %cst_147 : f32 to vector<16x1xf32>
    %393 = arith.divf %391, %392 : vector<16x1xf32>
    %394 = vector.broadcast %393 : vector<16x1xf32> to vector<16x128xf32>
    %395 = arith.subf %385, %394 : vector<16x128xf32>
    %396 = arith.mulf %395, %395 : vector<16x128xf32>
    %cst_148 = arith.constant dense<0.000000e+00> : vector<16xf32>
    %397 = vector.multi_reduction <add>, %396, %cst_148 [1] : vector<16x128xf32> to vector<16xf32>
    %398 = vector.shape_cast %397 : vector<16xf32> to vector<16x1xf32>
    %cst_149 = arith.constant 1.280000e+02 : f32
    %399 = vector.broadcast %cst_149 : f32 to vector<16x1xf32>
    %400 = arith.divf %398, %399 : vector<16x1xf32>
    %401 = vector.broadcast %393 : vector<16x1xf32> to vector<16x128xf32>
    %402 = arith.subf %385, %401 : vector<16x128xf32>
    %cst_150 = arith.constant 9.99999996E-13 : f32
    %403 = vector.broadcast %cst_150 : f32 to vector<16x1xf32>
    %404 = arith.addf %400, %403 : vector<16x1xf32>
    %405 = math.rsqrt %404 : vector<16x1xf32>
    %406 = vector.broadcast %405 : vector<16x1xf32> to vector<16x128xf32>
    %407 = arith.mulf %402, %406 : vector<16x128xf32>
    %408 = vector.broadcast %387 : vector<1x128xf32> to vector<16x128xf32>
    %409 = arith.mulf %407, %408 : vector<16x128xf32>
    %410 = vector.broadcast %389 : vector<1x128xf32> to vector<16x128xf32>
    %411 = arith.addf %409, %410 : vector<16x128xf32>
    %c0_151 = arith.constant 0 : index
    %c0_152 = arith.constant 0 : index
    %412 = vector.load %arg17[%c0_151, %c0_152] : memref<16x128xf32, #tpu.memory_space<vmem>>, vector<16x128xf32>
    tpu.vector_store %arg17[%c0_151, %c0_152], %411 {strides = array<i32>} : memref<16x128xf32, #tpu.memory_space<vmem>>, vector<16x128xf32>,
    return
  }
  func.func @transform_0(%arg0: i32) -> (i32, i32) {
    %c0_i32 = arith.constant 0 : i32
    %c0_i32_0 = arith.constant 0 : i32
    %c0_i32_1 = arith.constant 0 : i32
    return %c0_i32, %c0_i32_0 : i32, i32
  }
  func.func @transform_1(%arg0: i32) -> (i32, i32, i32) {
    %c0_i32 = arith.constant 0 : i32
    %c0_i32_0 = arith.constant 0 : i32
    %c0_i32_1 = arith.constant 0 : i32
    %c0_i32_2 = arith.constant 0 : i32
    return %c0_i32, %c0_i32_0, %c0_i32_1 : i32, i32, i32
  }
  func.func @transform_2(%arg0: i32) -> (i32, i32) {
    %c0_i32 = arith.constant 0 : i32
    %c0_i32_0 = arith.constant 0 : i32
    %c0_i32_1 = arith.constant 0 : i32
    return %c0_i32, %c0_i32_0 : i32, i32
  }
  func.func @transform_3(%arg0: i32) -> (i32, i32) {
    %c0_i32 = arith.constant 0 : i32
    %c0_i32_0 = arith.constant 0 : i32
    %c0_i32_1 = arith.constant 0 : i32
    return %c0_i32, %c0_i32_0 : i32, i32
  }
  func.func @transform_4(%arg0: i32) -> (i32, i32, i32) {
    %c0_i32 = arith.constant 0 : i32
    %c0_i32_0 = arith.constant 0 : i32
    %c0_i32_1 = arith.constant 0 : i32
    %c0_i32_2 = arith.constant 0 : i32
    return %c0_i32, %c0_i32_0, %c0_i32_1 : i32, i32, i32
  }
  func.func @transform_5(%arg0: i32) -> (i32, i32, i32) {
    %c0_i32 = arith.constant 0 : i32
    %c0_i32_0 = arith.constant 0 : i32
    %c0_i32_1 = arith.constant 0 : i32
    %c0_i32_2 = arith.constant 0 : i32
    return %c0_i32, %c0_i32_0, %c0_i32_1 : i32, i32, i32
  }
  func.func @transform_6(%arg0: i32) -> (i32, i32, i32) {
    %c0_i32 = arith.constant 0 : i32
    %c0_i32_0 = arith.constant 0 : i32
    %c0_i32_1 = arith.constant 0 : i32
    %c0_i32_2 = arith.constant 0 : i32
    return %c0_i32, %c0_i32_0, %c0_i32_1 : i32, i32, i32
  }
  func.func @transform_7(%arg0: i32) -> (i32, i32, i32) {
    %c0_i32 = arith.constant 0 : i32
    %c0_i32_0 = arith.constant 0 : i32
    %c0_i32_1 = arith.constant 0 : i32
    %c0_i32_2 = arith.constant 0 : i32
    return %c0_i32, %c0_i32_0, %c0_i32_1 : i32, i32, i32
  }
  func.func @transform_8(%arg0: i32) -> (i32, i32, i32) {
    %c0_i32 = arith.constant 0 : i32
    %c0_i32_0 = arith.constant 0 : i32
    %c0_i32_1 = arith.constant 0 : i32
    %c0_i32_2 = arith.constant 0 : i32
    return %c0_i32, %c0_i32_0, %c0_i32_1 : i32, i32, i32
  }
  func.func @transform_9(%arg0: i32) -> (i32, i32, i32) {
    %c0_i32 = arith.constant 0 : i32
    %c0_i32_0 = arith.constant 0 : i32
    %c0_i32_1 = arith.constant 0 : i32
    %c0_i32_2 = arith.constant 0 : i32
    return %c0_i32, %c0_i32_0, %c0_i32_1 : i32, i32, i32
  }
  func.func @transform_10(%arg0: i32) -> (i32, i32, i32) {
    %c0_i32 = arith.constant 0 : i32
    %c0_i32_0 = arith.constant 0 : i32
    %c0_i32_1 = arith.constant 0 : i32
    %c0_i32_2 = arith.constant 0 : i32
    return %c0_i32, %c0_i32_0, %c0_i32_1 : i32, i32, i32
  }
  func.func @transform_11(%arg0: i32) -> (i32, i32, i32) {
    %c0_i32 = arith.constant 0 : i32
    %c0_i32_0 = arith.constant 0 : i32
    %c0_i32_1 = arith.constant 0 : i32
    %c0_i32_2 = arith.constant 0 : i32
    return %c0_i32, %c0_i32_0, %c0_i32_1 : i32, i32, i32
  }
  func.func @transform_12(%arg0: i32) -> (i32, i32, i32) {
    %c0_i32 = arith.constant 0 : i32
    %c0_i32_0 = arith.constant 0 : i32
    %c0_i32_1 = arith.constant 0 : i32
    %c0_i32_2 = arith.constant 0 : i32
    return %c0_i32, %c0_i32_0, %c0_i32_1 : i32, i32, i32
  }
  func.func @transform_13(%arg0: i32) -> (i32, i32, i32) {
    %c0_i32 = arith.constant 0 : i32
    %c0_i32_0 = arith.constant 0 : i32
    %c0_i32_1 = arith.constant 0 : i32
    %c0_i32_2 = arith.constant 0 : i32
    return %c0_i32, %c0_i32_0, %c0_i32_1 : i32, i32, i32
  }
  func.func @transform_14(%arg0: i32) -> (i32, i32, i32) {
    %c0_i32 = arith.constant 0 : i32
    %c0_i32_0 = arith.constant 0 : i32
    %c0_i32_1 = arith.constant 0 : i32
    %c0_i32_2 = arith.constant 0 : i32
    return %c0_i32, %c0_i32_0, %c0_i32_1 : i32, i32, i32
  }
  func.func @transform_15(%arg0: i32) -> (i32, i32, i32) {
    %c0_i32 = arith.constant 0 : i32
    %c0_i32_0 = arith.constant 0 : i32
    %c0_i32_1 = arith.constant 0 : i32
    %c0_i32_2 = arith.constant 0 : i32
    return %c0_i32, %c0_i32_0, %c0_i32_1 : i32, i32, i32
  }
  func.func @transform_16(%arg0: i32) -> (i32, i32) {
    %c0_i32 = arith.constant 0 : i32
    %c0_i32_0 = arith.constant 0 : i32
    %c0_i32_1 = arith.constant 0 : i32
    return %c0_i32, %c0_i32_0 : i32, i32
  }
}

</mosaic_0001>

<bundles_post_ra>
// kernel: bert_forward.1
= control target key start
LH: loop header
LB: loop body
LE: loop exit
PB: predicated region body
PF: predicated region fallthrough
CT: control target
= control target key end

     0   :  { %s5406_s0 = inlined_call_operand.vmem [shape: f32[16,128], index: 0, kind: input, shape index: {}]   ;;  %s5407_s1 = inlined_call_operand.vmem [shape: f32[2,1,8], index: 1, kind: input, shape index: {}]   ;;  %s5408_s2 = inlined_call_operand.vmem [shape: f32[1,128], index: 2, kind: input, shape index: {}]   ;;  %s5409_s3 = inlined_call_operand.vmem [shape: f32[1,128], index: 3, kind: input, shape index: {}]   ;;  %s5410_s4 = inlined_call_operand.hbm [shape: bf16[2,128,384], index: 4, kind: input, shape index: {}]   ;;  %s5411_s5 = inlined_call_operand.vmem [shape: f32[2,1,384], index: 5, kind: input, shape index: {}]   ;;  %s5412_s6 = inlined_call_operand.vmem [shape: bf16[2,128,128], index: 6, kind: input, shape index: {}]   ;;  %s5413_s7 = inlined_call_operand.vmem [shape: f32[2,1,128], index: 7, kind: input, shape index: {}]   ;;  %s5414_s8 = inlined_call_operand.vmem [shape: f32[2,1,128], index: 8, kind: input, shape index: {}]   ;;  %s5415_s9 = inlined_call_operand.vmem [shape: f32[2,1,128], index: 9, kind: input, shape index: {}]   ;;  %s5416_s10 = inlined_call_operand.hbm [shape: bf16[2,128,256], index: 10, kind: input, shape index: {}]   ;;  %s5417_s11 = inlined_call_operand.vmem [shape: f32[2,1,256], index: 11, kind: input, shape index: {}]   ;;  %s5418_s12 = inlined_call_operand.hbm [shape: bf16[2,256,128], index: 12, kind: input, shape index: {}]   ;;  %s5419_s13 = inlined_call_operand.vmem [shape: f32[2,1,128], index: 13, kind: input, shape index: {}]   ;;  %s5420_s14 = inlined_call_operand.vmem [shape: f32[2,1,128], index: 14, kind: input, shape index: {}]   ;;  %s5421_s15 = inlined_call_operand.vmem [shape: f32[2,1,128], index: 15, kind: input, shape index: {}]   ;;  %s5422_s16 = inlined_call_operand.hbm [shape: f32[16,128], index: 16, kind: output, shape index: {}]  }
   0x1   :  { %5424 = sst [smem:[#allocation12_spill]] %s5406_s0 }
   0x2   :  { %21 = vsyncpa [#allocation3], 0 }
   0x3   :  { %22 = vsyncpa [#allocation6], 0 }
   0x4   :  { %23 = vsyncpa [#allocation4], 0  ;;  %s4669_s21 = smov [#allocation5]  }
   0x5   :  { %s59_s22 = sshll.u32 %s4669_s21, 4  ;;  %s60_s22 = int_to_ptr.vmem [resolvable:$true] %s59_s22 }
   0x6   :  { %s4591_s23 = scalar_lea.vmem %s60_s22, 4096  ;;  %p4596_p1 = scmp.lt.s32.totalorder %s60_s22, %s60_s22 }
   0x7   :  { %p4592_p0 = scmp.ne.s32.totalorder %s60_s22, %s4591_s23  ;;  %p4597_p2 = scmp.lt.s32.totalorder %s4591_s23, %s4591_s23 }
   0x9   :  { %p4598_p3 = por %p4597_p2, %p4596_p1 }
   0xb   :  { %p4599_p4 = pnand %p4598_p3, %p4592_p0 }
   0xd   :  { %4602 = shalt.err (!%p4599_p4)
}
   0xe   :  { %s4670_s24 = smov 128   ;;  %s4671_s25 = smov 8  }
   0xf   :  { %65 = dma.hbm_to_vmem [thread:$0]  %s5416_s10, 4096, %s60_s22, [#allocation6], %s4670_s24, %s4670_s24, %s4671_s25  }
  0x10   :  { %s4672_s28 = smov [#allocation2]  }
  0x11   :  { %s37_s29 = sshll.u32 %s4672_s28, 4  ;;  %s38_s29 = int_to_ptr.vmem [resolvable:$true] %s37_s29 }
  0x12   :  { %s4611_s30 = scalar_lea.vmem %s38_s29, 6144  ;;  %p4616_p6 = scmp.lt.s32.totalorder %s38_s29, %s38_s29 }
  0x13   :  { %p4612_p5 = scmp.ne.s32.totalorder %s38_s29, %s4611_s30  ;;  %p4617_p7 = scmp.lt.s32.totalorder %s4611_s30, %s4611_s30 }
  0x15   :  { %p4618_p8 = por %p4617_p7, %p4616_p6 }
  0x17   :  { %p4619_p9 = pnand %p4618_p8, %p4612_p5 }
  0x19   :  { %4622 = shalt.err (!%p4619_p9)
}
  0x1a   :  { %s4673_s0 = smov 192   ;;  %s4674_s17 = smov 12  }
  0x1b   :  { %43 = dma.hbm_to_vmem [thread:$0]  %s5410_s4, 6144, %s38_s29, [#allocation3], %s4673_s0, %s4673_s0, %s4674_s17  }
  0x1c   :  { %s4675_s20 = smov [#allocation7]  }
  0x1d   :  { %s73_s21 = sshll.u32 %s4675_s20, 4  ;;  %s74_s21 = int_to_ptr.vmem [resolvable:$true] %s73_s21 }
  0x1e   :  { %s4631_s10 = scalar_lea.vmem %s74_s21, 4096  ;;  %p4636_p11 = scmp.lt.s32.totalorder %s74_s21, %s74_s21 }
  0x1f   :  { %p4632_p10 = scmp.ne.s32.totalorder %s74_s21, %s4631_s10  ;;  %p4637_p12 = scmp.lt.s32.totalorder %s4631_s10, %s4631_s10 }
  0x21   :  { %p4638_p13 = por %p4637_p12, %p4636_p11 }
  0x23   :  { %p4639_p0 = pnand %p4638_p13, %p4632_p10 }
  0x25   :  { %4642 = shalt.err (!%p4639_p0)
}
  0x26   :  { %s4676_s22 = smov 64   ;;  %s4677_s23 = smov 4  }
  0x27   :  { %79 = dma.hbm_to_vmem [thread:$0]  %s5418_s12, 4096, %s74_s21, [#allocation6], %s4676_s22, %s4676_s22, %s4677_s23  }
  0x28   :  { %4663 = dma.done.wait [#allocation3], 6144  }
  0x29   :  { %4664 = vsyncadd [#allocation3], 4294961152 }
  0x2a   :  { %4665 = dma.done.wait [#allocation6], 8192  }
  0x2b   :  { %4666 = vsyncadd [#allocation6], 4294959104  ;;  %s5425_s29 = sld [smem:[#allocation12_spill]]  ;;  %v4321_v2 = vld [vmem:[#allocation2 + $0xac] ss:$12 sps:$4 sm:$0xff]   ;;  %v4678_v4 = vmov 0.0   ;;  %v188_v53 = vlaneseq }
  0x2c   :  { %v4323_v3 = vld [vmem:[#allocation2 + $0xa8] ss:$12 sps:$4 sm:$0xff]   ;;  %4004 = vmatprep.subr.bf16.mxu1 %v4678_v4  ;;  %v4324_v5 = vld [vmem:[#allocation2 + $0xb0] ss:$12 sps:$4 sm:$0xff]   ;;  %331 = vmatprep.subr.bf16.mxu0 %v4321_v2  ;;  %v4328_v16 = vld [vmem:[#allocation2 + $0x98] ss:$12 sps:$4 sm:$0xff]  }
  0x2d   :  { %332 = vmatpush1.bf16.msra.mxu0 %v4323_v3  ;;  %4005 = vmatpush3.bf16.msra.mxu1 %v4324_v5  ;;  %v4325_v14 = vld [vmem:[#allocation2 + $0x94] ss:$12 sps:$4 sm:$0xff]   ;;  %v4327_v15 = vld [vmem:[#allocation2 + $0x90] ss:$12 sps:$4 sm:$0xff]   ;;  %v4331_v18 = vld [vmem:[#allocation2 + $0x78] ss:$12 sps:$4 sm:$0xff]  }
  0x2e   :  { %4006 = vmatprep.subr.bf16.mxu1 %v4678_v4  ;;  %333 = vmatprep.subr.bf16.mxu0 %v4325_v14  ;;  %v4329_v17 = vld [vmem:[#allocation2 + $0x7c] ss:$12 sps:$4 sm:$0xff]   ;;  %v4332_v19 = vld [vmem:[#allocation2 + $0x80] ss:$12 sps:$4 sm:$0xff]   ;;  %v4333_v20 = vld [vmem:[#allocation2 + $0x64] ss:$12 sps:$4 sm:$0xff]  }
  0x2f   :  { %v4335_v21 = vld [vmem:[#allocation2 + $0x60] ss:$12 sps:$4 sm:$0xff]   ;;  %v4336_v22 = vld [vmem:[#allocation2 + $0x68] ss:$12 sps:$4 sm:$0xff]   ;;  %v4340_v25 = vld [vmem:[#allocation2 + $0x50] ss:$12 sps:$4 sm:$0xff]  }
  0x30   :  { %v4337_v23 = vld [vmem:[#allocation2 + $0x4c] ss:$12 sps:$4 sm:$0xff]   ;;  %v4339_v24 = vld [vmem:[#allocation2 + $0x48] ss:$12 sps:$4 sm:$0xff]   ;;  %v4679_v27 = vmov 0   ;;  %vm4680_vm0 = vmmov 0  }
  0x31   :  { %v96_v0 = vld [vmem:[%s5425_s29] sm:$0xff]  ;;  %v97_v1 = vld [vmem:[%s5425_s29 + $0x8] sm:$0xff]  ;;  %334 = vmatpush1.bf16.msra.mxu0 %v4327_v15  ;;  %4007 = vmatpush3.bf16.msra.mxu1 %v4328_v16  ;;  %v4343_v28 = vld [vmem:[#allocation2 + $0x30] ss:$12 sps:$4 sm:$0xff]   ;;  %v4828_v54 = vshrl.u32 %v188_v53, 7  ;;  %vm421_vm1 = vcmask 261120  }
  0x32   :  { %100 = vadd.xlane.f32.xlu0 %v96_v0  ;;  %4008 = vmatprep.subr.bf16.mxu1 %v4678_v4  ;;  %v4341_v26 = vld [vmem:[#allocation2 + $0x34] ss:$12 sps:$4 sm:$0xff]   ;;  %v4344_v29 = vld [vmem:[#allocation2 + $0x38] ss:$12 sps:$4 sm:$0xff]   ;;  %v4345_v30 = vld [vmem:[#allocation2 + $0x1c] ss:$12 sps:$4 sm:$0xff]  }
  0x33   :  { %335 = vmatprep.subr.bf16.mxu0 %v4329_v17  ;;  %363 = vmatprep.mubr.bf16.mxu0 %v4679_v27  ;;  %v4347_v31 = vld [vmem:[#allocation2 + $0x18] ss:$12 sps:$4 sm:$0xff]   ;;  %v4348_v32 = vld [vmem:[#allocation2 + $0x20] ss:$12 sps:$4 sm:$0xff]   ;;  %v4352_v35 = vld [vmem:[#allocation2 + $0x8] ss:$12 sps:$4 sm:$0xff]  }
  0x34   :  { %4020 = vmatprep.mubr.msk.bf16.mxu1 %vm4680_vm0, %v4678_v4  ;;  %v4349_v33 = vld [vmem:[#allocation2 + $0x4] ss:$12 sps:$4 sm:$0xff]   ;;  %v4351_v34 = vld [vmem:[#allocation2] ss:$12 sps:$4 sm:$0xff]   ;;  %v4831_v55 = vsub.s32 1, %v4828_v54  ;;  %v198_v57 = vsub.s32 2, %v4828_v54 }
  0x35   :  { %336 = vmatpush1.bf16.msra.mxu0 %v4331_v18  ;;  %4009 = vmatpush3.bf16.msra.mxu1 %v4332_v19  ;;  %v3660_v44 = vld [vmem:[%s5408_s2] ss:$0 sm:$0xff]  ;;  %v4839_v61 = vsub.s32 0, %v4828_v54  ;;  %vm542_vm2 = vcmask 1043456   ;;  %vm514_vm3 = vcmask 64512   ;;  %s4681_s26 = smov 96  }
  0x36   :  { %102 = vadd.xlane.f32.xlu0 %v97_v1  ;;  %4010 = vmatprep.subr.bf16.mxu1 %v4678_v4  ;;  %v3661_v48 = vld [vmem:[%s5409_s3] ss:$0 sm:$0xff]  ;;  %s4682_s27 = smov 32   ;;  %vm1324_vm4 = vcmask 523264   ;;  %vm1327_vm5 = vcmask 785408   ;;  %s4683_s17 = smov [#allocation8]  }
  0x37   :  { %337 = vmatprep.subr.bf16.mxu0 %v4333_v20  ;;  %v186_v56 = vld [vmem:[%s5411_s5] sm:$0x7]  ;;  %s3647_s18 = sshll.u32 %s4683_s17, 4  ;;  %s3648_s18 = int_to_ptr.vmem [resolvable:$true] %s3647_s18 }
  0x38   :  { %v195_v58 = vrot.slane %v186_v56, %v4831_v55  ;;  %v191_v5 = vrot.slane %v186_v56, %v4839_v61  ;;  %s4643_s19 = scalar_lea.vmem %s3648_s18, 256  ;;  %p4648_p2 = scmp.lt.s32.totalorder %s3648_s18, %s3648_s18 }
  0x39   :  { %338 = vmatpush1.bf16.msra.mxu0 %v4335_v21  ;;  %4011 = vmatpush3.bf16.msra.mxu1 %v4336_v22  ;;  %v4876_v21 = vld [vmem:[%s5407_s1] ss:$0 sm:$0xff]  ;;  %p4644_p1 = scmp.ne.s32.totalorder %s3648_s18, %s4643_s19  ;;  %p4649_p3 = scmp.lt.s32.totalorder %s4643_s19, %s4643_s19 }
  0x3a   :  { %339 = vmatprep.subr.bf16.mxu0 %v4337_v23  ;;  %4012 = vmatprep.subr.bf16.mxu1 %v4678_v4 }
  0x3b   :  { %p4650_p4 = por %p4649_p3, %p4648_p2 }
  0x3d   :  { %340 = vmatpush1.bf16.msra.mxu0 %v4339_v24  ;;  %4013 = vmatpush3.bf16.msra.mxu1 %v4340_v25  ;;  %p4651_p5 = pnand %p4650_p4, %p4644_p1 }
  0x3e   :  { %341 = vmatprep.subr.bf16.mxu0 %v4341_v26  ;;  %4014 = vmatprep.subr.bf16.mxu1 %v4678_v4 }
  0x41   :  { %342 = vmatpush1.bf16.msra.mxu0 %v4343_v28  ;;  %4015 = vmatpush3.bf16.msra.mxu1 %v4344_v29  ;;  %v4883_v29 = vld [vmem:[%s5407_s1 + $0x1] ss:$0 sm:$0xff] }
  0x42   :  { %343 = vmatprep.subr.bf16.mxu0 %v4345_v30  ;;  %4016 = vmatprep.subr.bf16.mxu1 %v4678_v4 }
  0x45   :  { %344 = vmatpush1.bf16.msra.mxu0 %v4347_v31  ;;  %4017 = vmatpush3.bf16.msra.mxu1 %v4348_v32 }
  0x46   :  { %345 = vmatprep.subr.bf16.mxu0 %v4349_v33  ;;  %4018 = vmatprep.subr.bf16.mxu1 %v4678_v4 }
  0x49   :  { %346 = vmatpush1.bf16.msra.mxu0 %v4351_v34  ;;  %4019 = vmatpush3.bf16.msra.mxu1 %v4352_v35 }
  0x4a   :  { %4024 = vmatprep.subr.bf16.mxu1 %v4678_v4  ;;  %4048 = vmatprep.subr.bf16.mxu0 %v4678_v4 }
  0xbb   :  { %v101_v6 = vpop.xlane.xlu0 %100 }
  0xbc   :  { %v105_v7 = vmul.f32 0.0078125, %v101_v6 }
  0xbe   :  { %v4791_v8 = vsub.f32 %v96_v0, %v105_v7  ;;  %v199_v0 = vrot.slane %v186_v56, %v198_v57 }
  0xbf   :  { %v103_v9 = vpop.xlane.xlu0 %102 }
  0xc0   :  { %v106_v10 = vmul.f32 0.0078125, %v103_v9  ;;  %v109_v11 = vmul.f32 %v4791_v8, %v4791_v8 }
  0xc2   :  { %v4795_v12 = vsub.f32 %v97_v1, %v106_v10  ;;  %111 = vadd.xlane.f32.xlu1 %v109_v11 }
  0xc4   :  { %v110_v13 = vmul.f32 %v4795_v12, %v4795_v12 }
  0xc6   :  { %113 = vadd.xlane.f32.xlu1 %v110_v13 }
 0x14b   :  { %v112_v36 = vpop.xlane.xlu1 %111 }
 0x14c   :  { %v115_v37 = vmul.f32 0.0078125, %v112_v36 }
 0x14e   :  { %v117_v38 = vadd.f32 1e-12, %v115_v37 }
 0x14f   :  { %v114_v39 = vpop.xlane.xlu1 %113 }
 0x150   :  { %4481 = vrsqrt.f32 %v117_v38  ;;  %v116_v40 = vmul.f32 0.0078125, %v114_v39 }
 0x152   :  { %v118_v41 = vadd.f32 1e-12, %v116_v40 }
 0x154   :  { %4483 = vrsqrt.f32 %v118_v41 }
 0x15d   :  { %v4482_v42 = vpop.eup %4481 }
 0x15e   :  { %v121_v43 = vmul.f32 %v4482_v42, %v4791_v8 }
 0x160   :  { %v129_v47 = vmul.f32 %v3660_v44, %v121_v43 }
 0x161   :  { %v4484_v45 = vpop.eup %4483 }
 0x162   :  { %v122_v46 = vmul.f32 %v4484_v45, %v4795_v12  ;;  %v4818_v50 = vadd.f32 %v3661_v48, %v129_v47 }
 0x164   :  { %v130_v49 = vmul.f32 %v3660_v44, %v122_v46 }
 0x166   :  { %v4820_v51 = vadd.f32 %v3661_v48, %v130_v49 }
 0x168   :  { %v153_v52 = vpack.c.bf16 %v4820_v51, %v4818_v50 }
 0x16a   :  { %364 = vmatmul.mubr.bf16.vlgmr.msra.gmra.mxu0 %v153_v52  ;;  %4021 = vmatmul.mubr.bf16.vlgmr.msra.gmra.mxu1 %v153_v52 }
 0x16b   :  { %4026 = vmatprep.mubr.msk.bf16.mxu1 %vm4680_vm0, %v4678_v4  ;;  %4050 = vmatprep.mubr.msk.bf16.mxu0 %vm4680_vm0, %v4678_v4 }
 0x22a   :  { %v365_v59 = vpop.f32.mrf.mxu0  ;;  %v408_v60 = vpop.f32.mrf.mxu1 }
 0x22b   :  { %v366_v12 = vadd.f32 %v365_v59, %v191_v5  ;;  %v409_v15 = vadd.f32 %v408_v60, %v199_v0 }
 0x22c   :  { %v367_v62 = vpop.f32.mrf.mxu0  ;;  %v4022_v63 = vpop.f32.mrf.mxu1 }
 0x22d   :  { %v368_v1 = vadd.f32 %v367_v62, %v195_v58  ;;  %v4853_v14 = vpack.c.bf16 %v366_v12, %v366_v12  ;;  %v4862_v18 = vpack.c.bf16 %v409_v15, %v409_v15 }
 0x22e   :  { %v369_v2 = vpop.f32.mrf.mxu0  ;;  %v411_v3 = vpop.f32.mrf.mxu1 }
 0x22f   :  { %v4844_v6 = vpack.c.bf16 %v368_v1, %v368_v1  ;;  %v4846_v7 = vadd.f32 %v411_v3, %v199_v0  ;;  %v370_v17 = vadd.f32 %v369_v2, %v191_v5  ;;  %v544_v20 = vsel %vm542_vm2, %v4862_v18, 0 }
 0x230   :  { %v371_v8 = vpop.f32.mrf.mxu0  ;;  %v4023_v9 = vpop.f32.mrf.mxu1 }
 0x231   :  { %v372_v10 = vadd.f32 %v371_v8, %v195_v58  ;;  %v426_v11 = vsel %vm421_vm1, %v4844_v6, 0  ;;  %v4864_v19 = vpack.c.bf16 %v370_v17, %v370_v17  ;;  %v4904_v58 = vpack.c.bf16 %v4846_v7, %v4846_v7 }
 0x232   :  { %4025 = vmatpush3.bf16.xpose.msra.mxu1 %v426_v11 }
 0x233   :  { %4030 = vmatprep.subr.bf16.mxu1 %v4678_v4  ;;  %v4851_v13 = vpack.c.bf16 %v372_v10, %v372_v10  ;;  %v590_v62 = vsel %vm542_vm2, %v4904_v58, 0 }
 0x235   :  { %v472_v16 = vsel %vm421_vm1, %v4851_v13, 0 }
 0x239   :  { %4027 = vmatmul.mubr.msk.bf16.vlgmr.msra.gmra.mxu1 %vm421_vm1, %v4853_v14 }
 0x23a   :  { %4031 = vmatpush3.bf16.xpose.msra.mxu1 %v472_v16  ;;  %4032 = vmatprep.mubr.msk.bf16.mxu1 %vm4680_vm0, %v4678_v4 }
 0x23b   :  { %4036 = vmatprep.subr.bf16.mxu1 %v4678_v4 }
 0x241   :  { %4033 = vmatmul.mubr.msk.bf16.vlgmr.msra.gmra.mxu1 %vm421_vm1, %v4864_v19 }
 0x242   :  { %4037 = vmatpush3.bf16.msra.mxu1 %v544_v20  ;;  %4038 = vmatprep.mubr.msk.bf16.mxu1 %vm4680_vm0, %v4678_v4 }
 0x243   :  { %4042 = vmatprep.subr.bf16.mxu1 %v4678_v4 }
 0x2f9   :  { %v462_v22 = vpop.f32.mrf.mxu1 }
 0x2fa   :  { %v463_v23 = vadd.f32 %v4876_v21, %v462_v22 }
 0x2fb   :  { %v4028_v24 = vpop.f32.mrf.mxu1 }
 0x2fc   :  { %v515_v25 = vsel %vm514_vm3, %v463_v23, -inf }
 0x2fd   :  { %516 = vmax.xlane.f32.xlu0 %v515_v25  ;;  %v465_v26 = vpop.f32.mrf.mxu1 }
 0x2ff   :  { %v4029_v28 = vpop.f32.mrf.mxu1 }
 0x301   :  { %v508_v30 = vpop.f32.mrf.mxu1 }
 0x302   :  { %v509_v31 = vadd.f32 %v4883_v29, %v508_v30 }
 0x303   :  { %v4034_v32 = vpop.f32.mrf.mxu1 }
 0x304   :  { %v518_v33 = vsel %vm514_vm3, %v509_v31, -inf }
 0x305   :  { %519 = vmax.xlane.f32.xlu1 %v518_v33  ;;  %v511_v34 = vpop.f32.mrf.mxu1 }
 0x307   :  { %v4035_v35 = vpop.f32.mrf.mxu1 }
 0x316   :  { %688 = vrot.lane.b32.xlu1 %v4851_v13, %s4681_s26 }
 0x386   :  { %v517_v36 = vpop.xlane.xlu0 %516 }
 0x387   :  { %v521_v37 = vsub.f32 %v463_v23, %v517_v36 }
 0x389   :  { %v523_v38 = vmul.f32 1.442695, %v521_v37 }
 0x38b   :  { %4485 = vpow2.f32 %v523_v38 }
 0x38e   :  { %v520_v39 = vpop.xlane.xlu1 %519 }
 0x38f   :  { %v522_v40 = vsub.f32 %v509_v31, %v520_v39 }
 0x391   :  { %v525_v41 = vmul.f32 1.442695, %v522_v40 }
 0x392   :  { %v689_v47 = vpop.permute.xlu1 %688 }
 0x393   :  { %4487 = vpow2.f32 %v525_v41  ;;  %v694_v2 = vsel %vm421_vm1, %v689_v47, 0 }
 0x398   :  { %v4486_v42 = vpop.eup %4485 }
 0x399   :  { %v527_v43 = vsel %vm514_vm3, %v4486_v42, 0.0 }
 0x39a   :  { %528 = vadd.xlane.f32.xlu0 %v527_v43 }
 0x3a0   :  { %v4488_v44 = vpop.eup %4487 }
 0x3a1   :  { %v530_v45 = vsel %vm514_vm3, %v4488_v44, 0.0 }
 0x3a2   :  { %531 = vadd.xlane.f32.xlu1 %v530_v45 }
 0x3b0   :  { %636 = vrot.lane.b32.xlu0 %v4844_v6, %s4681_s26 }
 0x3b3   :  { %633 = vrot.lane.b32.xlu1 %v4853_v14, %s4681_s26 }
 0x3b7   :  { %685 = vrot.lane.b32.xlu1 %v4864_v19, %s4681_s26 }
 0x423   :  { %v529_v46 = vpop.xlane.xlu0 %528 }
 0x424   :  { %4489 = vrcp.f32 %v529_v46 }
 0x427   :  { %v637_v48 = vpop.permute.xlu0 %636 }
 0x428   :  { %v642_v49 = vsel %vm421_vm1, %v637_v48, 0 }
 0x429   :  { %4049 = vmatpush3.bf16.xpose.msra.mxu0 %v642_v49 }
 0x42a   :  { %4060 = vmatprep.subr.bf16.mxu0 %v4678_v4 }
 0x42b   :  { %v532_v52 = vpop.xlane.xlu1 %531 }
 0x42c   :  { %4491 = vrcp.f32 %v532_v52 }
 0x42f   :  { %v634_v53 = vpop.permute.xlu1 %633 }
 0x430   :  { %4051 = vmatmul.mubr.msk.bf16.vlgmr.msra.gmra.mxu0 %vm421_vm1, %v634_v53 }
 0x431   :  { %v4490_v56 = vpop.eup %4489  ;;  %4062 = vmatprep.mubr.msk.bf16.mxu0 %vm4680_vm0, %v4678_v4 }
 0x432   :  { %v534_v59 = vmul.f32 %v4490_v56, %v4486_v42 }
 0x433   :  { %v686_v3 = vpop.permute.xlu1 %685 }
 0x434   :  { %v537_v60 = vpack.c.bf16 %v534_v59, %v534_v59 }
 0x436   :  { %4039 = vmatmul.mubr.msk.bf16.vlgmr.msra.gmra.mxu1 %vm514_vm3, %v537_v60 }
 0x437   :  { %4043 = vmatpush3.bf16.msra.mxu1 %v590_v62  ;;  %4044 = vmatprep.mubr.msk.bf16.mxu1 %vm4680_vm0, %v4678_v4 }
 0x438   :  { %4054 = vmatprep.subr.bf16.mxu1 %v4678_v4 }
 0x439   :  { %v4492_v63 = vpop.eup %4491 }
 0x43a   :  { %v536_v0 = vmul.f32 %v4492_v63, %v4488_v44 }
 0x43c   :  { %v538_v1 = vpack.c.bf16 %v536_v0, %v536_v0 }
 0x43e   :  { %4045 = vmatmul.mubr.msk.bf16.vlgmr.msra.gmra.mxu1 %vm514_vm3, %v538_v1 }
 0x43f   :  { %4055 = vmatpush3.bf16.xpose.msra.mxu1 %v694_v2  ;;  %4056 = vmatprep.mubr.msk.bf16.mxu1 %vm4680_vm0, %v4678_v4 }
 0x440   :  { %4066 = vmatprep.subr.bf16.mxu1 %v4678_v4 }
 0x446   :  { %4057 = vmatmul.mubr.msk.bf16.vlgmr.msra.gmra.mxu1 %vm421_vm1, %v686_v3 }
 0x447   :  { %4068 = vmatprep.mubr.msk.bf16.mxu1 %vm4680_vm0, %v4678_v4 }
 0x4f0   :  { %v678_v5 = vpop.f32.mrf.mxu0 }
 0x4f1   :  { %v679_v7 = vadd.f32 %v4876_v21, %v678_v5 }
 0x4f2   :  { %v4052_v8 = vpop.f32.mrf.mxu0 }
 0x4f3   :  { %v736_v9 = vsel %vm514_vm3, %v679_v7, -inf }
 0x4f4   :  { %737 = vmax.xlane.f32.xlu0 %v736_v9  ;;  %v681_v10 = vpop.f32.mrf.mxu0 }
 0x4f6   :  { %v4922_v11 = vpop.f32.mrf.mxu1  ;;  %v4053_v12 = vpop.f32.mrf.mxu0 }
 0x4f8   :  { %v4040_v15 = vpop.f32.mrf.mxu1 }
 0x4fa   :  { %v583_v16 = vpop.f32.mrf.mxu1 }
 0x4fc   :  { %v4041_v17 = vpop.f32.mrf.mxu1 }
 0x4fe   :  { %v4924_v20 = vpop.f32.mrf.mxu1 }
 0x500   :  { %v4046_v22 = vpop.f32.mrf.mxu1 }
 0x502   :  { %v629_v23 = vpop.f32.mrf.mxu1 }
 0x504   :  { %v4047_v24 = vpop.f32.mrf.mxu1 }
 0x506   :  { %v730_v25 = vpop.f32.mrf.mxu1 }
 0x507   :  { %v731_v26 = vadd.f32 %v4883_v29, %v730_v25 }
 0x508   :  { %v4058_v28 = vpop.f32.mrf.mxu1 }
 0x509   :  { %v739_v30 = vsel %vm514_vm3, %v731_v26, -inf }
 0x50a   :  { %740 = vmax.xlane.f32.xlu1 %v739_v30  ;;  %v733_v31 = vpop.f32.mrf.mxu1 }
 0x50c   :  { %v4059_v32 = vpop.f32.mrf.mxu1 }
 0x51b   :  { %810 = vrot.lane.b32.xlu1 %v4904_v58, %s4681_s26 }
 0x51f   :  { %860 = vrot.lane.b32.xlu1 %v4844_v6, %s4676_s22 }
 0x523   :  { %910 = vrot.lane.b32.xlu1 %v4851_v13, %s4676_s22 }
 0x527   :  { %908 = vrot.lane.b32.xlu1 %v4864_v19, %s4676_s22 }
 0x57d   :  { %v738_v33 = vpop.xlane.xlu0 %737 }
 0x57e   :  { %v742_v34 = vsub.f32 %v679_v7, %v738_v33 }
 0x580   :  { %v744_v35 = vmul.f32 1.442695, %v742_v34 }
 0x582   :  { %4493 = vpow2.f32 %v744_v35 }
 0x58f   :  { %v4494_v36 = vpop.eup %4493 }
 0x590   :  { %v748_v37 = vsel %vm514_vm3, %v4494_v36, 0.0 }
 0x591   :  { %749 = vadd.xlane.f32.xlu0 %v748_v37 }
 0x593   :  { %v741_v38 = vpop.xlane.xlu1 %740 }
 0x594   :  { %v743_v39 = vsub.f32 %v731_v26, %v741_v38 }
 0x596   :  { %v746_v40 = vmul.f32 1.442695, %v743_v39 }
 0x597   :  { %v811_v41 = vpop.permute.xlu1 %810 }
 0x598   :  { %4495 = vpow2.f32 %v746_v40  ;;  %v816_v42 = vsel %vm542_vm2, %v811_v41, 0 }
 0x599   :  { %4067 = vmatpush3.bf16.msra.mxu1 %v816_v42 }
 0x59a   :  { %4078 = vmatprep.subr.bf16.mxu1 %v4678_v4 }
 0x59b   :  { %v861_v53 = vpop.permute.xlu1 %860 }
 0x59c   :  { %v866_v59 = vsel %vm421_vm1, %v861_v53, 0 }
 0x59f   :  { %v911_v63 = vpop.permute.xlu1 %910 }
 0x5a0   :  { %v916_v2 = vsel %vm421_vm1, %v911_v63, 0 }
 0x5a3   :  { %v909_v3 = vpop.permute.xlu1 %908 }
 0x5a5   :  { %v4496_v43 = vpop.eup %4495 }
 0x5a6   :  { %v751_v44 = vsel %vm514_vm3, %v4496_v43, 0.0 }
 0x5a7   :  { %752 = vadd.xlane.f32.xlu0 %v751_v44 }
 0x5bd   :  { %761 = vrot.lane.b32.xlu0 %v4862_v18, %s4681_s26 }
 0x5c1   :  { %858 = vrot.lane.b32.xlu0 %v4853_v14, %s4676_s22 }
 0x61a   :  { %v750_v45 = vpop.xlane.xlu0 %749 }
 0x61b   :  { %4497 = vrcp.f32 %v750_v45 }
 0x628   :  { %v4498_v46 = vpop.eup %4497 }
 0x629   :  { %v755_v48 = vmul.f32 %v4498_v46, %v4494_v36 }
 0x62b   :  { %v758_v56 = vpack.c.bf16 %v755_v48, %v755_v48 }
 0x630   :  { %v753_v47 = vpop.xlane.xlu0 %752 }
 0x631   :  { %4499 = vrcp.f32 %v753_v47 }
 0x634   :  { %v762_v49 = vpop.permute.xlu0 %761 }
 0x635   :  { %v767_v52 = vsel %vm542_vm2, %v762_v49, 0 }
 0x636   :  { %4061 = vmatpush3.bf16.msra.mxu0 %v767_v52 }
 0x637   :  { %4072 = vmatprep.subr.bf16.mxu0 %v4678_v4 }
 0x638   :  { %v859_v0 = vpop.permute.xlu0 %858 }
 0x639   :  { %4063 = vmatmul.mubr.msk.bf16.vlgmr.msra.gmra.mxu0 %vm514_vm3, %v758_v56 }
 0x63a   :  { %4073 = vmatpush3.bf16.xpose.msra.mxu0 %v866_v59  ;;  %4074 = vmatprep.mubr.msk.bf16.mxu0 %vm4680_vm0, %v4678_v4 }
 0x63b   :  { %4084 = vmatprep.subr.bf16.mxu0 %v4678_v4 }
 0x63e   :  { %v4500_v60 = vpop.eup %4499 }
 0x63f   :  { %v757_v62 = vmul.f32 %v4500_v60, %v4496_v43 }
 0x641   :  { %4075 = vmatmul.mubr.msk.bf16.vlgmr.msra.gmra.mxu0 %vm421_vm1, %v859_v0  ;;  %v759_v1 = vpack.c.bf16 %v757_v62, %v757_v62 }
 0x642   :  { %4086 = vmatprep.mubr.msk.bf16.mxu0 %vm4680_vm0, %v4678_v4 }
 0x643   :  { %4069 = vmatmul.mubr.msk.bf16.vlgmr.msra.gmra.mxu1 %vm514_vm3, %v759_v1 }
 0x644   :  { %4079 = vmatpush3.bf16.xpose.msra.mxu1 %v916_v2  ;;  %4080 = vmatprep.mubr.msk.bf16.mxu1 %vm4680_vm0, %v4678_v4 }
 0x645   :  { %4090 = vmatprep.subr.bf16.mxu1 %v4678_v4 }
 0x64b   :  { %4081 = vmatmul.mubr.msk.bf16.vlgmr.msra.gmra.mxu1 %vm421_vm1, %v909_v3 }
 0x64c   :  { %4092 = vmatprep.mubr.msk.bf16.mxu1 %vm4680_vm0, %v4678_v4 }
 0x6f9   :  { %v4962_v5 = vpop.f32.mrf.mxu0 }
 0x6fb   :  { %v4064_v7 = vpop.f32.mrf.mxu0 }
 0x6fd   :  { %v806_v8 = vpop.f32.mrf.mxu0 }
 0x6ff   :  { %v4065_v9 = vpop.f32.mrf.mxu0 }
 0x701   :  { %v902_v10 = vpop.f32.mrf.mxu0 }
 0x702   :  { %v903_v12 = vadd.f32 %v4876_v21, %v902_v10 }
 0x703   :  { %v4965_v15 = vpop.f32.mrf.mxu1  ;;  %v4076_v16 = vpop.f32.mrf.mxu0 }
 0x704   :  { %v4291_v17 = vpack.i.bf16 %v4965_v15, %v4962_v5  ;;  %v958_v22 = vsel %vm514_vm3, %v903_v12, -inf }
 0x705   :  { %959 = vmax.xlane.f32.xlu0 %v958_v22  ;;  %v4070_v23 = vpop.f32.mrf.mxu1  ;;  %v905_v24 = vpop.f32.mrf.mxu0 }
 0x707   :  { %v855_v25 = vpop.f32.mrf.mxu1  ;;  %v4077_v26 = vpop.f32.mrf.mxu0 }
 0x709   :  { %v4071_v28 = vpop.f32.mrf.mxu1 }
 0x70b   :  { %v952_v30 = vpop.f32.mrf.mxu1 }
 0x70c   :  { %v953_v31 = vadd.f32 %v4883_v29, %v952_v30 }
 0x70d   :  { %v4082_v32 = vpop.f32.mrf.mxu1 }
 0x70e   :  { %v961_v33 = vsel %vm514_vm3, %v953_v31, -inf }
 0x70f   :  { %962 = vmax.xlane.f32.xlu1 %v961_v33  ;;  %v955_v34 = vpop.f32.mrf.mxu1 }
 0x711   :  { %v4083_v35 = vpop.f32.mrf.mxu1 }
 0x720   :  { %1030 = vrot.lane.b32.xlu1 %v4904_v58, %s4676_s22 }
 0x724   :  { %1080 = vrot.lane.b32.xlu1 %v4844_v6, %s4682_s27 }
 0x728   :  { %1130 = vrot.lane.b32.xlu1 %v4851_v13, %s4682_s27 }
 0x72c   :  { %1128 = vrot.lane.b32.xlu1 %v4864_v19, %s4682_s27 }
 0x78e   :  { %v960_v36 = vpop.xlane.xlu0 %959 }
 0x78f   :  { %v964_v37 = vsub.f32 %v903_v12, %v960_v36 }
 0x791   :  { %v966_v38 = vmul.f32 1.442695, %v964_v37 }
 0x793   :  { %4501 = vpow2.f32 %v966_v38 }
 0x798   :  { %v963_v39 = vpop.xlane.xlu1 %962 }
 0x799   :  { %v965_v40 = vsub.f32 %v953_v31, %v963_v39 }
 0x79b   :  { %v968_v41 = vmul.f32 1.442695, %v965_v40 }
 0x79c   :  { %v1031_v42 = vpop.permute.xlu1 %1030 }
 0x79d   :  { %4503 = vpow2.f32 %v968_v41  ;;  %v1036_v43 = vsel %vm542_vm2, %v1031_v42, 0 }
 0x79e   :  { %4091 = vmatpush3.bf16.msra.mxu1 %v1036_v43 }
 0x79f   :  { %4102 = vmatprep.subr.bf16.mxu1 %v4678_v4 }
 0x7a0   :  { %v4502_v6 = vpop.eup %4501  ;;  %v1081_v53 = vpop.permute.xlu1 %1080 }
 0x7a1   :  { %v970_v13 = vsel %vm514_vm3, %v4502_v6, 0.0  ;;  %v1086_v59 = vsel %vm421_vm1, %v1081_v53, 0  ;;  %v4354_v53 = vld [vmem:[%s5412_s6 + $0x30] sm:$0xff]  }
 0x7a2   :  { %971 = vadd.xlane.f32.xlu0 %v970_v13 }
 0x7a4   :  { %v1131_v62 = vpop.permute.xlu1 %1130 }
 0x7a5   :  { %v1136_v1 = vsel %vm421_vm1, %v1131_v62, 0  ;;  %v4359_v62 = vld [vmem:[%s5412_s6 + $0x8] sm:$0xff]  }
 0x7a8   :  { %v1129_v2 = vpop.permute.xlu1 %1128 }
 0x7aa   :  { %v4504_v44 = vpop.eup %4503 }
 0x7ab   :  { %v973_v19 = vsel %vm514_vm3, %v4504_v44, 0.0 }
 0x7ac   :  { %974 = vadd.xlane.f32.xlu0 %v973_v19 }
 0x7c2   :  { %982 = vrot.lane.b32.xlu0 %v4862_v18, %s4676_s22 }
 0x7c6   :  { %1078 = vrot.lane.b32.xlu0 %v4853_v14, %s4682_s27 }
 0x82b   :  { %v972_v45 = vpop.xlane.xlu0 %971 }
 0x82c   :  { %4505 = vrcp.f32 %v972_v45 }
 0x835   :  { %v975_v46 = vpop.xlane.xlu0 %974 }
 0x836   :  { %4507 = vrcp.f32 %v975_v46 }
 0x839   :  { %v4506_v47 = vpop.eup %4505  ;;  %v983_v48 = vpop.permute.xlu0 %982 }
 0x83a   :  { %v988_v49 = vsel %vm542_vm2, %v983_v48, 0  ;;  %v977_v52 = vmul.f32 %v4506_v47, %v4502_v6 }
 0x83b   :  { %4085 = vmatpush3.bf16.msra.mxu0 %v988_v49 }
 0x83c   :  { %v980_v56 = vpack.c.bf16 %v977_v52, %v977_v52  ;;  %4096 = vmatprep.subr.bf16.mxu0 %v4678_v4  ;;  %v4353_v52 = vld [vmem:[%s5412_s6 + $0x38] sm:$0xff]  }
 0x83d   :  { %v1079_v63 = vpop.permute.xlu0 %1078 }
 0x83e   :  { %4087 = vmatmul.mubr.msk.bf16.vlgmr.msra.gmra.mxu0 %vm514_vm3, %v980_v56  ;;  %v4355_v56 = vld [vmem:[%s5412_s6 + $0x28] sm:$0xff]  }
 0x83f   :  { %4097 = vmatpush3.bf16.xpose.msra.mxu0 %v1086_v59  ;;  %4098 = vmatprep.mubr.msk.bf16.mxu0 %vm4680_vm0, %v4678_v4  ;;  %v4356_v59 = vld [vmem:[%s5412_s6 + $0x20] sm:$0xff]  }
 0x840   :  { %4108 = vmatprep.subr.bf16.mxu0 %v4678_v4 }
 0x843   :  { %v4508_v14 = vpop.eup %4507 }
 0x844   :  { %v979_v60 = vmul.f32 %v4508_v14, %v4504_v44  ;;  %v4357_v14 = vld [vmem:[%s5412_s6 + $0x18] sm:$0xff]  }
 0x846   :  { %4099 = vmatmul.mubr.msk.bf16.vlgmr.msra.gmra.mxu0 %vm421_vm1, %v1079_v63  ;;  %v981_v0 = vpack.c.bf16 %v979_v60, %v979_v60  ;;  %v4358_v60 = vld [vmem:[%s5412_s6 + $0x10] sm:$0xff]  }
 0x847   :  { %4110 = vmatprep.mubr.msk.bf16.mxu0 %vm4680_vm0, %v4678_v4 }
 0x848   :  { %4093 = vmatmul.mubr.msk.bf16.vlgmr.msra.gmra.mxu1 %vm514_vm3, %v981_v0  ;;  %v4360_v0 = vld [vmem:[%s5412_s6] sm:$0xff]  }
 0x849   :  { %4103 = vmatpush3.bf16.xpose.msra.mxu1 %v1136_v1  ;;  %4104 = vmatprep.mubr.msk.bf16.mxu1 %vm4680_vm0, %v4678_v4 }
 0x84a   :  { %4114 = vmatprep.subr.bf16.mxu1 %v4678_v4 }
 0x850   :  { %4105 = vmatmul.mubr.msk.bf16.vlgmr.msra.gmra.mxu1 %vm421_vm1, %v1129_v2 }
 0x851   :  { %4116 = vmatprep.mubr.msk.bf16.mxu1 %vm4680_vm0, %v4678_v4 }
 0x8fe   :  { %v1024_v3 = vpop.f32.mrf.mxu0 }
 0x900   :  { %v4088_v7 = vpop.f32.mrf.mxu0 }
 0x902   :  { %v1027_v8 = vpop.f32.mrf.mxu0 }
 0x904   :  { %v4089_v9 = vpop.f32.mrf.mxu0 }
 0x906   :  { %v1122_v10 = vpop.f32.mrf.mxu0 }
 0x907   :  { %v1123_v12 = vadd.f32 %v4876_v21, %v1122_v10 }
 0x908   :  { %v1072_v16 = vpop.f32.mrf.mxu1  ;;  %v4100_v22 = vpop.f32.mrf.mxu0 }
 0x909   :  { %v1178_v23 = vsel %vm514_vm3, %v1123_v12, -inf  ;;  %v4296_v21 = vpack.i.bf16 %v1072_v16, %v1024_v3 }
 0x90a   :  { %1179 = vmax.xlane.f32.xlu0 %v1178_v23  ;;  %v4094_v24 = vpop.f32.mrf.mxu1  ;;  %v1125_v25 = vpop.f32.mrf.mxu0 }
 0x90c   :  { %v1075_v26 = vpop.f32.mrf.mxu1  ;;  %v4101_v28 = vpop.f32.mrf.mxu0 }
 0x90e   :  { %v4095_v30 = vpop.f32.mrf.mxu1 }
 0x910   :  { %v1172_v31 = vpop.f32.mrf.mxu1 }
 0x911   :  { %v1173_v32 = vadd.f32 %v4883_v29, %v1172_v31 }
 0x912   :  { %v4106_v33 = vpop.f32.mrf.mxu1 }
 0x913   :  { %v1181_v34 = vsel %vm514_vm3, %v1173_v32, -inf }
 0x914   :  { %1182 = vmax.xlane.f32.xlu1 %v1181_v34  ;;  %v1175_v35 = vpop.f32.mrf.mxu1 }
 0x916   :  { %v4107_v36 = vpop.f32.mrf.mxu1 }
 0x925   :  { %1250 = vrot.lane.b32.xlu1 %v4904_v58, %s4682_s27 }
 0x929   :  { %4292 = vrot.lane.b32.xlu1 %v4291_v17, %s4682_s27 }
 0x92d   :  { %4297 = vrot.lane.b32.xlu1 %v4296_v21, %s4676_s22 }
 0x993   :  { %v1180_v37 = vpop.xlane.xlu0 %1179 }
 0x994   :  { %v1184_v38 = vsub.f32 %v1123_v12, %v1180_v37 }
 0x996   :  { %v1186_v29 = vmul.f32 1.442695, %v1184_v38  ;;  %v3704_v38 = vld [vmem:[%s5413_s7] ss:$0 sm:$0xff] }
 0x998   :  { %4509 = vpow2.f32 %v1186_v29 }
 0x99d   :  { %v1183_v39 = vpop.xlane.xlu1 %1182 }
 0x99e   :  { %v1185_v40 = vsub.f32 %v1173_v32, %v1183_v39 }
 0x9a0   :  { %v1188_v41 = vmul.f32 1.442695, %v1185_v40 }
 0x9a1   :  { %v1251_v42 = vpop.permute.xlu1 %1250 }
 0x9a2   :  { %4511 = vpow2.f32 %v1188_v41  ;;  %v1256_v43 = vsel %vm542_vm2, %v1251_v42, 0 }
 0x9a3   :  { %4115 = vmatpush3.bf16.msra.mxu1 %v1256_v43 }
 0x9a5   :  { %v4510_v58 = vpop.eup %4509  ;;  %v4293_v16 = vpop.permute.xlu1 %4292 }
 0x9a6   :  { %v1190_v6 = vsel %vm514_vm3, %v4510_v58, 0.0  ;;  %v4295_v23 = vunpack.i.h.bf16 %v4293_v16  ;;  %v4294_v24 = vunpack.i.l.bf16 %v4293_v16 }
 0x9a7   :  { %1191 = vadd.xlane.f32.xlu0 %v1190_v6  ;;  %v4363_v6 = vld [vmem:[#allocation5 + $0x74] ss:$8 sps:$4 sm:$0xff]  }
 0x9a8   :  { %v1323_v30 = vsel %vm421_vm1, %v4924_v20, %v4295_v23  ;;  %v1322_v31 = vsel %vm421_vm1, %v4922_v11, %v4294_v24  ;;  %1594 = vmatprep.subr.bf16.mxu1 %v4363_v6  ;;  %v3714_v24 = vld [vmem:[%s5415_s9] ss:$0 sm:$0xff] }
 0x9a9   :  { %v4298_v22 = vpop.permute.xlu1 %4297 }
 0x9aa   :  { %v4300_v25 = vunpack.i.h.bf16 %v4298_v22  ;;  %v4299_v26 = vunpack.i.l.bf16 %v4298_v22 }
 0x9ac   :  { %v1325_v34 = vsel %vm1324_vm4, %v1322_v31, %v4299_v26  ;;  %v1326_v35 = vsel %vm1324_vm4, %v1323_v30, %v4300_v25  ;;  %v4385_v31 = vld [vmem:[#allocation7 + $0x78] sm:$0xff]  }
 0x9af   :  { %v4512_v5 = vpop.eup %4511 }
 0x9b0   :  { %v1193_v15 = vsel %vm514_vm3, %v4512_v5, 0.0 }
 0x9b1   :  { %1194 = vadd.xlane.f32.xlu0 %v1193_v15 }
 0x9c7   :  { %1202 = vrot.lane.b32.xlu0 %v4862_v18, %s4682_s27 }
 0xa30   :  { %v1192_v17 = vpop.xlane.xlu0 %1191 }
 0xa31   :  { %4513 = vrcp.f32 %v1192_v17 }
 0xa3a   :  { %v1195_v13 = vpop.xlane.xlu0 %1194 }
 0xa3b   :  { %4515 = vrcp.f32 %v1195_v13 }
 0xa3e   :  { %v4514_v44 = vpop.eup %4513  ;;  %v1203_v19 = vpop.permute.xlu0 %1202 }
 0xa3f   :  { %v1208_v45 = vsel %vm542_vm2, %v1203_v19, 0  ;;  %v1197_v46 = vmul.f32 %v4514_v44, %v4510_v58  ;;  %v4361_v58 = vld [vmem:[#allocation5 + $0x70] ss:$8 sps:$4 sm:$0xff]  }
 0xa40   :  { %4109 = vmatpush3.bf16.msra.mxu0 %v1208_v45 }
 0xa41   :  { %v1200_v47 = vpack.c.bf16 %v1197_v46, %v1197_v46  ;;  %4120 = vmatprep.subr.bf16.mxu0 %v4678_v4  ;;  %v4366_v46 = vld [vmem:[#allocation5 + $0x64] ss:$8 sps:$4 sm:$0xff]  }
 0xa43   :  { %4111 = vmatmul.mubr.msk.bf16.vlgmr.msra.gmra.mxu0 %vm514_vm3, %v1200_v47  ;;  %v4364_v47 = vld [vmem:[#allocation5 + $0x60] ss:$8 sps:$4 sm:$0xff]  }
 0xa44   :  { %4136 = vmatprep.mubr.msk.bf16.mxu0 %vm4680_vm0, %v4678_v4  ;;  %4121 = vmatpush3.bf16.msra.mxu0 %v4353_v52  ;;  %v4375_v52 = vld [vmem:[#allocation5 + $0x34] ss:$8 sps:$4 sm:$0xff]  }
 0xa45   :  { %4122 = vmatprep.subr.bf16.mxu0 %v4678_v4 }
 0xa48   :  { %v4516_v48 = vpop.eup %4515  ;;  %4123 = vmatpush3.bf16.msra.mxu0 %v4354_v53  ;;  %v4373_v53 = vld [vmem:[#allocation5 + $0x30] ss:$8 sps:$4 sm:$0xff]  }
 0xa49   :  { %v1199_v18 = vmul.f32 %v4516_v48, %v4512_v5  ;;  %4124 = vmatprep.subr.bf16.mxu0 %v4678_v4  ;;  %v4367_v48 = vld [vmem:[#allocation5 + $0x50] ss:$8 sps:$4 sm:$0xff]  }
 0xa4b   :  { %v1201_v49 = vpack.c.bf16 %v1199_v18, %v1199_v18  ;;  %v4370_v18 = vld [vmem:[#allocation5 + $0x40] ss:$8 sps:$4 sm:$0xff]  }
 0xa4c   :  { %4125 = vmatpush3.bf16.msra.mxu0 %v4355_v56  ;;  %v4378_v56 = vld [vmem:[#allocation5 + $0x24] ss:$8 sps:$4 sm:$0xff]  }
 0xa4d   :  { %4117 = vmatmul.mubr.msk.bf16.vlgmr.msra.gmra.mxu1 %vm514_vm3, %v1201_v49  ;;  %4126 = vmatprep.subr.bf16.mxu0 %v4678_v4  ;;  %v4372_v49 = vld [vmem:[#allocation5 + $0x44] ss:$8 sps:$4 sm:$0xff]  }
 0xa4e   :  { %1626 = vmatprep.mubr.bf16.mxu1 %v4679_v27  ;;  %1595 = vmatpush1.bf16.msra.mxu1 %v4361_v58 }
 0xa4f   :  { %1596 = vmatprep.subr.bf16.mxu1 %v4366_v46 }
 0xa50   :  { %4127 = vmatpush3.bf16.msra.mxu0 %v4356_v59  ;;  %v4376_v59 = vld [vmem:[#allocation5 + $0x20] ss:$8 sps:$4 sm:$0xff]  }
 0xa51   :  { %4128 = vmatprep.subr.bf16.mxu0 %v4678_v4 }
 0xa52   :  { %1597 = vmatpush1.bf16.msra.mxu1 %v4364_v47 }
 0xa54   :  { %4129 = vmatpush3.bf16.msra.mxu0 %v4357_v14  ;;  %v4381_v14 = vld [vmem:[#allocation5 + $0x14] ss:$8 sps:$4 sm:$0xff]  }
 0xa55   :  { %4130 = vmatprep.subr.bf16.mxu0 %v4678_v4 }
 0xa58   :  { %4131 = vmatpush3.bf16.msra.mxu0 %v4358_v60  ;;  %v4379_v60 = vld [vmem:[#allocation5 + $0x10] ss:$8 sps:$4 sm:$0xff]  }
 0xa59   :  { %4132 = vmatprep.subr.bf16.mxu0 %v4678_v4 }
 0xa5c   :  { %4133 = vmatpush3.bf16.msra.mxu0 %v4359_v62  ;;  %v4384_v62 = vld [vmem:[#allocation5 + $0x4] ss:$8 sps:$4 sm:$0xff]  }
 0xa5d   :  { %4134 = vmatprep.subr.bf16.mxu0 %v4678_v4 }
 0xa60   :  { %4135 = vmatpush3.bf16.msra.mxu0 %v4360_v0 }
 0xa61   :  { %3910 = vmatprep.subr.bf16.mxu0 %v4385_v31 }
 0xb03   :  { %v1244_v63 = vpop.f32.mrf.mxu0 }
 0xb05   :  { %v4112_v1 = vpop.f32.mrf.mxu0 }
 0xb07   :  { %v1247_v2 = vpop.f32.mrf.mxu0 }
 0xb09   :  { %v4113_v3 = vpop.f32.mrf.mxu0 }
 0xb0d   :  { %v1292_v7 = vpop.f32.mrf.mxu1 }
 0xb0e   :  { %v4301_v8 = vpack.i.bf16 %v1292_v7, %v1244_v63  ;;  %v4382_v63 = vld [vmem:[#allocation5] ss:$8 sps:$4 sm:$0xff]  }
 0xb0f   :  { %v4118_v9 = vpop.f32.mrf.mxu1 }
 0xb10   :  { %4302 = vrot.lane.b32.xlu0 %v4301_v8, %s4681_s26 }
 0xb11   :  { %v1295_v10 = vpop.f32.mrf.mxu1 }
 0xb13   :  { %v4119_v12 = vpop.f32.mrf.mxu1 }
 0xb14   :  { %v3713_v12 = vld [vmem:[%s5414_s8] ss:$0 sm:$0xff] }
 0xb82   :  { %v4303_v28 = vpop.permute.xlu0 %4302 }
 0xb83   :  { %v4305_v32 = vunpack.i.h.bf16 %v4303_v28  ;;  %v4304_v33 = vunpack.i.l.bf16 %v4303_v28 }
 0xb85   :  { %v1329_v36 = vsel %vm1327_vm5, %v1326_v35, %v4305_v32  ;;  %v1328_v21 = vsel %vm1327_vm5, %v1325_v34, %v4304_v33  ;;  %v4386_v32 = vld [vmem:[#allocation7 + $0x38] sm:$0xff]   ;;  %v4387_v33 = vld [vmem:[#allocation7 + $0x70] sm:$0xff]   ;;  %v4389_v35 = vld [vmem:[#allocation7 + $0x68] sm:$0xff]  }
 0xb86   :  { %v1330_v37 = vpack.c.bf16 %v1329_v36, %v1328_v21  ;;  %v4388_v34 = vld [vmem:[#allocation7 + $0x30] sm:$0xff]   ;;  %v4390_v36 = vld [vmem:[#allocation7 + $0x28] sm:$0xff]   ;;  %v4391_v21 = vld [vmem:[#allocation7 + $0x60] sm:$0xff]  }
 0xb88   :  { %4137 = vmatmul.mubr.bf16.vlgmr.msra.gmra.mxu0 %v1330_v37  ;;  %v4392_v37 = vld [vmem:[#allocation7 + $0x20] sm:$0xff]  }
 0xb89   :  { %3911 = vmatpush3.bf16.msra.mxu0 %v4386_v32 }
 0xb8a   :  { %3912 = vmatprep.subr.bf16.mxu0 %v4387_v33 }
 0xb8d   :  { %3913 = vmatpush3.bf16.msra.mxu0 %v4388_v34 }
 0xb8e   :  { %3914 = vmatprep.subr.bf16.mxu0 %v4389_v35 }
 0xb91   :  { %3915 = vmatpush3.bf16.msra.mxu0 %v4390_v36 }
 0xb92   :  { %3916 = vmatprep.subr.bf16.mxu0 %v4391_v21 }
 0xb95   :  { %3917 = vmatpush3.bf16.msra.mxu0 %v4392_v37 }
 0xc48   :  { %v1436_v20 = vpop.f32.mrf.mxu0 }
 0xc49   :  { %v1437_v29 = vadd.f32 %v3704_v38, %v1436_v20  ;;  %v4394_v20 = vld [vmem:[#allocation7 + $0x18] sm:$0xff]  }
 0xc4a   :  { %v4138_v39 = vpop.f32.mrf.mxu0 }
 0xc4b   :  { %v1443_v11 = vadd.f32 %v1437_v29, %v4818_v50  ;;  %v4395_v29 = vld [vmem:[#allocation7 + $0x50] sm:$0xff]  }
 0xc4c   :  { %v1439_v40 = vpop.f32.mrf.mxu0  ;;  %v4396_v39 = vld [vmem:[#allocation7 + $0x10] sm:$0xff]  }
 0xc4d   :  { %v1440_v41 = vadd.f32 %v3704_v38, %v1439_v40  ;;  %1447 = vadd.xlane.f32.xlu1 %v1443_v11  ;;  %v4393_v38 = vld [vmem:[#allocation7 + $0x58] sm:$0xff]   ;;  %v4398_v40 = vld [vmem:[#allocation7 + $0x8] sm:$0xff]  }
 0xc4e   :  { %v4139_v42 = vpop.f32.mrf.mxu0  ;;  %3918 = vmatprep.subr.bf16.mxu0 %v4393_v38 }
 0xc4f   :  { %v1444_v43 = vadd.f32 %v1440_v41, %v4820_v51  ;;  %v4369_v51 = vld [vmem:[#allocation5 + $0x54] ss:$8 sps:$4 sm:$0xff]   ;;  %3919 = vmatpush3.bf16.msra.mxu0 %v4394_v20  ;;  %v4399_v41 = vld [vmem:[#allocation7 + $0x40] sm:$0xff]  }
 0xc50   :  { %1598 = vmatprep.subr.bf16.mxu1 %v4369_v51  ;;  %3920 = vmatprep.subr.bf16.mxu0 %v4395_v29  ;;  %v4400_v42 = vld [vmem:[#allocation7] sm:$0xff]  }
 0xc51   :  { %1449 = vadd.xlane.f32.xlu0 %v1444_v43  ;;  %1599 = vmatpush1.bf16.msra.mxu1 %v4367_v48  ;;  %v3731_v29 = vld [vmem:[%s5419_s13] ss:$0 sm:$0xff] }
 0xc52   :  { %1600 = vmatprep.subr.bf16.mxu1 %v4372_v49 }
 0xc53   :  { %3921 = vmatpush3.bf16.msra.mxu0 %v4396_v39 }
 0xc55   :  { %1601 = vmatpush1.bf16.msra.mxu1 %v4370_v18 }
 0xc56   :  { %1602 = vmatprep.subr.bf16.mxu1 %v4375_v52 }
 0xc59   :  { %1603 = vmatpush1.bf16.msra.mxu1 %v4373_v53 }
 0xc5a   :  { %1604 = vmatprep.subr.bf16.mxu1 %v4378_v56 }
 0xc5d   :  { %1605 = vmatpush1.bf16.msra.mxu1 %v4376_v59 }
 0xc5e   :  { %1606 = vmatprep.subr.bf16.mxu1 %v4381_v14 }
 0xc61   :  { %1607 = vmatpush1.bf16.msra.mxu1 %v4379_v60 }
 0xc62   :  { %1608 = vmatprep.subr.bf16.mxu1 %v4384_v62 }
 0xc65   :  { %1609 = vmatpush1.bf16.msra.mxu1 %v4382_v63 }
 0xcd6   :  { %v1448_v5 = vpop.xlane.xlu1 %1447 }
 0xcd7   :  { %v1451_v15 = vmul.f32 0.0078125, %v1448_v5 }
 0xcd9   :  { %v1453_v17 = vsub.f32 %v1443_v11, %v1451_v15  ;;  %v4397_v11 = vld [vmem:[#allocation7 + $0x48] sm:$0xff]  }
 0xcda   :  { %v1450_v13 = vpop.xlane.xlu0 %1449  ;;  %3922 = vmatprep.subr.bf16.mxu0 %v4397_v11 }
 0xcdb   :  { %v1452_v44 = vmul.f32 0.0078125, %v1450_v13  ;;  %v1455_v19 = vmul.f32 %v1453_v17, %v1453_v17  ;;  %3923 = vmatpush3.bf16.msra.mxu0 %v4398_v40 }
 0xcdc   :  { %3924 = vmatprep.subr.bf16.mxu0 %v4399_v41 }
 0xcdd   :  { %v1454_v45 = vsub.f32 %v1444_v43, %v1452_v44  ;;  %1457 = vadd.xlane.f32.xlu0 %v1455_v19  ;;  %v1502_v43 = vld [vmem:[%s5417_s11] sm:$0x3] }
 0xcde   :  { %v1507_v58 = vrot.slane %v1502_v43, %v4839_v61  ;;  %v1511_v6 = vrot.slane %v1502_v43, %v4831_v55 }
 0xcdf   :  { %v1456_v50 = vmul.f32 %v1454_v45, %v1454_v45  ;;  %3925 = vmatpush3.bf16.msra.mxu0 %v4400_v42 }
 0xce0   :  { %4140 = vmatprep.subr.bf16.mxu0 %v4678_v4 }
 0xce1   :  { %1459 = vadd.xlane.f32.xlu0 %v1456_v50 }
 0xd66   :  { %v1458_v0 = vpop.xlane.xlu0 %1457 }
 0xd67   :  { %v1461_v1 = vmul.f32 0.0078125, %v1458_v0 }
 0xd69   :  { %v1463_v2 = vadd.f32 1e-12, %v1461_v1 }
 0xd6a   :  { %v1460_v3 = vpop.xlane.xlu0 %1459 }
 0xd6b   :  { %4517 = vrsqrt.f32 %v1463_v2  ;;  %v1462_v7 = vmul.f32 0.0078125, %v1460_v3 }
 0xd6d   :  { %v1464_v8 = vadd.f32 1e-12, %v1462_v7 }
 0xd6f   :  { %4519 = vrsqrt.f32 %v1464_v8 }
 0xd78   :  { %v4518_v9 = vpop.eup %4517 }
 0xd79   :  { %v1467_v10 = vmul.f32 %v4518_v9, %v1453_v17 }
 0xd7b   :  { %v1475_v23 = vmul.f32 %v3713_v12, %v1467_v10 }
 0xd7c   :  { %v4520_v16 = vpop.eup %4519 }
 0xd7d   :  { %v1468_v22 = vmul.f32 %v4520_v16, %v1454_v45  ;;  %v5080_v26 = vadd.f32 %v3714_v24, %v1475_v23 }
 0xd7f   :  { %v1476_v25 = vmul.f32 %v3713_v12, %v1468_v22 }
 0xd81   :  { %v5082_v28 = vadd.f32 %v3714_v24, %v1476_v25 }
 0xd83   :  { %v1485_v30 = vpack.c.bf16 %v5082_v28, %v5080_v26 }
 0xd85   :  { %1627 = vmatmul.mubr.bf16.vlgmr.msra.gmra.mxu1 %v1485_v30 }
 0xd86   :  { %2105 = vmatprep.mubr.bf16.mxu1 %v4679_v27 }
 0xe45   :  { %v1628_v5 = vpop.f32.mrf.mxu1 }
 0xe46   :  { %v1629_v15 = vadd.f32 %v1628_v5, %v1507_v58 }
 0xe47   :  { %v1630_v17 = vpop.f32.mrf.mxu1 }
 0xe48   :  { %v1641_v13 = vmul.f32 0.044715, %v1629_v15  ;;  %v1631_v44 = vadd.f32 %v1630_v17, %v1511_v6  ;;  %v1637_v33 = vmul.f32 0.5, %v1629_v15  ;;  %v4403_v17 = vld [vmem:[#allocation2 + $0x16c] ss:$12 sps:$4 sm:$0xff]  }
 0xe49   :  { %v1632_v19 = vpop.f32.mrf.mxu1  ;;  %2073 = vmatprep.subr.bf16.mxu1 %v4403_v17 }
 0xe4a   :  { %v1645_v45 = vmul.f32 %v1641_v13, %v1629_v15  ;;  %v1642_v50 = vmul.f32 0.044715, %v1631_v44  ;;  %v1633_v46 = vadd.f32 %v1632_v19, %v1507_v58  ;;  %v1638_v30 = vmul.f32 0.5, %v1631_v44  ;;  %v4404_v13 = vld [vmem:[#allocation2 + $0x170] ss:$12 sps:$4 sm:$0xff]  }
 0xe4b   :  { %v1634_v47 = vpop.f32.mrf.mxu1 }
 0xe4c   :  { %v1649_v51 = vmul.f32 %v1645_v45, %v1629_v15  ;;  %v1646_v48 = vmul.f32 %v1642_v50, %v1631_v44  ;;  %v1643_v18 = vmul.f32 0.044715, %v1633_v46  ;;  %v1635_v49 = vadd.f32 %v1634_v47, %v1511_v6 }
 0xe4d   :  { %v1639_v24 = vmul.f32 0.5, %v1633_v46 }
 0xe4e   :  { %v1653_v52 = vadd.f32 %v1649_v51, %v1629_v15  ;;  %v1650_v53 = vmul.f32 %v1646_v48, %v1631_v44  ;;  %v1647_v56 = vmul.f32 %v1643_v18, %v1633_v46  ;;  %v1644_v59 = vmul.f32 0.044715, %v1635_v49  ;;  %v4401_v15 = vld [vmem:[#allocation2 + $0x168] ss:$12 sps:$4 sm:$0xff]   ;;  %v4405_v48 = vld [vmem:[#allocation2 + $0x150] ss:$12 sps:$4 sm:$0xff]  }
 0xe4f   :  { %v1640_v31 = vmul.f32 0.5, %v1635_v49  ;;  %2074 = vmatpush1.bf16.msra.mxu1 %v4401_v15  ;;  %v4407_v51 = vld [vmem:[#allocation2 + $0x154] ss:$12 sps:$4 sm:$0xff]   ;;  %v4408_v18 = vld [vmem:[#allocation2 + $0x158] ss:$12 sps:$4 sm:$0xff]  }
 0xe50   :  { %v1651_v14 = vmul.f32 %v1647_v56, %v1633_v46  ;;  %v1648_v60 = vmul.f32 %v1644_v59, %v1635_v49  ;;  %v1654_v62 = vadd.f32 %v1650_v53, %v1631_v44  ;;  %v1657_v63 = vmul.f32 0.7978846, %v1653_v52  ;;  %2075 = vmatprep.subr.bf16.mxu1 %v4407_v51  ;;  %v4409_v52 = vld [vmem:[#allocation2 + $0x138] ss:$12 sps:$4 sm:$0xff]   ;;  %v4412_v53 = vld [vmem:[#allocation2 + $0x140] ss:$12 sps:$4 sm:$0xff]  }
 0xe51   :  { %v4413_v56 = vld [vmem:[#allocation2 + $0x120] ss:$12 sps:$4 sm:$0xff]   ;;  %v4415_v59 = vld [vmem:[#allocation2 + $0x124] ss:$12 sps:$4 sm:$0xff]  }
 0xe52   :  { %v1655_v0 = vadd.f32 %v1651_v14, %v1633_v46  ;;  %v1652_v1 = vmul.f32 %v1648_v60, %v1635_v49  ;;  %v1658_v2 = vmul.f32 0.7978846, %v1654_v62  ;;  %v4416_v14 = vld [vmem:[#allocation2 + $0x128] ss:$12 sps:$4 sm:$0xff]   ;;  %v4419_v60 = vld [vmem:[#allocation2 + $0x10c] ss:$12 sps:$4 sm:$0xff]  }
 0xe53   :  { %2076 = vmatpush1.bf16.msra.mxu1 %v4405_v48  ;;  %v4417_v62 = vld [vmem:[#allocation2 + $0x108] ss:$12 sps:$4 sm:$0xff]  }
 0xe54   :  { %v1659_v3 = vmul.f32 0.7978846, %v1655_v0  ;;  %v1656_v7 = vadd.f32 %v1652_v1, %v1635_v49  ;;  %4521 = vtanh.f32 %v1658_v2  ;;  %v4411_v49 = vld [vmem:[#allocation2 + $0x13c] ss:$12 sps:$4 sm:$0xff]   ;;  %v4423_v0 = vld [vmem:[#allocation2 + $0xf4] ss:$12 sps:$4 sm:$0xff]  }
 0xe55   :  { %4523 = vtanh.f32 %v1657_v63  ;;  %2077 = vmatprep.subr.bf16.mxu1 %v4411_v49  ;;  %v4420_v63 = vld [vmem:[#allocation2 + $0x110] ss:$12 sps:$4 sm:$0xff]   ;;  %v4424_v2 = vld [vmem:[#allocation2 + $0xf8] ss:$12 sps:$4 sm:$0xff]  }
 0xe56   :  { %4525 = vtanh.f32 %v1659_v3  ;;  %v1660_v8 = vmul.f32 0.7978846, %v1656_v7  ;;  %v4421_v1 = vld [vmem:[#allocation2 + $0xf0] ss:$12 sps:$4 sm:$0xff]   ;;  %v4425_v7 = vld [vmem:[#allocation2 + $0xd8] ss:$12 sps:$4 sm:$0xff]  }
 0xe57   :  { %2078 = vmatpush1.bf16.msra.mxu1 %v4409_v52  ;;  %v4427_v3 = vld [vmem:[#allocation2 + $0xdc] ss:$12 sps:$4 sm:$0xff]  }
 0xe58   :  { %4527 = vtanh.f32 %v1660_v8  ;;  %2079 = vmatprep.subr.bf16.mxu1 %v4415_v59  ;;  %v4428_v8 = vld [vmem:[#allocation2 + $0xe0] ss:$12 sps:$4 sm:$0xff]  }
 0xe5b   :  { %2080 = vmatpush1.bf16.msra.mxu1 %v4413_v56 }
 0xe5c   :  { %2081 = vmatprep.subr.bf16.mxu1 %v4419_v60 }
 0xe5f   :  { %2082 = vmatpush1.bf16.msra.mxu1 %v4417_v62 }
 0xe60   :  { %2083 = vmatprep.subr.bf16.mxu1 %v4423_v0  ;;  %v5181_v0 = vld [vmem:[%s5407_s1 + $0x1] ss:$0 sm:$0xff] }
 0xe61   :  { %v4522_v9 = vpop.eup %4521 }
 0xe62   :  { %v4524_v10 = vpop.eup %4523  ;;  %v1666_v16 = vadd.f32 1.0, %v4522_v9  ;;  %v4431_v9 = vld [vmem:[#allocation2 + $0xc4] ss:$12 sps:$4 sm:$0xff]  }
 0xe63   :  { %v4526_v12 = vpop.eup %4525  ;;  %v1665_v25 = vadd.f32 1.0, %v4524_v10  ;;  %2084 = vmatpush1.bf16.msra.mxu1 %v4421_v1  ;;  %v4429_v10 = vld [vmem:[#allocation2 + $0xc0] ss:$12 sps:$4 sm:$0xff]  }
 0xe64   :  { %v1667_v22 = vadd.f32 1.0, %v4526_v12  ;;  %v1670_v35 = vmul.f32 %v1666_v16, %v1638_v30  ;;  %2085 = vmatprep.subr.bf16.mxu1 %v4427_v3  ;;  %v4432_v12 = vld [vmem:[#allocation2 + $0xc8] ss:$12 sps:$4 sm:$0xff]  }
 0xe65   :  { %v4528_v23 = vpop.eup %4527  ;;  %v1669_v21 = vmul.f32 %v1665_v25, %v1637_v33  ;;  %v3748_v33 = vld [vmem:[%s5420_s14] ss:$0 sm:$0xff] }
 0xe66   :  { %v1668_v32 = vadd.f32 1.0, %v4528_v23  ;;  %v1671_v34 = vmul.f32 %v1667_v22, %v1639_v24 }
 0xe67   :  { %2086 = vmatpush1.bf16.msra.mxu1 %v4425_v7 }
 0xe68   :  { %v1672_v36 = vmul.f32 %v1668_v32, %v1640_v31  ;;  %v1673_v38 = vpack.c.bf16 %v1671_v34, %v1669_v21  ;;  %2087 = vmatprep.subr.bf16.mxu1 %v4431_v9  ;;  %v3749_v21 = vld [vmem:[%s5421_s15] ss:$0 sm:$0xff] }
 0xe6a   :  { %v1674_v37 = vpack.c.bf16 %v1672_v36, %v1670_v35 }
 0xe6b   :  { %2088 = vmatpush1.bf16.msra.mxu1 %v4429_v10 }
 0xe6c   :  { %1842 = vmatprep.mubr.bf16.mxu0 %v1674_v37  ;;  %4160 = vmatprep.subr.bf16.mxu1 %v4678_v4 }
 0xe6d   :  { %1843 = vmatmul.mubr.bf16.vlgmr.msra.gmra.mxu0 %v1673_v38 }
 0xe6e   :  { %4156 = vmatprep.mubr.msk.bf16.mxu0 %vm4680_vm0, %v4678_v4  ;;  %4141 = vmatpush3.bf16.msra.mxu0 %v4404_v13 }
 0xe6f   :  { %4142 = vmatprep.subr.bf16.mxu0 %v4678_v4 }
 0xe72   :  { %4143 = vmatpush3.bf16.msra.mxu0 %v4408_v18 }
 0xe73   :  { %4144 = vmatprep.subr.bf16.mxu0 %v4678_v4 }
 0xe76   :  { %4145 = vmatpush3.bf16.msra.mxu0 %v4412_v53  ;;  %v5174_v53 = vld [vmem:[%s5407_s1] ss:$0 sm:$0xff] }
 0xe77   :  { %4146 = vmatprep.subr.bf16.mxu0 %v4678_v4 }
 0xe7a   :  { %4147 = vmatpush3.bf16.msra.mxu0 %v4416_v14 }
 0xe7b   :  { %4148 = vmatprep.subr.bf16.mxu0 %v4678_v4 }
 0xe7e   :  { %4149 = vmatpush3.bf16.msra.mxu0 %v4420_v63 }
 0xe7f   :  { %4150 = vmatprep.subr.bf16.mxu0 %v4678_v4 }
 0xe82   :  { %4151 = vmatpush3.bf16.msra.mxu0 %v4424_v2 }
 0xe83   :  { %4152 = vmatprep.subr.bf16.mxu0 %v4678_v4 }
 0xe86   :  { %4153 = vmatpush3.bf16.msra.mxu0 %v4428_v8 }
 0xe87   :  { %4154 = vmatprep.subr.bf16.mxu0 %v4678_v4 }
 0xe8a   :  { %4155 = vmatpush3.bf16.msra.mxu0 %v4432_v12 }
 0xe8b   :  { %4184 = vmatprep.subr.bf16.mxu0 %v4678_v4 }
 0xf2d   :  { %v3926_v20 = vpop.f32.mrf.mxu0 }
 0xf2f   :  { %v3927_v39 = vpop.f32.mrf.mxu0 }
 0xf30   :  { %v3928_v11 = vadd.f32 %v3927_v39, %v3926_v20  ;;  %v3750_v39 = vld [vmem:[%s5411_s5 + $0x3] sm:$0x7] }
 0xf31   :  { %v3929_v40 = vpop.f32.mrf.mxu0  ;;  %v1933_v17 = vrot.slane %v3750_v39, %v4839_v61 }
 0xf32   :  { %v1845_v41 = vadd.f32 %v3928_v11, %v3731_v29  ;;  %v1937_v11 = vrot.slane %v3750_v39, %v4831_v55 }
 0xf33   :  { %v3930_v42 = vpop.f32.mrf.mxu0 }
 0xf34   :  { %v3931_v43 = vadd.f32 %v3930_v42, %v3929_v40  ;;  %v1851_v58 = vadd.f32 %v1845_v41, %v5080_v26 }
 0xf36   :  { %v1848_v6 = vadd.f32 %v3931_v43, %v3731_v29  ;;  %1855 = vadd.xlane.f32.xlu1 %v1851_v58 }
 0xf38   :  { %v1852_v5 = vadd.f32 %v1848_v6, %v5082_v28 }
 0xf3a   :  { %1857 = vadd.xlane.f32.xlu0 %v1852_v5 }
 0xfbf   :  { %v1856_v44 = vpop.xlane.xlu1 %1855 }
 0xfc0   :  { %v1859_v19 = vmul.f32 0.0078125, %v1856_v44 }
 0xfc2   :  { %v5101_v45 = vsub.f32 %v1851_v58, %v1859_v19  ;;  %v1941_v58 = vrot.slane %v3750_v39, %v198_v57 }
 0xfc3   :  { %v1858_v50 = vpop.xlane.xlu0 %1857 }
 0xfc4   :  { %v1860_v46 = vmul.f32 0.0078125, %v1858_v50  ;;  %v1863_v26 = vmul.f32 %v5101_v45, %v5101_v45 }
 0xfc6   :  { %v5105_v47 = vsub.f32 %v1852_v5, %v1860_v46  ;;  %1865 = vadd.xlane.f32.xlu1 %v1863_v26 }
 0xfc8   :  { %v1864_v28 = vmul.f32 %v5105_v47, %v5105_v47 }
 0xfca   :  { %1867 = vadd.xlane.f32.xlu0 %v1864_v28 }
0x104f   :  { %v1866_v16 = vpop.xlane.xlu1 %1865 }
0x1050   :  { %v1869_v22 = vmul.f32 0.0078125, %v1866_v16 }
0x1052   :  { %v1871_v23 = vadd.f32 1e-12, %v1869_v22 }
0x1053   :  { %v1868_v24 = vpop.xlane.xlu0 %1867 }
0x1054   :  { %4529 = vrsqrt.f32 %v1871_v23  ;;  %v1870_v25 = vmul.f32 0.0078125, %v1868_v24 }
0x1056   :  { %v1872_v30 = vadd.f32 1e-12, %v1870_v25 }
0x1058   :  { %4531 = vrsqrt.f32 %v1872_v30 }
0x1061   :  { %v4530_v31 = vpop.eup %4529 }
0x1062   :  { %v1875_v32 = vmul.f32 %v4530_v31, %v5101_v45 }
0x1064   :  { %v1883_v36 = vmul.f32 %v3748_v33, %v1875_v32 }
0x1065   :  { %v4532_v34 = vpop.eup %4531 }
0x1066   :  { %v1876_v35 = vmul.f32 %v4532_v34, %v5105_v47  ;;  %v5125_v38 = vadd.f32 %v3749_v21, %v1883_v36 }
0x1068   :  { %v1884_v37 = vmul.f32 %v3748_v33, %v1876_v35 }
0x106a   :  { %v5127_v20 = vadd.f32 %v3749_v21, %v1884_v37 }
0x106c   :  { %v1893_v29 = vpack.c.bf16 %v5127_v20, %v5125_v38 }
0x106e   :  { %2106 = vmatmul.mubr.bf16.vlgmr.msra.gmra.mxu1 %v1893_v29  ;;  %4157 = vmatmul.mubr.bf16.vlgmr.msra.gmra.mxu0 %v1893_v29 }
0x106f   :  { %4162 = vmatprep.mubr.msk.bf16.mxu1 %vm4680_vm0, %v4678_v4  ;;  %4186 = vmatprep.mubr.msk.bf16.mxu0 %vm4680_vm0, %v4678_v4 }
0x112e   :  { %v2107_v40 = vpop.f32.mrf.mxu1  ;;  %v2150_v41 = vpop.f32.mrf.mxu0 }
0x112f   :  { %v2108_v26 = vadd.f32 %v2107_v40, %v1933_v17  ;;  %v2151_v47 = vadd.f32 %v2150_v41, %v1941_v58 }
0x1130   :  { %v2109_v42 = vpop.f32.mrf.mxu1  ;;  %v4158_v43 = vpop.f32.mrf.mxu0 }
0x1131   :  { %v2110_v6 = vadd.f32 %v2109_v42, %v1937_v11  ;;  %v5151_v57 = vpack.c.bf16 %v2108_v26, %v2108_v26  ;;  %v5160_v48 = vpack.c.bf16 %v2151_v47, %v2151_v47 }
0x1132   :  { %v2111_v5 = vpop.f32.mrf.mxu1  ;;  %v2153_v15 = vpop.f32.mrf.mxu0 }
0x1133   :  { %v5142_v13 = vpack.c.bf16 %v2110_v6, %v2110_v6  ;;  %v5144_v44 = vadd.f32 %v2153_v15, %v1941_v58  ;;  %v2112_v51 = vadd.f32 %v2111_v5, %v1933_v17  ;;  %v2283_v49 = vsel %vm542_vm2, %v5160_v48, 0 }
0x1134   :  { %v2113_v19 = vpop.f32.mrf.mxu1  ;;  %v4159_v45 = vpop.f32.mrf.mxu0 }
0x1135   :  { %v2114_v50 = vadd.f32 %v2113_v19, %v1937_v11  ;;  %v2167_v46 = vsel %vm421_vm1, %v5142_v13, 0  ;;  %v5162_v18 = vpack.c.bf16 %v2112_v51, %v2112_v51  ;;  %v5202_v37 = vpack.c.bf16 %v5144_v44, %v5144_v44 }
0x1136   :  { %4161 = vmatpush3.bf16.xpose.msra.mxu1 %v2167_v46 }
0x1137   :  { %4166 = vmatprep.subr.bf16.mxu1 %v4678_v4  ;;  %v5149_v54 = vpack.c.bf16 %v2114_v50, %v2114_v50  ;;  %v2329_v11 = vsel %vm542_vm2, %v5202_v37, 0 }
0x1139   :  { %v2213_v28 = vsel %vm421_vm1, %v5149_v54, 0 }
0x113d   :  { %4163 = vmatmul.mubr.msk.bf16.vlgmr.msra.gmra.mxu1 %vm421_vm1, %v5151_v57 }
0x113e   :  { %4167 = vmatpush3.bf16.xpose.msra.mxu1 %v2213_v28  ;;  %4168 = vmatprep.mubr.msk.bf16.mxu1 %vm4680_vm0, %v4678_v4 }
0x113f   :  { %4172 = vmatprep.subr.bf16.mxu1 %v4678_v4 }
0x1145   :  { %4169 = vmatmul.mubr.msk.bf16.vlgmr.msra.gmra.mxu1 %vm421_vm1, %v5162_v18 }
0x1146   :  { %4173 = vmatpush3.bf16.msra.mxu1 %v2283_v49  ;;  %4174 = vmatprep.mubr.msk.bf16.mxu1 %vm4680_vm0, %v4678_v4 }
0x1147   :  { %4178 = vmatprep.subr.bf16.mxu1 %v4678_v4 }
0x11fd   :  { %v2203_v52 = vpop.f32.mrf.mxu1 }
0x11fe   :  { %v2204_v56 = vadd.f32 %v5174_v53, %v2203_v52 }
0x11ff   :  { %v4164_v59 = vpop.f32.mrf.mxu1 }
0x1200   :  { %v2255_v14 = vsel %vm514_vm3, %v2204_v56, -inf }
0x1201   :  { %2256 = vmax.xlane.f32.xlu1 %v2255_v14  ;;  %v2206_v60 = vpop.f32.mrf.mxu1 }
0x1203   :  { %v4165_v62 = vpop.f32.mrf.mxu1 }
0x1205   :  { %v2249_v63 = vpop.f32.mrf.mxu1 }
0x1206   :  { %v2250_v1 = vadd.f32 %v5181_v0, %v2249_v63 }
0x1207   :  { %v4170_v2 = vpop.f32.mrf.mxu1 }
0x1208   :  { %v2258_v3 = vsel %vm514_vm3, %v2250_v1, -inf }
0x1209   :  { %2259 = vmax.xlane.f32.xlu0 %v2258_v3  ;;  %v2252_v7 = vpop.f32.mrf.mxu1 }
0x120b   :  { %v4171_v8 = vpop.f32.mrf.mxu1 }
0x128a   :  { %v2257_v9 = vpop.xlane.xlu1 %2256 }
0x128b   :  { %v2261_v10 = vsub.f32 %v2204_v56, %v2257_v9 }
0x128d   :  { %v2263_v12 = vmul.f32 1.442695, %v2261_v10 }
0x128f   :  { %4533 = vpow2.f32 %v2263_v12 }
0x1292   :  { %v2260_v16 = vpop.xlane.xlu0 %2259 }
0x1293   :  { %v2262_v22 = vsub.f32 %v2250_v1, %v2260_v16 }
0x1295   :  { %v2265_v23 = vmul.f32 1.442695, %v2262_v22 }
0x1297   :  { %4535 = vpow2.f32 %v2265_v23 }
0x129c   :  { %v4534_v24 = vpop.eup %4533 }
0x129d   :  { %v2267_v25 = vsel %vm514_vm3, %v4534_v24, 0.0 }
0x129e   :  { %2268 = vadd.xlane.f32.xlu1 %v2267_v25 }
0x12a4   :  { %v4536_v30 = vpop.eup %4535 }
0x12a5   :  { %v2270_v31 = vsel %vm514_vm3, %v4536_v30, 0.0 }
0x12a6   :  { %2271 = vadd.xlane.f32.xlu0 %v2270_v31 }
0x12af   :  { %2375 = vrot.lane.b32.xlu1 %v5142_v13, %s4681_s26 }
0x12b3   :  { %2372 = vrot.lane.b32.xlu1 %v5151_v57, %s4681_s26 }
0x12b7   :  { %2424 = vrot.lane.b32.xlu1 %v5162_v18, %s4681_s26 }
0x12bc   :  { %2427 = vrot.lane.b32.xlu0 %v5149_v54, %s4681_s26 }
0x1327   :  { %v2269_v32 = vpop.xlane.xlu1 %2268 }
0x1328   :  { %4537 = vrcp.f32 %v2269_v32 }
0x132b   :  { %v2376_v33 = vpop.permute.xlu1 %2375 }
0x132c   :  { %v2381_v34 = vsel %vm421_vm1, %v2376_v33, 0 }
0x132d   :  { %4185 = vmatpush3.bf16.xpose.msra.mxu0 %v2381_v34 }
0x132e   :  { %4196 = vmatprep.subr.bf16.mxu0 %v4678_v4 }
0x132f   :  { %v2272_v35 = vpop.xlane.xlu0 %2271  ;;  %v2373_v36 = vpop.permute.xlu1 %2372 }
0x1330   :  { %4539 = vrcp.f32 %v2272_v35 }
0x1333   :  { %v2428_v42 = vpop.permute.xlu0 %2427  ;;  %v2425_v6 = vpop.permute.xlu1 %2424 }
0x1334   :  { %4187 = vmatmul.mubr.msk.bf16.vlgmr.msra.gmra.mxu0 %vm421_vm1, %v2373_v36  ;;  %v2433_v58 = vsel %vm421_vm1, %v2428_v42, 0 }
0x1335   :  { %v4538_v21 = vpop.eup %4537  ;;  %4198 = vmatprep.mubr.msk.bf16.mxu0 %vm4680_vm0, %v4678_v4 }
0x1336   :  { %v2274_v29 = vmul.f32 %v4538_v21, %v4534_v24 }
0x1338   :  { %v2277_v39 = vpack.c.bf16 %v2274_v29, %v2274_v29 }
0x133a   :  { %4175 = vmatmul.mubr.msk.bf16.vlgmr.msra.gmra.mxu1 %vm514_vm3, %v2277_v39 }
0x133b   :  { %4179 = vmatpush3.bf16.msra.mxu1 %v2329_v11  ;;  %4180 = vmatprep.mubr.msk.bf16.mxu1 %vm4680_vm0, %v4678_v4 }
0x133c   :  { %4190 = vmatprep.subr.bf16.mxu1 %v4678_v4 }
0x133d   :  { %v4540_v40 = vpop.eup %4539 }
0x133e   :  { %v2276_v41 = vmul.f32 %v4540_v40, %v4536_v30 }
0x1340   :  { %v2278_v43 = vpack.c.bf16 %v2276_v41, %v2276_v41 }
0x1342   :  { %4181 = vmatmul.mubr.msk.bf16.vlgmr.msra.gmra.mxu1 %vm514_vm3, %v2278_v43 }
0x1343   :  { %4191 = vmatpush3.bf16.xpose.msra.mxu1 %v2433_v58  ;;  %4192 = vmatprep.mubr.msk.bf16.mxu1 %vm4680_vm0, %v4678_v4 }
0x1344   :  { %4202 = vmatprep.subr.bf16.mxu1 %v4678_v4 }
0x134a   :  { %4193 = vmatmul.mubr.msk.bf16.vlgmr.msra.gmra.mxu1 %vm421_vm1, %v2425_v6 }
0x134b   :  { %4204 = vmatprep.mubr.msk.bf16.mxu1 %vm4680_vm0, %v4678_v4 }
0x13f4   :  { %v2417_v5 = vpop.f32.mrf.mxu0 }
0x13f5   :  { %v2418_v15 = vadd.f32 %v5174_v53, %v2417_v5 }
0x13f6   :  { %v4188_v17 = vpop.f32.mrf.mxu0 }
0x13f7   :  { %v2475_v44 = vsel %vm514_vm3, %v2418_v15, -inf }
0x13f8   :  { %2476 = vmax.xlane.f32.xlu1 %v2475_v44  ;;  %v2420_v19 = vpop.f32.mrf.mxu0 }
0x13fa   :  { %v5220_v45 = vpop.f32.mrf.mxu1  ;;  %v4189_v50 = vpop.f32.mrf.mxu0 }
0x13fc   :  { %v4176_v46 = vpop.f32.mrf.mxu1 }
0x13fe   :  { %v2322_v26 = vpop.f32.mrf.mxu1 }
0x1400   :  { %v4177_v47 = vpop.f32.mrf.mxu1 }
0x1402   :  { %v5222_v28 = vpop.f32.mrf.mxu1 }
0x1404   :  { %v4182_v51 = vpop.f32.mrf.mxu1 }
0x1406   :  { %v2368_v49 = vpop.f32.mrf.mxu1 }
0x1408   :  { %v4183_v52 = vpop.f32.mrf.mxu1 }
0x1409   :  { %2500 = vrot.lane.b32.xlu1 %v5160_v48, %s4681_s26 }
0x140a   :  { %v2469_v56 = vpop.f32.mrf.mxu1 }
0x140b   :  { %v2470_v59 = vadd.f32 %v5181_v0, %v2469_v56 }
0x140c   :  { %v4194_v14 = vpop.f32.mrf.mxu1 }
0x140d   :  { %2599 = vrot.lane.b32.xlu1 %v5142_v13, %s4676_s22  ;;  %v2478_v60 = vsel %vm514_vm3, %v2470_v59, -inf }
0x140e   :  { %2479 = vmax.xlane.f32.xlu0 %v2478_v60  ;;  %v2472_v62 = vpop.f32.mrf.mxu1 }
0x1410   :  { %v4195_v63 = vpop.f32.mrf.mxu1 }
0x1411   :  { %2649 = vrot.lane.b32.xlu1 %v5149_v54, %s4676_s22 }
0x1415   :  { %2597 = vrot.lane.b32.xlu1 %v5151_v57, %s4676_s22 }
0x1481   :  { %v2477_v1 = vpop.xlane.xlu1 %2476 }
0x1482   :  { %v2481_v2 = vsub.f32 %v2418_v15, %v2477_v1 }
0x1484   :  { %v2483_v3 = vmul.f32 1.442695, %v2481_v2 }
0x1485   :  { %v2501_v7 = vpop.permute.xlu1 %2500 }
0x1486   :  { %4541 = vpow2.f32 %v2483_v3  ;;  %v2506_v8 = vsel %vm542_vm2, %v2501_v7, 0 }
0x1487   :  { %4197 = vmatpush3.bf16.msra.mxu0 %v2506_v8 }
0x1488   :  { %4208 = vmatprep.subr.bf16.mxu0 %v4678_v4 }
0x1489   :  { %v2600_v31 = vpop.permute.xlu1 %2599 }
0x148a   :  { %v2605_v34 = vsel %vm421_vm1, %v2600_v31, 0 }
0x148d   :  { %v2650_v35 = vpop.permute.xlu1 %2649 }
0x148e   :  { %v2655_v42 = vsel %vm421_vm1, %v2650_v35, 0 }
0x1491   :  { %v2598_v21 = vpop.permute.xlu1 %2597 }
0x1493   :  { %v4542_v9 = vpop.eup %4541 }
0x1494   :  { %v2487_v10 = vsel %vm514_vm3, %v4542_v9, 0.0 }
0x1495   :  { %2488 = vadd.xlane.f32.xlu0 %v2487_v10 }
0x1497   :  { %v2480_v12 = vpop.xlane.xlu0 %2479 }
0x1498   :  { %v2482_v16 = vsub.f32 %v2470_v59, %v2480_v12 }
0x149a   :  { %v2485_v22 = vmul.f32 1.442695, %v2482_v16 }
0x149c   :  { %4543 = vpow2.f32 %v2485_v22 }
0x14a9   :  { %v4544_v23 = vpop.eup %4543 }
0x14aa   :  { %v2490_v24 = vsel %vm514_vm3, %v4544_v23, 0.0 }
0x14ab   :  { %2491 = vadd.xlane.f32.xlu0 %v2490_v24 }
0x14c1   :  { %2549 = vrot.lane.b32.xlu0 %v5202_v37, %s4681_s26 }
0x14c5   :  { %2647 = vrot.lane.b32.xlu0 %v5162_v18, %s4676_s22 }
0x151e   :  { %v2489_v25 = vpop.xlane.xlu0 %2488 }
0x151f   :  { %4545 = vrcp.f32 %v2489_v25 }
0x152c   :  { %v4546_v30 = vpop.eup %4545 }
0x152d   :  { %v2494_v32 = vmul.f32 %v4546_v30, %v4542_v9 }
0x152f   :  { %v2497_v33 = vpack.c.bf16 %v2494_v32, %v2494_v32 }
0x1531   :  { %4199 = vmatmul.mubr.msk.bf16.vlgmr.msra.gmra.mxu0 %vm514_vm3, %v2497_v33 }
0x1532   :  { %4209 = vmatpush3.bf16.xpose.msra.mxu0 %v2605_v34  ;;  %4210 = vmatprep.mubr.msk.bf16.mxu0 %vm4680_vm0, %v4678_v4 }
0x1533   :  { %4220 = vmatprep.subr.bf16.mxu0 %v4678_v4 }
0x1534   :  { %v2492_v36 = vpop.xlane.xlu0 %2491 }
0x1535   :  { %4547 = vrcp.f32 %v2492_v36 }
0x1538   :  { %v2550_v29 = vpop.permute.xlu0 %2549 }
0x1539   :  { %v2555_v39 = vsel %vm542_vm2, %v2550_v29, 0  ;;  %4211 = vmatmul.mubr.msk.bf16.vlgmr.msra.gmra.mxu0 %vm421_vm1, %v2598_v21 }
0x153a   :  { %4203 = vmatpush3.bf16.msra.mxu1 %v2555_v39  ;;  %4222 = vmatprep.mubr.msk.bf16.mxu0 %vm4680_vm0, %v4678_v4 }
0x153b   :  { %4214 = vmatprep.subr.bf16.mxu1 %v4678_v4 }
0x153c   :  { %v2648_v43 = vpop.permute.xlu0 %2647 }
0x1542   :  { %v4548_v11 = vpop.eup %4547 }
0x1543   :  { %v2496_v40 = vmul.f32 %v4548_v11, %v4544_v23 }
0x1545   :  { %v2498_v41 = vpack.c.bf16 %v2496_v40, %v2496_v40 }
0x1547   :  { %4205 = vmatmul.mubr.msk.bf16.vlgmr.msra.gmra.mxu1 %vm514_vm3, %v2498_v41 }
0x1548   :  { %4215 = vmatpush3.bf16.xpose.msra.mxu1 %v2655_v42  ;;  %4216 = vmatprep.mubr.msk.bf16.mxu1 %vm4680_vm0, %v4678_v4 }
0x1549   :  { %4226 = vmatprep.subr.bf16.mxu1 %v4678_v4 }
0x154f   :  { %4217 = vmatmul.mubr.msk.bf16.vlgmr.msra.gmra.mxu1 %vm421_vm1, %v2648_v43 }
0x1550   :  { %4228 = vmatprep.mubr.msk.bf16.mxu1 %vm4680_vm0, %v4678_v4 }
0x15f1   :  { %v5260_v58 = vpop.f32.mrf.mxu0 }
0x15f3   :  { %v4200_v6 = vpop.f32.mrf.mxu0 }
0x15f5   :  { %v2545_v5 = vpop.f32.mrf.mxu0 }
0x15f7   :  { %v4201_v15 = vpop.f32.mrf.mxu0 }
0x15f9   :  { %v2641_v17 = vpop.f32.mrf.mxu0 }
0x15fa   :  { %v2642_v44 = vadd.f32 %v5174_v53, %v2641_v17 }
0x15fb   :  { %v4212_v19 = vpop.f32.mrf.mxu0 }
0x15fc   :  { %v2697_v50 = vsel %vm514_vm3, %v2642_v44, -inf }
0x15fd   :  { %2698 = vmax.xlane.f32.xlu1 %v2697_v50  ;;  %v2644_v46 = vpop.f32.mrf.mxu0 }
0x15ff   :  { %v4213_v26 = vpop.f32.mrf.mxu0 }
0x1607   :  { %v5264_v47 = vpop.f32.mrf.mxu1 }
0x1608   :  { %v4306_v51 = vpack.i.bf16 %v5264_v47, %v5260_v58 }
0x1609   :  { %v4206_v49 = vpop.f32.mrf.mxu1 }
0x160b   :  { %v2594_v52 = vpop.f32.mrf.mxu1 }
0x160d   :  { %v4207_v56 = vpop.f32.mrf.mxu1 }
0x160e   :  { %2721 = vrot.lane.b32.xlu1 %v5160_v48, %s4676_s22 }
0x160f   :  { %v2691_v59 = vpop.f32.mrf.mxu1 }
0x1610   :  { %v2692_v14 = vadd.f32 %v5181_v0, %v2691_v59 }
0x1611   :  { %v4218_v60 = vpop.f32.mrf.mxu1 }
0x1612   :  { %2819 = vrot.lane.b32.xlu1 %v5142_v13, %s4682_s27  ;;  %v2700_v62 = vsel %vm514_vm3, %v2692_v14, -inf }
0x1613   :  { %2701 = vmax.xlane.f32.xlu0 %v2700_v62  ;;  %v2694_v63 = vpop.f32.mrf.mxu1 }
0x1615   :  { %v4219_v1 = vpop.f32.mrf.mxu1 }
0x1616   :  { %2869 = vrot.lane.b32.xlu1 %v5149_v54, %s4682_s27 }
0x161a   :  { %2817 = vrot.lane.b32.xlu1 %v5151_v57, %s4682_s27 }
0x1686   :  { %v2699_v2 = vpop.xlane.xlu1 %2698 }
0x1687   :  { %v2703_v3 = vsub.f32 %v2642_v44, %v2699_v2 }
0x1689   :  { %v2705_v7 = vmul.f32 1.442695, %v2703_v3 }
0x168a   :  { %v2722_v8 = vpop.permute.xlu1 %2721 }
0x168b   :  { %4549 = vpow2.f32 %v2705_v7  ;;  %v2727_v9 = vsel %vm542_vm2, %v2722_v8, 0 }
0x168c   :  { %4221 = vmatpush3.bf16.msra.mxu0 %v2727_v9 }
0x168d   :  { %4232 = vmatprep.subr.bf16.mxu0 %v4678_v4 }
0x168e   :  { %v2820_v25 = vpop.permute.xlu1 %2819 }
0x168f   :  { %v2825_v32 = vsel %vm421_vm1, %v2820_v25, 0 }
0x1692   :  { %v2870_v33 = vpop.permute.xlu1 %2869 }
0x1693   :  { %v2875_v11 = vsel %vm421_vm1, %v2870_v33, 0  ;;  %v4437_v33 = vld [vmem:[%s5412_s6 + $0x58] sm:$0xff]  }
0x1698   :  { %v4550_v13 = vpop.eup %4549 }
0x1699   :  { %v2709_v10 = vsel %vm514_vm3, %v4550_v13, 0.0 }
0x169a   :  { %2710 = vadd.xlane.f32.xlu0 %v2709_v10 }
0x169c   :  { %v2702_v12 = vpop.xlane.xlu0 %2701 }
0x169d   :  { %v2704_v16 = vsub.f32 %v2692_v14, %v2702_v12 }
0x169f   :  { %v2707_v54 = vmul.f32 1.442695, %v2704_v16 }
0x16a1   :  { %4551 = vpow2.f32 %v2707_v54 }
0x16ae   :  { %v4552_v22 = vpop.eup %4551 }
0x16af   :  { %v2712_v57 = vsel %vm514_vm3, %v4552_v22, 0.0 }
0x16b0   :  { %2713 = vadd.xlane.f32.xlu0 %v2712_v57 }
0x16c6   :  { %2769 = vrot.lane.b32.xlu0 %v5202_v37, %s4676_s22 }
0x16ca   :  { %2867 = vrot.lane.b32.xlu0 %v5162_v18, %s4682_s27  ;;  %v2818_v18 = vpop.permute.xlu1 %2817 }
0x1723   :  { %v2711_v23 = vpop.xlane.xlu0 %2710 }
0x1724   :  { %4553 = vrcp.f32 %v2711_v23 }
0x1731   :  { %v4554_v24 = vpop.eup %4553 }
0x1732   :  { %v2716_v30 = vmul.f32 %v4554_v24, %v4550_v13 }
0x1734   :  { %v2719_v31 = vpack.c.bf16 %v2716_v30, %v2716_v30 }
0x1736   :  { %4223 = vmatmul.mubr.msk.bf16.vlgmr.msra.gmra.mxu0 %vm514_vm3, %v2719_v31  ;;  %v4434_v31 = vld [vmem:[%s5412_s6 + $0x70] sm:$0xff]  }
0x1737   :  { %4233 = vmatpush3.bf16.xpose.msra.mxu0 %v2825_v32  ;;  %4234 = vmatprep.mubr.msk.bf16.mxu0 %vm4680_vm0, %v4678_v4  ;;  %v4435_v32 = vld [vmem:[%s5412_s6 + $0x68] sm:$0xff]  }
0x1738   :  { %4244 = vmatprep.subr.bf16.mxu0 %v4678_v4 }
0x1739   :  { %v2714_v34 = vpop.xlane.xlu0 %2713 }
0x173a   :  { %4555 = vrcp.f32 %v2714_v34  ;;  %v4438_v34 = vld [vmem:[%s5412_s6 + $0x50] sm:$0xff]  }
0x173d   :  { %v2770_v35 = vpop.permute.xlu0 %2769 }
0x173e   :  { %v2775_v36 = vsel %vm542_vm2, %v2770_v35, 0  ;;  %4235 = vmatmul.mubr.msk.bf16.vlgmr.msra.gmra.mxu0 %vm421_vm1, %v2818_v18  ;;  %v4439_v18 = vld [vmem:[%s5412_s6 + $0x48] sm:$0xff]  }
0x173f   :  { %4227 = vmatpush3.bf16.msra.mxu1 %v2775_v36  ;;  %4246 = vmatprep.mubr.msk.bf16.mxu0 %vm4680_vm0, %v4678_v4 }
0x1740   :  { %4238 = vmatprep.subr.bf16.mxu1 %v4678_v4 }
0x1741   :  { %v2868_v40 = vpop.permute.xlu0 %2867 }
0x1747   :  { %v4556_v21 = vpop.eup %4555 }
0x1748   :  { %v2718_v29 = vmul.f32 %v4556_v21, %v4552_v22 }
0x174a   :  { %v2720_v39 = vpack.c.bf16 %v2718_v29, %v2718_v29 }
0x174c   :  { %4229 = vmatmul.mubr.msk.bf16.vlgmr.msra.gmra.mxu1 %vm514_vm3, %v2720_v39  ;;  %v4440_v39 = vld [vmem:[%s5412_s6 + $0x40] sm:$0xff]  }
0x174d   :  { %4239 = vmatpush3.bf16.xpose.msra.mxu1 %v2875_v11  ;;  %4240 = vmatprep.mubr.msk.bf16.mxu1 %vm4680_vm0, %v4678_v4 }
0x174e   :  { %4250 = vmatprep.subr.bf16.mxu1 %v4678_v4 }
0x1754   :  { %4241 = vmatmul.mubr.msk.bf16.vlgmr.msra.gmra.mxu1 %vm421_vm1, %v2868_v40 }
0x1755   :  { %4252 = vmatprep.mubr.msk.bf16.mxu1 %vm4680_vm0, %v4678_v4 }
0x17f6   :  { %v2763_v41 = vpop.f32.mrf.mxu0 }
0x17f8   :  { %v4224_v42 = vpop.f32.mrf.mxu0 }
0x17fa   :  { %v2766_v43 = vpop.f32.mrf.mxu0 }
0x17fc   :  { %v4225_v6 = vpop.f32.mrf.mxu0 }
0x17fe   :  { %v2861_v5 = vpop.f32.mrf.mxu0 }
0x17ff   :  { %v2862_v15 = vadd.f32 %v5174_v53, %v2861_v5 }
0x1800   :  { %v4236_v17 = vpop.f32.mrf.mxu0 }
0x1801   :  { %v2917_v44 = vsel %vm514_vm3, %v2862_v15, -inf }
0x1802   :  { %2918 = vmax.xlane.f32.xlu1 %v2917_v44  ;;  %v2864_v19 = vpop.f32.mrf.mxu0 }
0x1804   :  { %v4237_v50 = vpop.f32.mrf.mxu0 }
0x180c   :  { %v2811_v46 = vpop.f32.mrf.mxu1 }
0x180d   :  { %v4311_v62 = vpack.i.bf16 %v2811_v46, %v2763_v41 }
0x180e   :  { %v4230_v26 = vpop.f32.mrf.mxu1 }
0x1810   :  { %v2814_v49 = vpop.f32.mrf.mxu1 }
0x1812   :  { %v4231_v52 = vpop.f32.mrf.mxu1 }
0x1813   :  { %2941 = vrot.lane.b32.xlu1 %v5160_v48, %s4682_s27 }
0x1814   :  { %v2911_v56 = vpop.f32.mrf.mxu1 }
0x1815   :  { %v2912_v59 = vadd.f32 %v5181_v0, %v2911_v56 }
0x1816   :  { %v4242_v14 = vpop.f32.mrf.mxu1 }
0x1817   :  { %4307 = vrot.lane.b32.xlu1 %v4306_v51, %s4682_s27  ;;  %v2920_v53 = vsel %vm514_vm3, %v2912_v59, -inf }
0x1818   :  { %2921 = vmax.xlane.f32.xlu0 %v2920_v53  ;;  %v2914_v60 = vpop.f32.mrf.mxu1 }
0x1819   :  { %v3808_v60 = vld [vmem:[%s5413_s7 + $0x1] ss:$0 sm:$0xff] }
0x181a   :  { %v4243_v63 = vpop.f32.mrf.mxu1 }
0x181b   :  { %4312 = vrot.lane.b32.xlu1 %v4311_v62, %s4676_s22 }
0x188b   :  { %v2919_v1 = vpop.xlane.xlu1 %2918 }
0x188c   :  { %v2923_v2 = vsub.f32 %v2862_v15, %v2919_v1 }
0x188e   :  { %v2925_v48 = vmul.f32 1.442695, %v2923_v2 }
0x188f   :  { %v2942_v3 = vpop.permute.xlu1 %2941 }
0x1890   :  { %4557 = vpow2.f32 %v2925_v48  ;;  %v2947_v0 = vsel %vm542_vm2, %v2942_v3, 0 }
0x1891   :  { %4245 = vmatpush3.bf16.msra.mxu0 %v2947_v0  ;;  %v4441_v0 = vld [vmem:[#allocation5 + $0xf0] ss:$8 sps:$4 sm:$0xff]  }
0x1892   :  { %4256 = vmatprep.subr.bf16.mxu0 %v4678_v4 }
0x1893   :  { %v4308_v6 = vpop.permute.xlu1 %4307 }
0x1894   :  { %v4310_v15 = vunpack.i.h.bf16 %v4308_v6 }
0x1896   :  { %v3062_v50 = vsel %vm421_vm1, %v5222_v28, %v4310_v15 }
0x1897   :  { %v4313_v5 = vpop.permute.xlu1 %4312 }
0x1898   :  { %v4315_v17 = vunpack.i.h.bf16 %v4313_v5  ;;  %v4314_v44 = vunpack.i.l.bf16 %v4313_v5 }
0x189a   :  { %v3064_v52 = vsel %vm1324_vm4, %v3062_v50, %v4315_v17  ;;  %v4465_v17 = vld [vmem:[#allocation7 + $0xf8] sm:$0xff]   ;;  %v4468_v50 = vld [vmem:[#allocation7 + $0xb0] sm:$0xff]  }
0x189d   :  { %v4558_v58 = vpop.eup %4557 }
0x189e   :  { %v2929_v47 = vsel %vm514_vm3, %v4558_v58, 0.0 }
0x189f   :  { %2930 = vadd.xlane.f32.xlu0 %v2929_v47 }
0x18a1   :  { %v2922_v51 = vpop.xlane.xlu0 %2921 }
0x18a2   :  { %v2924_v7 = vsub.f32 %v2912_v59, %v2922_v51 }
0x18a4   :  { %v2927_v8 = vmul.f32 1.442695, %v2924_v7 }
0x18a6   :  { %4559 = vpow2.f32 %v2927_v8 }
0x18b3   :  { %v4560_v9 = vpop.eup %4559 }
0x18b4   :  { %v2932_v13 = vsel %vm514_vm3, %v4560_v9, 0.0 }
0x18b5   :  { %2933 = vadd.xlane.f32.xlu0 %v2932_v13 }
0x18cb   :  { %2989 = vrot.lane.b32.xlu0 %v5202_v37, %s4682_s27  ;;  %v4433_v37 = vld [vmem:[%s5412_s6 + $0x78] sm:$0xff]  }
0x1928   :  { %v2931_v10 = vpop.xlane.xlu0 %2930 }
0x1929   :  { %4561 = vrcp.f32 %v2931_v10 }
0x1936   :  { %v4562_v12 = vpop.eup %4561 }
0x1937   :  { %v2936_v16 = vmul.f32 %v4562_v12, %v4558_v58  ;;  %v4443_v58 = vld [vmem:[#allocation5 + $0xf4] ss:$8 sps:$4 sm:$0xff]   ;;  %v4446_v12 = vld [vmem:[#allocation5 + $0xe4] ss:$8 sps:$4 sm:$0xff]  }
0x1939   :  { %v2939_v54 = vpack.c.bf16 %v2936_v16, %v2936_v16  ;;  %v4444_v16 = vld [vmem:[#allocation5 + $0xe0] ss:$8 sps:$4 sm:$0xff]  }
0x193b   :  { %4247 = vmatmul.mubr.msk.bf16.vlgmr.msra.gmra.mxu0 %vm514_vm3, %v2939_v54  ;;  %v4447_v54 = vld [vmem:[#allocation5 + $0xd0] ss:$8 sps:$4 sm:$0xff]  }
0x193c   :  { %4272 = vmatprep.mubr.msk.bf16.mxu0 %vm4680_vm0, %v4678_v4  ;;  %4257 = vmatpush3.bf16.msra.mxu0 %v4433_v37  ;;  %v4461_v37 = vld [vmem:[#allocation5 + $0x94] ss:$8 sps:$4 sm:$0xff]  }
0x193d   :  { %4258 = vmatprep.subr.bf16.mxu0 %v4678_v4 }
0x193e   :  { %v2934_v22 = vpop.xlane.xlu0 %2933 }
0x193f   :  { %4563 = vrcp.f32 %v2934_v22  ;;  %v4450_v22 = vld [vmem:[#allocation5 + $0xc0] ss:$8 sps:$4 sm:$0xff]  }
0x1940   :  { %4259 = vmatpush3.bf16.msra.mxu0 %v4434_v31  ;;  %v4459_v31 = vld [vmem:[#allocation5 + $0x90] ss:$8 sps:$4 sm:$0xff]  }
0x1941   :  { %4260 = vmatprep.subr.bf16.mxu0 %v4678_v4 }
0x1942   :  { %v2990_v57 = vpop.permute.xlu0 %2989 }
0x1943   :  { %v2995_v23 = vsel %vm542_vm2, %v2990_v57, 0  ;;  %v4452_v57 = vld [vmem:[#allocation5 + $0xc4] ss:$8 sps:$4 sm:$0xff]  }
0x1944   :  { %4251 = vmatpush3.bf16.msra.mxu1 %v2995_v23  ;;  %4261 = vmatpush3.bf16.msra.mxu0 %v4435_v32  ;;  %v4455_v23 = vld [vmem:[#allocation5 + $0xb4] ss:$8 sps:$4 sm:$0xff]   ;;  %v4464_v32 = vld [vmem:[#allocation5 + $0x84] ss:$8 sps:$4 sm:$0xff]  }
0x1945   :  { %4262 = vmatprep.subr.bf16.mxu0 %v4678_v4  ;;  %3337 = vmatprep.subr.bf16.mxu1 %v4443_v58 }
0x194c   :  { %v4564_v24 = vpop.eup %4563 }
0x194d   :  { %v2938_v25 = vmul.f32 %v4564_v24, %v4560_v9  ;;  %v4453_v24 = vld [vmem:[#allocation5 + $0xb0] ss:$8 sps:$4 sm:$0xff]  }
0x194f   :  { %v2940_v30 = vpack.c.bf16 %v2938_v25, %v2938_v25  ;;  %v4458_v25 = vld [vmem:[#allocation5 + $0xa4] ss:$8 sps:$4 sm:$0xff]  }
0x1951   :  { %4253 = vmatmul.mubr.msk.bf16.vlgmr.msra.gmra.mxu1 %vm514_vm3, %v2940_v30  ;;  %v4456_v30 = vld [vmem:[#allocation5 + $0xa0] ss:$8 sps:$4 sm:$0xff]  }
0x1952   :  { %3369 = vmatprep.mubr.bf16.mxu1 %v4679_v27  ;;  %v4436_v27 = vld [vmem:[%s5412_s6 + $0x60] sm:$0xff]   ;;  %3338 = vmatpush1.bf16.msra.mxu1 %v4441_v0 }
0x1953   :  { %4263 = vmatpush3.bf16.msra.mxu0 %v4436_v27  ;;  %3339 = vmatprep.subr.bf16.mxu1 %v4446_v12  ;;  %v4462_v27 = vld [vmem:[#allocation5 + $0x80] ss:$8 sps:$4 sm:$0xff]  }
0x1954   :  { %4264 = vmatprep.subr.bf16.mxu0 %v4678_v4 }
0x1956   :  { %3340 = vmatpush1.bf16.msra.mxu1 %v4444_v16 }
0x1957   :  { %4265 = vmatpush3.bf16.msra.mxu0 %v4437_v33 }
0x1958   :  { %4266 = vmatprep.subr.bf16.mxu0 %v4678_v4 }
0x195b   :  { %4267 = vmatpush3.bf16.msra.mxu0 %v4438_v34 }
0x195c   :  { %4268 = vmatprep.subr.bf16.mxu0 %v4678_v4 }
0x195f   :  { %4269 = vmatpush3.bf16.msra.mxu0 %v4439_v18 }
0x1960   :  { %4270 = vmatprep.subr.bf16.mxu0 %v4678_v4  ;;  %v4309_v4 = vunpack.i.l.bf16 %v4308_v6 }
0x1962   :  { %v3061_v46 = vsel %vm421_vm1, %v5220_v45, %v4309_v4 }
0x1963   :  { %4271 = vmatpush3.bf16.msra.mxu0 %v4440_v39  ;;  %v3063_v56 = vsel %vm1324_vm4, %v3061_v46, %v4314_v44  ;;  %v4466_v44 = vld [vmem:[#allocation7 + $0xb8] sm:$0xff]   ;;  %v4469_v46 = vld [vmem:[#allocation7 + $0xe8] sm:$0xff]  }
0x1964   :  { %3982 = vmatprep.subr.bf16.mxu0 %v4465_v17 }
0x19fb   :  { %v2983_v35 = vpop.f32.mrf.mxu0 }
0x19fd   :  { %v4248_v36 = vpop.f32.mrf.mxu0 }
0x19ff   :  { %v2986_v21 = vpop.f32.mrf.mxu0 }
0x1a01   :  { %v4249_v29 = vpop.f32.mrf.mxu0 }
0x1a11   :  { %v3031_v11 = vpop.f32.mrf.mxu1 }
0x1a12   :  { %v4316_v40 = vpack.i.bf16 %v3031_v11, %v2983_v35  ;;  %v3819_v11 = vld [vmem:[%s5414_s8 + $0x1] ss:$0 sm:$0xff] }
0x1a13   :  { %v4254_v41 = vpop.f32.mrf.mxu1 }
0x1a14   :  { %4317 = vrot.lane.b32.xlu1 %v4316_v40, %s4681_s26 }
0x1a15   :  { %v3034_v42 = vpop.f32.mrf.mxu1 }
0x1a17   :  { %v4255_v43 = vpop.f32.mrf.mxu1 }
0x1a18   :  { %v3820_v43 = vld [vmem:[%s5415_s9 + $0x1] ss:$0 sm:$0xff] }
0x1a86   :  { %v4318_v19 = vpop.permute.xlu1 %4317 }
0x1a87   :  { %v4320_v26 = vunpack.i.h.bf16 %v4318_v19  ;;  %v4319_v49 = vunpack.i.l.bf16 %v4318_v19  ;;  %v4467_v19 = vld [vmem:[#allocation7 + $0xf0] sm:$0xff]  }
0x1a89   :  { %v3066_v59 = vsel %vm1327_vm5, %v3064_v52, %v4320_v26  ;;  %v3065_v14 = vsel %vm1327_vm5, %v3063_v56, %v4319_v49  ;;  %v4470_v26 = vld [vmem:[#allocation7 + $0xa8] sm:$0xff]   ;;  %v4471_v49 = vld [vmem:[#allocation7 + $0xe0] sm:$0xff]   ;;  %v4473_v56 = vld [vmem:[#allocation7 + $0xd8] sm:$0xff]  }
0x1a8a   :  { %v3067_v53 = vpack.c.bf16 %v3066_v59, %v3065_v14  ;;  %v4472_v52 = vld [vmem:[#allocation7 + $0xa0] sm:$0xff]   ;;  %v4474_v59 = vld [vmem:[#allocation7 + $0x98] sm:$0xff]   ;;  %v4475_v14 = vld [vmem:[#allocation7 + $0xd0] sm:$0xff]  }
0x1a8c   :  { %4273 = vmatmul.mubr.bf16.vlgmr.msra.gmra.mxu0 %v3067_v53  ;;  %v4476_v53 = vld [vmem:[#allocation7 + $0x90] sm:$0xff]  }
0x1a8d   :  { %3983 = vmatpush3.bf16.msra.mxu0 %v4466_v44 }
0x1a8e   :  { %3984 = vmatprep.subr.bf16.mxu0 %v4467_v19 }
0x1a91   :  { %3985 = vmatpush3.bf16.msra.mxu0 %v4468_v50 }
0x1a92   :  { %3986 = vmatprep.subr.bf16.mxu0 %v4469_v46  ;;  %v3839_v46 = vld [vmem:[%s5419_s13 + $0x1] ss:$0 sm:$0xff] }
0x1a95   :  { %3987 = vmatpush3.bf16.msra.mxu0 %v4470_v26 }
0x1a96   :  { %3988 = vmatprep.subr.bf16.mxu0 %v4471_v49 }
0x1a99   :  { %3989 = vmatpush3.bf16.msra.mxu0 %v4472_v52 }
0x1a9a   :  { %3990 = vmatprep.subr.bf16.mxu0 %v4473_v56 }
0x1a9d   :  { %3991 = vmatpush3.bf16.msra.mxu0 %v4474_v59 }
0x1a9e   :  { %3992 = vmatprep.subr.bf16.mxu0 %v4475_v14 }
0x1aa1   :  { %3993 = vmatpush3.bf16.msra.mxu0 %v4476_v53 }
0x1b4c   :  { %v3175_v28 = vpop.f32.mrf.mxu0 }
0x1b4d   :  { %v3176_v62 = vadd.f32 %v3808_v60, %v3175_v28  ;;  %v4478_v28 = vld [vmem:[#allocation7 + $0x88] sm:$0xff]  }
0x1b4e   :  { %v4274_v63 = vpop.f32.mrf.mxu0 }
0x1b4f   :  { %v3182_v45 = vadd.f32 %v3176_v62, %v5125_v38  ;;  %v4479_v62 = vld [vmem:[#allocation7 + $0xc0] sm:$0xff]  }
0x1b50   :  { %v3178_v1 = vpop.f32.mrf.mxu0  ;;  %v4480_v63 = vld [vmem:[#allocation7 + $0x80] sm:$0xff]  }
0x1b51   :  { %v3179_v2 = vadd.f32 %v3808_v60, %v3178_v1  ;;  %3188 = vadd.xlane.f32.xlu0 %v3182_v45  ;;  %v4477_v60 = vld [vmem:[#allocation7 + $0xc8] sm:$0xff]  }
0x1b52   :  { %v4275_v48 = vpop.f32.mrf.mxu0  ;;  %3994 = vmatprep.subr.bf16.mxu0 %v4477_v60 }
0x1b53   :  { %v3183_v3 = vadd.f32 %v3179_v2, %v5127_v20  ;;  %v4449_v20 = vld [vmem:[#allocation5 + $0xd4] ss:$8 sps:$4 sm:$0xff]   ;;  %3995 = vmatpush3.bf16.msra.mxu0 %v4478_v28 }
0x1b54   :  { %3341 = vmatprep.subr.bf16.mxu1 %v4449_v20  ;;  %3996 = vmatprep.subr.bf16.mxu0 %v4479_v62 }
0x1b55   :  { %3190 = vadd.xlane.f32.xlu1 %v3183_v3  ;;  %3342 = vmatpush1.bf16.msra.mxu1 %v4447_v54 }
0x1b56   :  { %3343 = vmatprep.subr.bf16.mxu1 %v4452_v57 }
0x1b57   :  { %3997 = vmatpush3.bf16.msra.mxu0 %v4480_v63 }
0x1b59   :  { %3344 = vmatpush1.bf16.msra.mxu1 %v4450_v22 }
0x1b5a   :  { %3345 = vmatprep.subr.bf16.mxu1 %v4455_v23 }
0x1b5d   :  { %3346 = vmatpush1.bf16.msra.mxu1 %v4453_v24 }
0x1b5e   :  { %3347 = vmatprep.subr.bf16.mxu1 %v4458_v25 }
0x1b61   :  { %3348 = vmatpush1.bf16.msra.mxu1 %v4456_v30 }
0x1b62   :  { %3349 = vmatprep.subr.bf16.mxu1 %v4461_v37 }
0x1b65   :  { %3350 = vmatpush1.bf16.msra.mxu1 %v4459_v31 }
0x1b66   :  { %3351 = vmatprep.subr.bf16.mxu1 %v4464_v32 }
0x1b69   :  { %3352 = vmatpush1.bf16.msra.mxu1 %v4462_v27 }
0x1bda   :  { %v3189_v47 = vpop.xlane.xlu0 %3188 }
0x1bdb   :  { %v3192_v51 = vmul.f32 0.0078125, %v3189_v47 }
0x1bdd   :  { %v3194_v7 = vsub.f32 %v3182_v45, %v3192_v51  ;;  %v3821_v45 = vld [vmem:[%s5417_s11 + $0x2] sm:$0x3] }
0x1bde   :  { %v3191_v8 = vpop.xlane.xlu1 %3190  ;;  %v3250_v1 = vrot.slane %v3821_v45, %v4839_v61  ;;  %v3254_v2 = vrot.slane %v3821_v45, %v4831_v55 }
0x1bdf   :  { %v3193_v9 = vmul.f32 0.0078125, %v3191_v8  ;;  %v3196_v13 = vmul.f32 %v3194_v7, %v3194_v7 }
0x1be1   :  { %v3195_v10 = vsub.f32 %v3183_v3, %v3193_v9  ;;  %3198 = vadd.xlane.f32.xlu0 %v3196_v13 }
0x1be3   :  { %v3197_v38 = vmul.f32 %v3195_v10, %v3195_v10 }
0x1be5   :  { %3200 = vadd.xlane.f32.xlu0 %v3197_v38 }
0x1c6a   :  { %v3199_v33 = vpop.xlane.xlu0 %3198 }
0x1c6b   :  { %v3202_v34 = vmul.f32 0.0078125, %v3199_v33 }
0x1c6d   :  { %v3204_v18 = vadd.f32 1e-12, %v3202_v34 }
0x1c6e   :  { %v3201_v35 = vpop.xlane.xlu0 %3200 }
0x1c6f   :  { %4565 = vrsqrt.f32 %v3204_v18  ;;  %v3203_v36 = vmul.f32 0.0078125, %v3201_v35 }
0x1c71   :  { %v3205_v21 = vadd.f32 1e-12, %v3203_v36 }
0x1c73   :  { %4567 = vrsqrt.f32 %v3205_v21 }
0x1c7c   :  { %v4566_v29 = vpop.eup %4565 }
0x1c7d   :  { %v3208_v39 = vmul.f32 %v4566_v29, %v3194_v7 }
0x1c7f   :  { %v3216_v42 = vmul.f32 %v3819_v11, %v3208_v39 }
0x1c80   :  { %v4568_v40 = vpop.eup %4567 }
0x1c81   :  { %v3209_v41 = vmul.f32 %v4568_v40, %v3195_v10  ;;  %v5378_v5 = vadd.f32 %v3820_v43, %v3216_v42 }
0x1c83   :  { %v3217_v6 = vmul.f32 %v3819_v11, %v3209_v41 }
0x1c85   :  { %v5380_v15 = vadd.f32 %v3820_v43, %v3217_v6 }
0x1c87   :  { %v3226_v4 = vpack.c.bf16 %v5380_v15, %v5378_v5 }
0x1c89   :  { %3370 = vmatmul.mubr.bf16.vlgmr.msra.gmra.mxu1 %v3226_v4 }
0x1d49   :  { %v3371_v48 = vpop.f32.mrf.mxu1 }
0x1d4a   :  { %v3372_v3 = vadd.f32 %v3371_v48, %v3250_v1 }
0x1d4b   :  { %v3373_v0 = vpop.f32.mrf.mxu1 }
0x1d4c   :  { %v3384_v58 = vmul.f32 0.044715, %v3372_v3  ;;  %v3374_v47 = vadd.f32 %v3373_v0, %v3254_v2  ;;  %v3380_v42 = vmul.f32 0.5, %v3372_v3 }
0x1d4d   :  { %v3375_v51 = vpop.f32.mrf.mxu1 }
0x1d4e   :  { %v3388_v7 = vmul.f32 %v3384_v58, %v3372_v3  ;;  %v3385_v8 = vmul.f32 0.044715, %v3374_v47  ;;  %v3376_v9 = vadd.f32 %v3375_v51, %v3250_v1  ;;  %v3381_v11 = vmul.f32 0.5, %v3374_v47 }
0x1d4f   :  { %v3377_v13 = vpop.f32.mrf.mxu1 }
0x1d50   :  { %v3392_v10 = vmul.f32 %v3388_v7, %v3372_v3  ;;  %v3389_v38 = vmul.f32 %v3385_v8, %v3374_v47  ;;  %v3386_v12 = vmul.f32 0.044715, %v3376_v9  ;;  %v3378_v16 = vadd.f32 %v3377_v13, %v3254_v2 }
0x1d51   :  { %v3382_v29 = vmul.f32 0.5, %v3376_v9 }
0x1d52   :  { %v3396_v20 = vadd.f32 %v3392_v10, %v3372_v3  ;;  %v3393_v54 = vmul.f32 %v3389_v38, %v3374_v47  ;;  %v3390_v22 = vmul.f32 %v3386_v12, %v3376_v9  ;;  %v3387_v61 = vmul.f32 0.044715, %v3378_v16  ;;  %v3859_v10 = vld [vmem:[%s5421_s15 + $0x1] ss:$0 sm:$0xff] }
0x1d53   :  { %v3383_v40 = vmul.f32 0.5, %v3378_v16 }
0x1d54   :  { %v3394_v57 = vmul.f32 %v3390_v22, %v3376_v9  ;;  %v3391_v55 = vmul.f32 %v3387_v61, %v3378_v16  ;;  %v3397_v23 = vadd.f32 %v3393_v54, %v3374_v47  ;;  %v3400_v24 = vmul.f32 0.7978846, %v3396_v20 }
0x1d56   :  { %v3398_v25 = vadd.f32 %v3394_v57, %v3376_v9  ;;  %v3395_v30 = vmul.f32 %v3391_v55, %v3378_v16  ;;  %v3401_v37 = vmul.f32 0.7978846, %v3397_v23  ;;  %v3858_v9 = vld [vmem:[%s5420_s14 + $0x1] ss:$0 sm:$0xff] }
0x1d58   :  { %v3402_v31 = vmul.f32 0.7978846, %v3398_v25  ;;  %v3399_v32 = vadd.f32 %v3395_v30, %v3378_v16  ;;  %4569 = vtanh.f32 %v3401_v37 }
0x1d59   :  { %4571 = vtanh.f32 %v3400_v24 }
0x1d5a   :  { %4573 = vtanh.f32 %v3402_v31  ;;  %v3403_v27 = vmul.f32 0.7978846, %v3399_v32 }
0x1d5c   :  { %4575 = vtanh.f32 %v3403_v27 }
0x1d65   :  { %v4570_v33 = vpop.eup %4569 }
0x1d66   :  { %v4572_v34 = vpop.eup %4571  ;;  %v3409_v35 = vadd.f32 1.0, %v4570_v33 }
0x1d67   :  { %v4574_v18 = vpop.eup %4573  ;;  %v3408_v39 = vadd.f32 1.0, %v4572_v34 }
0x1d68   :  { %v3410_v36 = vadd.f32 1.0, %v4574_v18  ;;  %v3413_v6 = vmul.f32 %v3409_v35, %v3381_v11 }
0x1d69   :  { %v4576_v21 = vpop.eup %4575  ;;  %v3412_v17 = vmul.f32 %v3408_v39, %v3380_v42 }
0x1d6a   :  { %v3411_v41 = vadd.f32 1.0, %v4576_v21  ;;  %v3414_v43 = vmul.f32 %v3410_v36, %v3382_v29 }
0x1d6c   :  { %v3415_v4 = vmul.f32 %v3411_v41, %v3383_v40  ;;  %v3416_v19 = vpack.c.bf16 %v3414_v43, %v3412_v17 }
0x1d6e   :  { %v3417_v44 = vpack.c.bf16 %v3415_v4, %v3413_v6 }
0x1d70   :  { %3587 = vmatprep.mubr.bf16.mxu0 %v3417_v44 }
0x1d71   :  { %3588 = vmatmul.mubr.bf16.vlgmr.msra.gmra.mxu0 %v3416_v19 }
0x1e31   :  { %v3998_v50 = vpop.f32.mrf.mxu0 }
0x1e33   :  { %v3999_v26 = vpop.f32.mrf.mxu0 }
0x1e34   :  { %v4000_v49 = vadd.f32 %v3999_v26, %v3998_v50 }
0x1e35   :  { %v4001_v52 = vpop.f32.mrf.mxu0 }
0x1e36   :  { %v3590_v56 = vadd.f32 %v4000_v49, %v3839_v46 }
0x1e37   :  { %v4002_v59 = vpop.f32.mrf.mxu0 }
0x1e38   :  { %v4003_v14 = vadd.f32 %v4002_v59, %v4001_v52  ;;  %v3596_v53 = vadd.f32 %v3590_v56, %v5378_v5 }
0x1e3a   :  { %v3593_v60 = vadd.f32 %v4003_v14, %v3839_v46  ;;  %3602 = vadd.xlane.f32.xlu0 %v3596_v53 }
0x1e3c   :  { %v3597_v28 = vadd.f32 %v3593_v60, %v5380_v15 }
0x1e3e   :  { %3604 = vadd.xlane.f32.xlu1 %v3597_v28 }
0x1ec3   :  { %v3603_v62 = vpop.xlane.xlu0 %3602 }
0x1ec4   :  { %v3606_v63 = vmul.f32 0.0078125, %v3603_v62 }
0x1ec6   :  { %v3608_v45 = vsub.f32 %v3596_v53, %v3606_v63 }
0x1ec7   :  { %v3605_v1 = vpop.xlane.xlu1 %3604 }
0x1ec8   :  { %v3607_v2 = vmul.f32 0.0078125, %v3605_v1  ;;  %v3610_v48 = vmul.f32 %v3608_v45, %v3608_v45 }
0x1eca   :  { %v3609_v3 = vsub.f32 %v3597_v28, %v3607_v2  ;;  %3612 = vadd.xlane.f32.xlu0 %v3610_v48 }
0x1ecc   :  { %v3611_v0 = vmul.f32 %v3609_v3, %v3609_v3 }
0x1ece   :  { %3614 = vadd.xlane.f32.xlu1 %v3611_v0 }
0x1f53   :  { %v3613_v58 = vpop.xlane.xlu0 %3612 }
0x1f54   :  { %v3616_v47 = vmul.f32 0.0078125, %v3613_v58 }
0x1f56   :  { %v3618_v51 = vadd.f32 1e-12, %v3616_v47 }
0x1f57   :  { %v3615_v7 = vpop.xlane.xlu1 %3614 }
0x1f58   :  { %4577 = vrsqrt.f32 %v3618_v51  ;;  %v3617_v5 = vmul.f32 0.0078125, %v3615_v7 }
0x1f5a   :  { %v3619_v8 = vadd.f32 1e-12, %v3617_v5 }
0x1f5c   :  { %4579 = vrsqrt.f32 %v3619_v8 }
0x1f65   :  { %v4578_v15 = vpop.eup %4577 }
0x1f66   :  { %v3622_v13 = vmul.f32 %v4578_v15, %v3608_v45 }
0x1f68   :  { %v3630_v38 = vmul.f32 %v3858_v9, %v3622_v13 }
0x1f69   :  { %v4580_v12 = vpop.eup %4579 }
0x1f6a   :  { %v3623_v16 = vmul.f32 %v4580_v12, %v3609_v3  ;;  %v3638_v20 = vadd.f32 %v3859_v10, %v3630_v38 }
0x1f6c   :  { %v3631_v54 = vmul.f32 %v3858_v9, %v3623_v16  ;;  %3640 = vst [vmem:[#allocation8] sm:$0xff] %v3638_v20 }
0x1f6e   :  { %v3639_v22 = vadd.f32 %v3859_v10, %v3631_v54 }
0x1f70   :  { %3641 = vst [vmem:[#allocation8 + $0x8] sm:$0xff] %v3639_v22 }
0x1f71   :  { %4654 = shalt.err (!%p4651_p5)
}
0x1f72   :  { %3653 = dma.vmem_to_hbm [thread:$0]  %s3648_s18, 256, %s5422_s16, [#allocation4], %s4670_s24, %s4670_s24, %s4671_s25  }
0x1f73   :  { %4667 = dma.done.wait [#allocation4], 256  }
0x1f74   :  { %4668 = vsyncadd [#allocation4], 4294967040 }
0x1f75   :  { %3657 = vsyncpa [#allocation3], 1 }
0x1f76   :  { %3658 = vsyncpa [#allocation6], 1 }
0x1f77   :  { %3659 = vsyncpa [#allocation4], 1 }

</bundles_post_ra>
